<compile_context>
chip_gen: v5e
topology: v5e:2x2
jax: 0.10.0
libtpu: 0.0.40
codegen_flags: <defaults>
</compile_context>

<pallas_src>
import functools
import math

import jax
import jax.numpy as jnp
from jax.experimental import pallas as pl
from jax.experimental.pallas import tpu as pltpu

_LANE = 128
_SUBLANE = 8
_VMEM_LIMIT = 48 * 1024 * 1024      # ~25% headroom vs v7x's 64 MiB physical VMEM


def _round_up(x, m):
    return (x + m - 1) // m * m


# ---------------------------------------------------------------------------
# Kernels
# ---------------------------------------------------------------------------
def expansion_kernel(x_ref, w_ref, b_ref, h_ref, hb_ref):
    # H0 = log(X + 1) @ W_exp + b_exp           (row tile of nodes)
    h = jnp.log(x_ref[...] + 1.0)
    h = jnp.dot(h, w_ref[...], preferred_element_type=jnp.float32) + b_ref[...]
    h_ref[...] = h
    hb_ref[...] = h.astype(jnp.bfloat16)       # bf16 copy feeds layer 0's MXU pass


def gcn_layer_kernel(a_ref, hb_ref, hres_ref, w_ref, b_ref, gamma_ref, beta_ref,
                     h_out_ref, hb_out_ref, acc_ref, *, tile, d_true, eps=1e-5):
    # grid = (row tiles ["parallel"], k reduction tiles ["arbitrary"])
    # a_ref:    (tile, tile)     bf16 streamed A_hat block (i, k)
    # hb_ref:   (N_pad, D_pad)   bf16 VMEM-resident H (constant block idx)
    # hres_ref: (tile, D_pad)    f32  residual H row tile (fetched once per i)
    # w_ref:    (D_pad, D_pad)   f32  VMEM-resident GCN weight
    k = pl.program_id(1)
    nk = pl.num_programs(1)

    @pl.when(k == 0)
    def _():
        acc_ref[...] = jnp.zeros_like(acc_ref)

    off = pl.multiple_of(k * tile, tile)
    h_k = hb_ref[pl.ds(off, tile), :]                       # [tile, D_pad] bf16
    acc_ref[...] += jnp.dot(a_ref[...], h_k, preferred_element_type=jnp.float32)

    @pl.when(k == nk - 1)
    def _():
        # (A_hat @ H) @ W + b   (small f32 epilogue matmul per row tile)
        m = jnp.dot(acc_ref[...], w_ref[...],
                    preferred_element_type=jnp.float32) + b_ref[...]
        d_pad = m.shape[-1]
        col = jax.lax.broadcasted_iota(jnp.int32, (1, d_pad), 1)
        mask = (col < d_true).astype(jnp.float32)
        inv_d = jnp.float32(1.0 / d_true)
        # LayerNorm over the TRUE feature width (padded columns masked out).
        mu = jnp.sum(m * mask, axis=-1, keepdims=True) * inv_d
        diff = (m - mu) * mask
        var = jnp.sum(diff * diff, axis=-1, keepdims=True) * inv_d
        n = diff * jax.lax.rsqrt(var + eps) * gamma_ref[...] + beta_ref[...]
        # exact (erf-form) GELU, matching torch.nn.functional.gelu default
        g = 0.5 * n * (1.0 + jax.lax.erf(n * jnp.float32(1.0 / math.sqrt(2.0))))
        h_new = hres_ref[...] + g                            # residual
        h_out_ref[...] = h_new
        hb_out_ref[...] = h_new.astype(jnp.bfloat16)         # for next layer's MXU


def pool_kernel(p_ref, h_ref, out_ref):
    # global_add_pool: out[G_pad, D_pad] accumulated across row tiles.
    @pl.when(pl.program_id(0) == 0)
    def _():
        out_ref[...] = jnp.zeros_like(out_ref)
    out_ref[...] += jnp.dot(p_ref[...], h_ref[...],
                            preferred_element_type=jnp.float32)


# ---------------------------------------------------------------------------
# pallas_call wrappers
# ---------------------------------------------------------------------------
def _expansion_call(x_p, w_exp, b_exp, tile):
    n_pad, f = x_p.shape
    d_pad = w_exp.shape[1]
    return pl.pallas_call(
        expansion_kernel,
        out_shape=(jax.ShapeDtypeStruct((n_pad, d_pad), jnp.float32),
                   jax.ShapeDtypeStruct((n_pad, d_pad), jnp.bfloat16)),
        grid=(n_pad // tile,),
        in_specs=[pl.BlockSpec((tile, f), lambda i: (i, 0)),
                  pl.BlockSpec((w_exp.shape[0], d_pad), lambda i: (0, 0)),
                  pl.BlockSpec((1, d_pad), lambda i: (0, 0))],
        out_specs=(pl.BlockSpec((tile, d_pad), lambda i: (i, 0)),
                   pl.BlockSpec((tile, d_pad), lambda i: (i, 0))),
        compiler_params=pltpu.CompilerParams(
            dimension_semantics=("parallel",),
            vmem_limit_bytes=_VMEM_LIMIT),
    )(x_p, w_exp, b_exp)


def _gcn_layer_call(a_hat, hb, h, w, b, gamma, beta, tile, d_true):
    n_pad, d_pad = h.shape
    kernel = functools.partial(gcn_layer_kernel, tile=tile, d_true=d_true)
    cost = pl.CostEstimate(
        flops=2 * n_pad * n_pad * d_pad + 2 * n_pad * d_pad * d_pad,
        transcendentals=2 * n_pad * d_pad,                 # erf + rsqrt
        bytes_accessed=(n_pad * n_pad * 2                  # bf16 A_hat stream
                        + n_pad * d_pad * 2                # resident bf16 H
                        + n_pad * d_pad * 4                # f32 residual in
                        + d_pad * d_pad * 4                # resident f32 W
                        + n_pad * d_pad * (4 + 2)))        # f32 + bf16 H out
    return pl.pallas_call(
        kernel,
        out_shape=(jax.ShapeDtypeStruct((n_pad, d_pad), jnp.float32),
                   jax.ShapeDtypeStruct((n_pad, d_pad), jnp.bfloat16)),
        grid=(n_pad // tile, n_pad // tile),
        in_specs=[
            # A_hat streamed in (tile, tile) bf16 blocks (double-buffered DMA).
            pl.BlockSpec((tile, tile), lambda i, k: (i, k)),
            # bf16 H kept VMEM-resident for the whole grid (constant index).
            pl.BlockSpec((n_pad, d_pad), lambda i, k: (0, 0)),
            # Residual H row tile (k is the inner axis -> fetched once per i).
            pl.BlockSpec((tile, d_pad), lambda i, k: (i, 0)),
            # GCN weight, bias, LayerNorm gamma/beta: VMEM-resident.
            pl.BlockSpec((d_pad, d_pad), lambda i, k: (0, 0)),
            pl.BlockSpec((1, d_pad), lambda i, k: (0, 0)),
            pl.BlockSpec((1, d_pad), lambda i, k: (0, 0)),
            pl.BlockSpec((1, d_pad), lambda i, k: (0, 0)),
        ],
        out_specs=(pl.BlockSpec((tile, d_pad), lambda i, k: (i, 0)),
                   pl.BlockSpec((tile, d_pad), lambda i, k: (i, 0))),
        scratch_shapes=[pltpu.VMEM((tile, d_pad), jnp.float32)],
        compiler_params=pltpu.CompilerParams(
            dimension_semantics=("parallel", "arbitrary"),
            vmem_limit_bytes=_VMEM_LIMIT),
        cost_estimate=cost,
    )(a_hat, hb, h, w, b, gamma, beta)


def _pool_call(pool, h, tile):
    g_pad, n_pad = pool.shape
    d_pad = h.shape[1]
    return pl.pallas_call(
        pool_kernel,
        out_shape=jax.ShapeDtypeStruct((g_pad, d_pad), jnp.float32),
        grid=(n_pad // tile,),
        in_specs=[pl.BlockSpec((g_pad, tile), lambda i: (0, i)),
                  pl.BlockSpec((tile, d_pad), lambda i: (i, 0))],
        out_specs=pl.BlockSpec((g_pad, d_pad), lambda i: (0, 0)),
        compiler_params=pltpu.CompilerParams(
            dimension_semantics=("arbitrary",),       # resident accumulator out
            vmem_limit_bytes=_VMEM_LIMIT),
    )(pool, h)


# ---------------------------------------------------------------------------
# Glue: dense normalized adjacency + pooling matrix (plain JAX, not hot path)
# ---------------------------------------------------------------------------
def build_norm_adj(edge_index, num_nodes):
    src = edge_index[0]
    dst = edge_index[1]
    loops = jnp.arange(num_nodes, dtype=edge_index.dtype)
    src = jnp.concatenate([src, loops])
    dst = jnp.concatenate([dst, loops])
    # A[i, j] = 1 for each edge j -> i (message flows source -> target)
    a = jnp.zeros((num_nodes, num_nodes), jnp.float32).at[dst, src].add(1.0)
    deg = a.sum(axis=1)                              # degree incl. self-loop
    dinv = jnp.where(deg > 0, 1.0 / jnp.sqrt(deg), 0.0)
    return dinv[:, None] * a * dinv[None, :]


def build_pool_matrix(batch, num_graphs):
    return (batch[None, :] == jnp.arange(num_graphs)[:, None]).astype(jnp.float32)


def _pad2(a, rows, cols):
    return jnp.zeros((rows, cols), a.dtype).at[:a.shape[0], :a.shape[1]].set(a)


# ---------------------------------------------------------------------------
# Forward
# ---------------------------------------------------------------------------
@functools.partial(jax.jit, static_argnames=("num_graphs",))
def graph_embedding_forward(x, edge_index, batch, params, num_graphs):
    n = x.shape[0]
    d = params["w_exp"].shape[1]
    num_layers = params["w_gcn"].shape[0]

    d_pad = _round_up(d, _LANE)
    # 256-wide tiles feed the 256x256 MXU on v6e/v7x; 128 for tiny graphs.
    tile = 256 if n > 128 else 128
    n_pad = _round_up(n, tile)
    g_pad = _round_up(num_graphs, _SUBLANE)

    # bf16 A_hat halves the dominant HBM/VMEM footprint and is the native MXU
    # input dtype; the pooling matrix is exact 0/1 so it stays f32.
    a_hat = _pad2(build_norm_adj(edge_index, n), n_pad, n_pad).astype(jnp.bfloat16)
    pool = _pad2(build_pool_matrix(batch, num_graphs), g_pad, n_pad)
    x_p = _pad2(x.astype(jnp.float32), n_pad, x.shape[1])

    # Zero-pad parameters so padded feature columns stay exactly zero through
    # every layer (gamma/beta padded with zeros too).
    w_exp = _pad2(params["w_exp"], params["w_exp"].shape[0], d_pad)
    b_exp = _pad2(params["b_exp"], 1, d_pad)
    w_gcn = jnp.zeros((num_layers, d_pad, d_pad), jnp.float32
                      ).at[:, :d, :d].set(params["w_gcn"])
    b_gcn = jnp.zeros((num_layers, 1, d_pad), jnp.float32
                      ).at[:, :, :d].set(params["b_gcn"])
    gamma = jnp.zeros((num_layers, 1, d_pad), jnp.float32
                      ).at[:, :, :d].set(params["gamma"])
    beta = jnp.zeros((num_layers, 1, d_pad), jnp.float32
                     ).at[:, :, :d].set(params["beta"])

    h, hb = _expansion_call(x_p, w_exp, b_exp, tile)       # f32 + bf16 [N_pad, D_pad]
    for l in range(num_layers):                            # L is small & static
        h, hb = _gcn_layer_call(a_hat, hb, h, w_gcn[l], b_gcn[l],
                                gamma[l], beta[l], tile, d)
    out = _pool_call(pool, h, tile)                        # [G_pad, D_pad] f32
    return out[:num_graphs, :d]


# ---------------------------------------------------------------------------
# Pure-JAX reference (f32, unpadded) for a sanity check
# ---------------------------------------------------------------------------
def reference_forward(x, edge_index, batch, params, num_graphs):
    a_hat = build_norm_adj(edge_index, x.shape[0])
    pool = build_pool_matrix(batch, num_graphs)
    h = jnp.log(x.astype(jnp.float32) + 1.0) @ params["w_exp"] + params["b_exp"]
    inv_sqrt2 = jnp.float32(1.0 / math.sqrt(2.0))
    for l in range(params["w_gcn"].shape[0]):
        m = a_hat @ (h @ params["w_gcn"][l]) + params["b_gcn"][l]
        mu = m.mean(-1, keepdims=True)
        var = ((m - mu) ** 2).mean(-1, keepdims=True)
        nrm = (m - mu) * jax.lax.rsqrt(var + 1e-5) * params["gamma"][l] + params["beta"][l]
        g = 0.5 * nrm * (1.0 + jax.lax.erf(nrm * inv_sqrt2))
        h = h + g
    return pool @ h


def init_params(key, vector_dim, num_conv_layers):
    k_exp_w, k_exp_b, k_gcn_w, _ = jax.random.split(key, 4)
    d = vector_dim
    return {
        # Linear(8, D): weight [8, D] (already transposed for x @ W), bias [1, D]
        "w_exp": (jax.random.uniform(k_exp_w, (8, d), jnp.float32, -1.0, 1.0)
                  / math.sqrt(8.0)),
        "b_exp": (jax.random.uniform(k_exp_b, (1, d), jnp.float32, -1.0, 1.0)
                  / math.sqrt(8.0)),
        # GCNConv(D, D) per layer: weight [D, D], bias [1, D]
        "w_gcn": (jax.random.uniform(k_gcn_w, (num_conv_layers, d, d),
                                     jnp.float32, -1.0, 1.0) / math.sqrt(d)),
        "b_gcn": jnp.zeros((num_conv_layers, 1, d), jnp.float32),
        # LayerNorm(D): gamma=1, beta=0
        "gamma": jnp.ones((num_conv_layers, 1, d), jnp.float32),
        "beta": jnp.zeros((num_conv_layers, 1, d), jnp.float32),
    }


if __name__ == "__main__":
    key = jax.random.PRNGKey(0)
    k_feat, k_param = jax.random.split(key)

    # Small synthetic batch of 2 graphs, 8 nodes each (N=16), 8 raw features.
    num_graphs = 2
    nodes_per_graph = 8
    num_nodes = num_graphs * nodes_per_graph
    vector_dim = 32
    num_conv_layers = 2

    # Non-negative node features (log(x+1) expects >= 0 in practice).
    x = jax.random.uniform(k_feat, (num_nodes, 8), jnp.float32, 0.0, 4.0)

    # Undirected ring within each graph (both edge directions).
    src_list, dst_list = [], []
    for g in range(num_graphs):
        base = g * nodes_per_graph
        for i in range(nodes_per_graph):
            a_node = base + i
            b_node = base + (i + 1) % nodes_per_graph
            src_list += [a_node, b_node]
            dst_list += [b_node, a_node]
    edge_index = jnp.array([src_list, dst_list], dtype=jnp.int32)

    batch = jnp.repeat(jnp.arange(num_graphs, dtype=jnp.int32), nodes_per_graph)

    params = init_params(k_param, vector_dim, num_conv_layers)

    out = graph_embedding_forward(x, edge_index, batch, params, num_graphs)
    out = jax.block_until_ready(out)
    assert out.shape == (num_graphs, vector_dim)
    assert bool(jnp.all(jnp.isfinite(out)))

    # Loose-tolerance check vs f32 reference (kernel uses bf16 A_hat / H).
    ref = jax.block_until_ready(
        reference_forward(x, edge_index, batch, params, num_graphs))
    rel_err = float(jnp.max(jnp.abs(out - ref))) / (float(jnp.max(jnp.abs(ref))) + 1e-6)
    assert rel_err < 5e-2, f"mismatch vs reference: rel_err={rel_err}"

    print("KERNEL_OK")
</pallas_src>

<mosaic_0001>
module attributes {stable_mosaic.version = 11 : i64} {
  func.func @expansion_kernel(%arg0: i32, %arg1: memref<128x8xf32, #tpu.memory_space<vmem>>, %arg2: memref<8x128xf32, #tpu.memory_space<vmem>>, %arg3: memref<1x128xf32, #tpu.memory_space<vmem>>, %arg4: memref<128x128xf32, #tpu.memory_space<vmem>>, %arg5: memref<128x128xbf16, #tpu.memory_space<vmem>>) attributes {dimension_semantics = [#tpu.dimension_semantics<parallel>], iteration_bounds = array<i64: 1>, scalar_prefetch = 0 : i64, scratch_operands = 0 : i64, tpu.core_type = #tpu.core_type<tc>, window_params = [{transform_indices = @transform_0, window_bounds = array<i64: 128, 8>}, {pipeline_mode = #tpu.pipeline_mode<synchronous>, transform_indices = @transform_1, window_bounds = array<i64: 8, 128>}, {pipeline_mode = #tpu.pipeline_mode<synchronous>, transform_indices = @transform_2, window_bounds = array<i64: 1, 128>}, {transform_indices = @transform_3, window_bounds = array<i64: 128, 128>}, {transform_indices = @transform_4, window_bounds = array<i64: 128, 128>}]} {
    %c0 = arith.constant 0 : index
    %c0_0 = arith.constant 0 : index
    %0 = vector.load %arg1[%c0, %c0_0] : memref<128x8xf32, #tpu.memory_space<vmem>>, vector<128x8xf32>
    %cst = arith.constant 1.000000e+00 : f32
    %1 = vector.broadcast %cst : f32 to vector<128x8xf32>
    %2 = arith.addf %0, %1 : vector<128x8xf32>
    %3 = math.log %2 : vector<128x8xf32>
    %c0_1 = arith.constant 0 : index
    %c0_2 = arith.constant 0 : index
    %4 = vector.load %arg2[%c0_1, %c0_2] : memref<8x128xf32, #tpu.memory_space<vmem>>, vector<8x128xf32>
    %cst_3 = arith.constant dense<0.000000e+00> : vector<128x128xf32>
    %5 = tpu.matmul %3, %4, %cst_3 {dimension_numbers = #tpu.dot_dimension_numbers<[1], [0], [0], [1], [0, 0, 1, 1], [], []>} : vector<128x8xf32>, vector<8x128xf32>, vector<128x128xf32> -> vector<128x128xf32>
    %c0_4 = arith.constant 0 : index
    %c0_5 = arith.constant 0 : index
    %6 = vector.load %arg3[%c0_4, %c0_5] : memref<1x128xf32, #tpu.memory_space<vmem>>, vector<1x128xf32>
    %7 = vector.broadcast %6 : vector<1x128xf32> to vector<128x128xf32>
    %8 = arith.addf %5, %7 : vector<128x128xf32>
    %c0_6 = arith.constant 0 : index
    %c0_7 = arith.constant 0 : index
    %9 = vector.load %arg4[%c0_6, %c0_7] : memref<128x128xf32, #tpu.memory_space<vmem>>, vector<128x128xf32>
    tpu.vector_store %arg4[%c0_6, %c0_7], %8 {strides = array<i32>} : memref<128x128xf32, #tpu.memory_space<vmem>>, vector<128x128xf32>,
    %10 = arith.truncf %8 : vector<128x128xf32> to vector<128x128xbf16>
    %c0_8 = arith.constant 0 : index
    %c0_9 = arith.constant 0 : index
    %11 = vector.load %arg5[%c0_8, %c0_9] : memref<128x128xbf16, #tpu.memory_space<vmem>>, vector<128x128xbf16>
    tpu.vector_store %arg5[%c0_8, %c0_9], %10 {strides = array<i32>} : memref<128x128xbf16, #tpu.memory_space<vmem>>, vector<128x128xbf16>,
    return
  }
  func.func @transform_0(%arg0: i32) -> (i32, i32) {
    %c0_i32 = arith.constant 0 : i32
    %c0_i32_0 = arith.constant 0 : i32
    return %arg0, %c0_i32 : i32, i32
  }
  func.func @transform_1(%arg0: i32) -> (i32, i32) {
    %c0_i32 = arith.constant 0 : i32
    %c0_i32_0 = arith.constant 0 : i32
    %c0_i32_1 = arith.constant 0 : i32
    return %c0_i32, %c0_i32_0 : i32, i32
  }
  func.func @transform_2(%arg0: i32) -> (i32, i32) {
    %c0_i32 = arith.constant 0 : i32
    %c0_i32_0 = arith.constant 0 : i32
    %c0_i32_1 = arith.constant 0 : i32
    return %c0_i32, %c0_i32_0 : i32, i32
  }
  func.func @transform_3(%arg0: i32) -> (i32, i32) {
    %c0_i32 = arith.constant 0 : i32
    %c0_i32_0 = arith.constant 0 : i32
    return %arg0, %c0_i32 : i32, i32
  }
  func.func @transform_4(%arg0: i32) -> (i32, i32) {
    %c0_i32 = arith.constant 0 : i32
    %c0_i32_0 = arith.constant 0 : i32
    return %arg0, %c0_i32 : i32, i32
  }
}

module attributes {stable_mosaic.version = 11 : i64} {
  func.func @gcn_layer_kernel(%arg0: i32, %arg1: i32, %arg2: memref<128x128xbf16, #tpu.memory_space<vmem>>, %arg3: memref<128x128xbf16, #tpu.memory_space<vmem>>, %arg4: memref<128x128xf32, #tpu.memory_space<vmem>>, %arg5: memref<128x128xf32, #tpu.memory_space<vmem>>, %arg6: memref<1x128xf32, #tpu.memory_space<vmem>>, %arg7: memref<1x128xf32, #tpu.memory_space<vmem>>, %arg8: memref<1x128xf32, #tpu.memory_space<vmem>>, %arg9: memref<128x128xf32, #tpu.memory_space<vmem>>, %arg10: memref<128x128xbf16, #tpu.memory_space<vmem>>, %arg11: memref<128x128xf32, #tpu.memory_space<vmem>>) attributes {dimension_semantics = [#tpu.dimension_semantics<parallel>, #tpu.dimension_semantics<arbitrary>], iteration_bounds = array<i64: 1, 1>, scalar_prefetch = 0 : i64, scratch_operands = 1 : i64, tpu.core_type = #tpu.core_type<tc>, window_params = [{transform_indices = @transform_0, window_bounds = array<i64: 128, 128>}, {pipeline_mode = #tpu.pipeline_mode<synchronous>, transform_indices = @transform_1, window_bounds = array<i64: 128, 128>}, {transform_indices = @transform_2, window_bounds = array<i64: 128, 128>}, {pipeline_mode = #tpu.pipeline_mode<synchronous>, transform_indices = @transform_3, window_bounds = array<i64: 128, 128>}, {pipeline_mode = #tpu.pipeline_mode<synchronous>, transform_indices = @transform_4, window_bounds = array<i64: 1, 128>}, {pipeline_mode = #tpu.pipeline_mode<synchronous>, transform_indices = @transform_5, window_bounds = array<i64: 1, 128>}, {pipeline_mode = #tpu.pipeline_mode<synchronous>, transform_indices = @transform_6, window_bounds = array<i64: 1, 128>}, {transform_indices = @transform_7, window_bounds = array<i64: 128, 128>}, {transform_indices = @transform_8, window_bounds = array<i64: 128, 128>}]} {
    %c0_i32 = arith.constant 0 : i32
    %0 = arith.cmpi eq, %arg1, %c0_i32 : i32
    %1 = arith.extui %0 : i1 to i32
    %c0_i32_0 = arith.constant 0 : i32
    %2 = arith.cmpi ne, %1, %c0_i32_0 : i32
    scf.if %2 {
      %cst_9 = arith.constant 0.000000e+00 : f32
      %15 = vector.broadcast %cst_9 : f32 to vector<128x128xf32>
      %c0_10 = arith.constant 0 : index
      %c0_11 = arith.constant 0 : index
      %16 = vector.load %arg11[%c0_10, %c0_11] : memref<128x128xf32, #tpu.memory_space<vmem>>, vector<128x128xf32>
      tpu.vector_store %arg11[%c0_10, %c0_11], %15 {strides = array<i32>} : memref<128x128xf32, #tpu.memory_space<vmem>>, vector<128x128xf32>,
    } else {
    }
    %c128_i32 = arith.constant 128 : i32
    %3 = arith.muli %arg1, %c128_i32 : i32
    %4 = tpu.assume_multiple %3, 128 : i32
    %5 = arith.index_cast %4 : i32 to index
    %c0 = arith.constant 0 : index
    %6 = vector.load %arg3[%5, %c0] : memref<128x128xbf16, #tpu.memory_space<vmem>>, vector<128x128xbf16>
    %c0_1 = arith.constant 0 : index
    %c0_2 = arith.constant 0 : index
    %7 = vector.load %arg11[%c0_1, %c0_2] : memref<128x128xf32, #tpu.memory_space<vmem>>, vector<128x128xf32>
    %c0_3 = arith.constant 0 : index
    %c0_4 = arith.constant 0 : index
    %8 = vector.load %arg2[%c0_3, %c0_4] : memref<128x128xbf16, #tpu.memory_space<vmem>>, vector<128x128xbf16>
    %cst = arith.constant dense<0.000000e+00> : vector<128x128xf32>
    %9 = tpu.matmul %8, %6, %cst {dimension_numbers = #tpu.dot_dimension_numbers<[1], [0], [0], [1], [0, 0, 1, 1], [], []>} : vector<128x128xbf16>, vector<128x128xbf16>, vector<128x128xf32> -> vector<128x128xf32>
    %10 = arith.addf %7, %9 : vector<128x128xf32>
    %c0_5 = arith.constant 0 : index
    %c0_6 = arith.constant 0 : index
    %11 = vector.load %arg11[%c0_5, %c0_6] : memref<128x128xf32, #tpu.memory_space<vmem>>, vector<128x128xf32>
    tpu.vector_store %arg11[%c0_5, %c0_6], %10 {strides = array<i32>} : memref<128x128xf32, #tpu.memory_space<vmem>>, vector<128x128xf32>,
    %c0_i32_7 = arith.constant 0 : i32
    %12 = arith.cmpi eq, %arg1, %c0_i32_7 : i32
    %13 = arith.extui %12 : i1 to i32
    %c0_i32_8 = arith.constant 0 : i32
    %14 = arith.cmpi ne, %13, %c0_i32_8 : i32
    scf.if %14 {
      %c0_9 = arith.constant 0 : index
      %c0_10 = arith.constant 0 : index
      %15 = vector.load %arg11[%c0_9, %c0_10] : memref<128x128xf32, #tpu.memory_space<vmem>>, vector<128x128xf32>
      %c0_11 = arith.constant 0 : index
      %c0_12 = arith.constant 0 : index
      %16 = vector.load %arg5[%c0_11, %c0_12] : memref<128x128xf32, #tpu.memory_space<vmem>>, vector<128x128xf32>
      %cst_13 = arith.constant dense<0.000000e+00> : vector<128x128xf32>
      %17 = tpu.matmul %15, %16, %cst_13 {dimension_numbers = #tpu.dot_dimension_numbers<[1], [0], [0], [1], [0, 0, 1, 1], [], []>} : vector<128x128xf32>, vector<128x128xf32>, vector<128x128xf32> -> vector<128x128xf32>
      %c0_14 = arith.constant 0 : index
      %c0_15 = arith.constant 0 : index
      %18 = vector.load %arg6[%c0_14, %c0_15] : memref<1x128xf32, #tpu.memory_space<vmem>>, vector<1x128xf32>
      %19 = vector.broadcast %18 : vector<1x128xf32> to vector<128x128xf32>
      %20 = arith.addf %17, %19 : vector<128x128xf32>
      %21 = tpu.iota {dimensions = array<i32: 1>} : vector<1x128xi32>
      %c32_i32 = arith.constant 32 : i32
      %22 = vector.broadcast %c32_i32 : i32 to vector<1x128xi32>
      %23 = arith.cmpi slt, %21, %22 : vector<1x128xi32>
      %24 = arith.extui %23 : vector<1x128xi1> to vector<1x128xi32>
      %25 = arith.sitofp %24 : vector<1x128xi32> to vector<1x128xf32>
      %26 = vector.broadcast %25 : vector<1x128xf32> to vector<128x128xf32>
      %27 = arith.mulf %20, %26 : vector<128x128xf32>
      %cst_16 = arith.constant dense<0.000000e+00> : vector<128xf32>
      %28 = vector.multi_reduction <add>, %27, %cst_16 [1] : vector<128x128xf32> to vector<128xf32>
      %29 = vector.shape_cast %28 : vector<128xf32> to vector<128x1xf32>
      %cst_17 = arith.constant 3.125000e-02 : f32
      %30 = vector.broadcast %cst_17 : f32 to vector<128x1xf32>
      %31 = arith.mulf %29, %30 : vector<128x1xf32>
      %32 = vector.broadcast %31 : vector<128x1xf32> to vector<128x128xf32>
      %33 = arith.subf %20, %32 : vector<128x128xf32>
      %34 = vector.broadcast %25 : vector<1x128xf32> to vector<128x128xf32>
      %35 = arith.mulf %33, %34 : vector<128x128xf32>
      %36 = arith.mulf %35, %35 : vector<128x128xf32>
      %cst_18 = arith.constant dense<0.000000e+00> : vector<128xf32>
      %37 = vector.multi_reduction <add>, %36, %cst_18 [1] : vector<128x128xf32> to vector<128xf32>
      %38 = vector.shape_cast %37 : vector<128xf32> to vector<128x1xf32>
      %cst_19 = arith.constant 3.125000e-02 : f32
      %39 = vector.broadcast %cst_19 : f32 to vector<128x1xf32>
      %40 = arith.mulf %38, %39 : vector<128x1xf32>
      %cst_20 = arith.constant 9.99999974E-6 : f32
      %41 = vector.broadcast %cst_20 : f32 to vector<128x1xf32>
      %42 = arith.addf %40, %41 : vector<128x1xf32>
      %43 = math.rsqrt %42 : vector<128x1xf32>
      %44 = vector.broadcast %43 : vector<128x1xf32> to vector<128x128xf32>
      %45 = arith.mulf %35, %44 : vector<128x128xf32>
      %c0_21 = arith.constant 0 : index
      %c0_22 = arith.constant 0 : index
      %46 = vector.load %arg7[%c0_21, %c0_22] : memref<1x128xf32, #tpu.memory_space<vmem>>, vector<1x128xf32>
      %47 = vector.broadcast %46 : vector<1x128xf32> to vector<128x128xf32>
      %48 = arith.mulf %45, %47 : vector<128x128xf32>
      %c0_23 = arith.constant 0 : index
      %c0_24 = arith.constant 0 : index
      %49 = vector.load %arg8[%c0_23, %c0_24] : memref<1x128xf32, #tpu.memory_space<vmem>>, vector<1x128xf32>
      %50 = vector.broadcast %49 : vector<1x128xf32> to vector<128x128xf32>
      %51 = arith.addf %48, %50 : vector<128x128xf32>
      %cst_25 = arith.constant 5.000000e-01 : f32
      %52 = vector.broadcast %cst_25 : f32 to vector<128x128xf32>
      %53 = arith.mulf %52, %51 : vector<128x128xf32>
      %cst_26 = arith.constant 0.707106769 : f32
      %54 = vector.broadcast %cst_26 : f32 to vector<128x128xf32>
      %55 = arith.mulf %51, %54 : vector<128x128xf32>
      %56 = math.erf %55 : vector<128x128xf32>
      %cst_27 = arith.constant 1.000000e+00 : f32
      %57 = vector.broadcast %cst_27 : f32 to vector<128x128xf32>
      %58 = arith.addf %57, %56 : vector<128x128xf32>
      %59 = arith.mulf %53, %58 : vector<128x128xf32>
      %c0_28 = arith.constant 0 : index
      %c0_29 = arith.constant 0 : index
      %60 = vector.load %arg4[%c0_28, %c0_29] : memref<128x128xf32, #tpu.memory_space<vmem>>, vector<128x128xf32>
      %61 = arith.addf %60, %59 : vector<128x128xf32>
      %c0_30 = arith.constant 0 : index
      %c0_31 = arith.constant 0 : index
      %62 = vector.load %arg9[%c0_30, %c0_31] : memref<128x128xf32, #tpu.memory_space<vmem>>, vector<128x128xf32>
      tpu.vector_store %arg9[%c0_30, %c0_31], %61 {strides = array<i32>} : memref<128x128xf32, #tpu.memory_space<vmem>>, vector<128x128xf32>,
      %63 = arith.truncf %61 : vector<128x128xf32> to vector<128x128xbf16>
      %c0_32 = arith.constant 0 : index
      %c0_33 = arith.constant 0 : index
      %64 = vector.load %arg10[%c0_32, %c0_33] : memref<128x128xbf16, #tpu.memory_space<vmem>>, vector<128x128xbf16>
      tpu.vector_store %arg10[%c0_32, %c0_33], %63 {strides = array<i32>} : memref<128x128xbf16, #tpu.memory_space<vmem>>, vector<128x128xbf16>,
    } else {
    }
    return
  }
  func.func @transform_0(%arg0: i32, %arg1: i32) -> (i32, i32) {
    %c0_i32 = arith.constant 0 : i32
    return %arg0, %arg1 : i32, i32
  }
  func.func @transform_1(%arg0: i32, %arg1: i32) -> (i32, i32) {
    %c0_i32 = arith.constant 0 : i32
    %c0_i32_0 = arith.constant 0 : i32
    %c0_i32_1 = arith.constant 0 : i32
    return %c0_i32, %c0_i32_0 : i32, i32
  }
  func.func @transform_2(%arg0: i32, %arg1: i32) -> (i32, i32) {
    %c0_i32 = arith.constant 0 : i32
    %c0_i32_0 = arith.constant 0 : i32
    return %arg0, %c0_i32 : i32, i32
  }
  func.func @transform_3(%arg0: i32, %arg1: i32) -> (i32, i32) {
    %c0_i32 = arith.constant 0 : i32
    %c0_i32_0 = arith.constant 0 : i32
    %c0_i32_1 = arith.constant 0 : i32
    return %c0_i32, %c0_i32_0 : i32, i32
  }
  func.func @transform_4(%arg0: i32, %arg1: i32) -> (i32, i32) {
    %c0_i32 = arith.constant 0 : i32
    %c0_i32_0 = arith.constant 0 : i32
    %c0_i32_1 = arith.constant 0 : i32
    return %c0_i32, %c0_i32_0 : i32, i32
  }
  func.func @transform_5(%arg0: i32, %arg1: i32) -> (i32, i32) {
    %c0_i32 = arith.constant 0 : i32
    %c0_i32_0 = arith.constant 0 : i32
    %c0_i32_1 = arith.constant 0 : i32
    return %c0_i32, %c0_i32_0 : i32, i32
  }
  func.func @transform_6(%arg0: i32, %arg1: i32) -> (i32, i32) {
    %c0_i32 = arith.constant 0 : i32
    %c0_i32_0 = arith.constant 0 : i32
    %c0_i32_1 = arith.constant 0 : i32
    return %c0_i32, %c0_i32_0 : i32, i32
  }
  func.func @transform_7(%arg0: i32, %arg1: i32) -> (i32, i32) {
    %c0_i32 = arith.constant 0 : i32
    %c0_i32_0 = arith.constant 0 : i32
    return %arg0, %c0_i32 : i32, i32
  }
  func.func @transform_8(%arg0: i32, %arg1: i32) -> (i32, i32) {
    %c0_i32 = arith.constant 0 : i32
    %c0_i32_0 = arith.constant 0 : i32
    return %arg0, %c0_i32 : i32, i32
  }
}

module attributes {stable_mosaic.version = 11 : i64} {
  func.func @gcn_layer_kernel(%arg0: i32, %arg1: i32, %arg2: memref<128x128xbf16, #tpu.memory_space<vmem>>, %arg3: memref<128x128xbf16, #tpu.memory_space<vmem>>, %arg4: memref<128x128xf32, #tpu.memory_space<vmem>>, %arg5: memref<128x128xf32, #tpu.memory_space<vmem>>, %arg6: memref<1x128xf32, #tpu.memory_space<vmem>>, %arg7: memref<1x128xf32, #tpu.memory_space<vmem>>, %arg8: memref<1x128xf32, #tpu.memory_space<vmem>>, %arg9: memref<128x128xf32, #tpu.memory_space<vmem>>, %arg10: memref<128x128xbf16, #tpu.memory_space<vmem>>, %arg11: memref<128x128xf32, #tpu.memory_space<vmem>>) attributes {dimension_semantics = [#tpu.dimension_semantics<parallel>, #tpu.dimension_semantics<arbitrary>], iteration_bounds = array<i64: 1, 1>, scalar_prefetch = 0 : i64, scratch_operands = 1 : i64, tpu.core_type = #tpu.core_type<tc>, window_params = [{transform_indices = @transform_0, window_bounds = array<i64: 128, 128>}, {pipeline_mode = #tpu.pipeline_mode<synchronous>, transform_indices = @transform_1, window_bounds = array<i64: 128, 128>}, {transform_indices = @transform_2, window_bounds = array<i64: 128, 128>}, {pipeline_mode = #tpu.pipeline_mode<synchronous>, transform_indices = @transform_3, window_bounds = array<i64: 128, 128>}, {pipeline_mode = #tpu.pipeline_mode<synchronous>, transform_indices = @transform_4, window_bounds = array<i64: 1, 128>}, {pipeline_mode = #tpu.pipeline_mode<synchronous>, transform_indices = @transform_5, window_bounds = array<i64: 1, 128>}, {pipeline_mode = #tpu.pipeline_mode<synchronous>, transform_indices = @transform_6, window_bounds = array<i64: 1, 128>}, {transform_indices = @transform_7, window_bounds = array<i64: 128, 128>}, {transform_indices = @transform_8, window_bounds = array<i64: 128, 128>}]} {
    %c0_i32 = arith.constant 0 : i32
    %0 = arith.cmpi eq, %arg1, %c0_i32 : i32
    %1 = arith.extui %0 : i1 to i32
    %c0_i32_0 = arith.constant 0 : i32
    %2 = arith.cmpi ne, %1, %c0_i32_0 : i32
    scf.if %2 {
      %cst_9 = arith.constant 0.000000e+00 : f32
      %15 = vector.broadcast %cst_9 : f32 to vector<128x128xf32>
      %c0_10 = arith.constant 0 : index
      %c0_11 = arith.constant 0 : index
      %16 = vector.load %arg11[%c0_10, %c0_11] : memref<128x128xf32, #tpu.memory_space<vmem>>, vector<128x128xf32>
      tpu.vector_store %arg11[%c0_10, %c0_11], %15 {strides = array<i32>} : memref<128x128xf32, #tpu.memory_space<vmem>>, vector<128x128xf32>,
    } else {
    }
    %c128_i32 = arith.constant 128 : i32
    %3 = arith.muli %arg1, %c128_i32 : i32
    %4 = tpu.assume_multiple %3, 128 : i32
    %5 = arith.index_cast %4 : i32 to index
    %c0 = arith.constant 0 : index
    %6 = vector.load %arg3[%5, %c0] : memref<128x128xbf16, #tpu.memory_space<vmem>>, vector<128x128xbf16>
    %c0_1 = arith.constant 0 : index
    %c0_2 = arith.constant 0 : index
    %7 = vector.load %arg11[%c0_1, %c0_2] : memref<128x128xf32, #tpu.memory_space<vmem>>, vector<128x128xf32>
    %c0_3 = arith.constant 0 : index
    %c0_4 = arith.constant 0 : index
    %8 = vector.load %arg2[%c0_3, %c0_4] : memref<128x128xbf16, #tpu.memory_space<vmem>>, vector<128x128xbf16>
    %cst = arith.constant dense<0.000000e+00> : vector<128x128xf32>
    %9 = tpu.matmul %8, %6, %cst {dimension_numbers = #tpu.dot_dimension_numbers<[1], [0], [0], [1], [0, 0, 1, 1], [], []>} : vector<128x128xbf16>, vector<128x128xbf16>, vector<128x128xf32> -> vector<128x128xf32>
    %10 = arith.addf %7, %9 : vector<128x128xf32>
    %c0_5 = arith.constant 0 : index
    %c0_6 = arith.constant 0 : index
    %11 = vector.load %arg11[%c0_5, %c0_6] : memref<128x128xf32, #tpu.memory_space<vmem>>, vector<128x128xf32>
    tpu.vector_store %arg11[%c0_5, %c0_6], %10 {strides = array<i32>} : memref<128x128xf32, #tpu.memory_space<vmem>>, vector<128x128xf32>,
    %c0_i32_7 = arith.constant 0 : i32
    %12 = arith.cmpi eq, %arg1, %c0_i32_7 : i32
    %13 = arith.extui %12 : i1 to i32
    %c0_i32_8 = arith.constant 0 : i32
    %14 = arith.cmpi ne, %13, %c0_i32_8 : i32
    scf.if %14 {
      %c0_9 = arith.constant 0 : index
      %c0_10 = arith.constant 0 : index
      %15 = vector.load %arg11[%c0_9, %c0_10] : memref<128x128xf32, #tpu.memory_space<vmem>>, vector<128x128xf32>
      %c0_11 = arith.constant 0 : index
      %c0_12 = arith.constant 0 : index
      %16 = vector.load %arg5[%c0_11, %c0_12] : memref<128x128xf32, #tpu.memory_space<vmem>>, vector<128x128xf32>
      %cst_13 = arith.constant dense<0.000000e+00> : vector<128x128xf32>
      %17 = tpu.matmul %15, %16, %cst_13 {dimension_numbers = #tpu.dot_dimension_numbers<[1], [0], [0], [1], [0, 0, 1, 1], [], []>} : vector<128x128xf32>, vector<128x128xf32>, vector<128x128xf32> -> vector<128x128xf32>
      %c0_14 = arith.constant 0 : index
      %c0_15 = arith.constant 0 : index
      %18 = vector.load %arg6[%c0_14, %c0_15] : memref<1x128xf32, #tpu.memory_space<vmem>>, vector<1x128xf32>
      %19 = vector.broadcast %18 : vector<1x128xf32> to vector<128x128xf32>
      %20 = arith.addf %17, %19 : vector<128x128xf32>
      %21 = tpu.iota {dimensions = array<i32: 1>} : vector<1x128xi32>
      %c32_i32 = arith.constant 32 : i32
      %22 = vector.broadcast %c32_i32 : i32 to vector<1x128xi32>
      %23 = arith.cmpi slt, %21, %22 : vector<1x128xi32>
      %24 = arith.extui %23 : vector<1x128xi1> to vector<1x128xi32>
      %25 = arith.sitofp %24 : vector<1x128xi32> to vector<1x128xf32>
      %26 = vector.broadcast %25 : vector<1x128xf32> to vector<128x128xf32>
      %27 = arith.mulf %20, %26 : vector<128x128xf32>
      %cst_16 = arith.constant dense<0.000000e+00> : vector<128xf32>
      %28 = vector.multi_reduction <add>, %27, %cst_16 [1] : vector<128x128xf32> to vector<128xf32>
      %29 = vector.shape_cast %28 : vector<128xf32> to vector<128x1xf32>
      %cst_17 = arith.constant 3.125000e-02 : f32
      %30 = vector.broadcast %cst_17 : f32 to vector<128x1xf32>
      %31 = arith.mulf %29, %30 : vector<128x1xf32>
      %32 = vector.broadcast %31 : vector<128x1xf32> to vector<128x128xf32>
      %33 = arith.subf %20, %32 : vector<128x128xf32>
      %34 = vector.broadcast %25 : vector<1x128xf32> to vector<128x128xf32>
      %35 = arith.mulf %33, %34 : vector<128x128xf32>
      %36 = arith.mulf %35, %35 : vector<128x128xf32>
      %cst_18 = arith.constant dense<0.000000e+00> : vector<128xf32>
      %37 = vector.multi_reduction <add>, %36, %cst_18 [1] : vector<128x128xf32> to vector<128xf32>
      %38 = vector.shape_cast %37 : vector<128xf32> to vector<128x1xf32>
      %cst_19 = arith.constant 3.125000e-02 : f32
      %39 = vector.broadcast %cst_19 : f32 to vector<128x1xf32>
      %40 = arith.mulf %38, %39 : vector<128x1xf32>
      %cst_20 = arith.constant 9.99999974E-6 : f32
      %41 = vector.broadcast %cst_20 : f32 to vector<128x1xf32>
      %42 = arith.addf %40, %41 : vector<128x1xf32>
      %43 = math.rsqrt %42 : vector<128x1xf32>
      %44 = vector.broadcast %43 : vector<128x1xf32> to vector<128x128xf32>
      %45 = arith.mulf %35, %44 : vector<128x128xf32>
      %c0_21 = arith.constant 0 : index
      %c0_22 = arith.constant 0 : index
      %46 = vector.load %arg7[%c0_21, %c0_22] : memref<1x128xf32, #tpu.memory_space<vmem>>, vector<1x128xf32>
      %47 = vector.broadcast %46 : vector<1x128xf32> to vector<128x128xf32>
      %48 = arith.mulf %45, %47 : vector<128x128xf32>
      %c0_23 = arith.constant 0 : index
      %c0_24 = arith.constant 0 : index
      %49 = vector.load %arg8[%c0_23, %c0_24] : memref<1x128xf32, #tpu.memory_space<vmem>>, vector<1x128xf32>
      %50 = vector.broadcast %49 : vector<1x128xf32> to vector<128x128xf32>
      %51 = arith.addf %48, %50 : vector<128x128xf32>
      %cst_25 = arith.constant 5.000000e-01 : f32
      %52 = vector.broadcast %cst_25 : f32 to vector<128x128xf32>
      %53 = arith.mulf %52, %51 : vector<128x128xf32>
      %cst_26 = arith.constant 0.707106769 : f32
      %54 = vector.broadcast %cst_26 : f32 to vector<128x128xf32>
      %55 = arith.mulf %51, %54 : vector<128x128xf32>
      %56 = math.erf %55 : vector<128x128xf32>
      %cst_27 = arith.constant 1.000000e+00 : f32
      %57 = vector.broadcast %cst_27 : f32 to vector<128x128xf32>
      %58 = arith.addf %57, %56 : vector<128x128xf32>
      %59 = arith.mulf %53, %58 : vector<128x128xf32>
      %c0_28 = arith.constant 0 : index
      %c0_29 = arith.constant 0 : index
      %60 = vector.load %arg4[%c0_28, %c0_29] : memref<128x128xf32, #tpu.memory_space<vmem>>, vector<128x128xf32>
      %61 = arith.addf %60, %59 : vector<128x128xf32>
      %c0_30 = arith.constant 0 : index
      %c0_31 = arith.constant 0 : index
      %62 = vector.load %arg9[%c0_30, %c0_31] : memref<128x128xf32, #tpu.memory_space<vmem>>, vector<128x128xf32>
      tpu.vector_store %arg9[%c0_30, %c0_31], %61 {strides = array<i32>} : memref<128x128xf32, #tpu.memory_space<vmem>>, vector<128x128xf32>,
      %63 = arith.truncf %61 : vector<128x128xf32> to vector<128x128xbf16>
      %c0_32 = arith.constant 0 : index
      %c0_33 = arith.constant 0 : index
      %64 = vector.load %arg10[%c0_32, %c0_33] : memref<128x128xbf16, #tpu.memory_space<vmem>>, vector<128x128xbf16>
      tpu.vector_store %arg10[%c0_32, %c0_33], %63 {strides = array<i32>} : memref<128x128xbf16, #tpu.memory_space<vmem>>, vector<128x128xbf16>,
    } else {
    }
    return
  }
  func.func @transform_0(%arg0: i32, %arg1: i32) -> (i32, i32) {
    %c0_i32 = arith.constant 0 : i32
    return %arg0, %arg1 : i32, i32
  }
  func.func @transform_1(%arg0: i32, %arg1: i32) -> (i32, i32) {
    %c0_i32 = arith.constant 0 : i32
    %c0_i32_0 = arith.constant 0 : i32
    %c0_i32_1 = arith.constant 0 : i32
    return %c0_i32, %c0_i32_0 : i32, i32
  }
  func.func @transform_2(%arg0: i32, %arg1: i32) -> (i32, i32) {
    %c0_i32 = arith.constant 0 : i32
    %c0_i32_0 = arith.constant 0 : i32
    return %arg0, %c0_i32 : i32, i32
  }
  func.func @transform_3(%arg0: i32, %arg1: i32) -> (i32, i32) {
    %c0_i32 = arith.constant 0 : i32
    %c0_i32_0 = arith.constant 0 : i32
    %c0_i32_1 = arith.constant 0 : i32
    return %c0_i32, %c0_i32_0 : i32, i32
  }
  func.func @transform_4(%arg0: i32, %arg1: i32) -> (i32, i32) {
    %c0_i32 = arith.constant 0 : i32
    %c0_i32_0 = arith.constant 0 : i32
    %c0_i32_1 = arith.constant 0 : i32
    return %c0_i32, %c0_i32_0 : i32, i32
  }
  func.func @transform_5(%arg0: i32, %arg1: i32) -> (i32, i32) {
    %c0_i32 = arith.constant 0 : i32
    %c0_i32_0 = arith.constant 0 : i32
    %c0_i32_1 = arith.constant 0 : i32
    return %c0_i32, %c0_i32_0 : i32, i32
  }
  func.func @transform_6(%arg0: i32, %arg1: i32) -> (i32, i32) {
    %c0_i32 = arith.constant 0 : i32
    %c0_i32_0 = arith.constant 0 : i32
    %c0_i32_1 = arith.constant 0 : i32
    return %c0_i32, %c0_i32_0 : i32, i32
  }
  func.func @transform_7(%arg0: i32, %arg1: i32) -> (i32, i32) {
    %c0_i32 = arith.constant 0 : i32
    %c0_i32_0 = arith.constant 0 : i32
    return %arg0, %c0_i32 : i32, i32
  }
  func.func @transform_8(%arg0: i32, %arg1: i32) -> (i32, i32) {
    %c0_i32 = arith.constant 0 : i32
    %c0_i32_0 = arith.constant 0 : i32
    return %arg0, %c0_i32 : i32, i32
  }
}

module attributes {stable_mosaic.version = 11 : i64} {
  func.func @pool_kernel(%arg0: i32, %arg1: memref<8x128xf32, #tpu.memory_space<vmem>>, %arg2: memref<128x128xf32, #tpu.memory_space<vmem>>, %arg3: memref<8x128xf32, #tpu.memory_space<vmem>>) attributes {dimension_semantics = [#tpu.dimension_semantics<arbitrary>], iteration_bounds = array<i64: 1>, scalar_prefetch = 0 : i64, scratch_operands = 0 : i64, tpu.core_type = #tpu.core_type<tc>, window_params = [{transform_indices = @transform_0, window_bounds = array<i64: 8, 128>}, {transform_indices = @transform_1, window_bounds = array<i64: 128, 128>}, {pipeline_mode = #tpu.pipeline_mode<synchronous>, transform_indices = @transform_2, window_bounds = array<i64: 8, 128>}]} {
    %c0_i32 = arith.constant 0 : i32
    %0 = arith.cmpi eq, %arg0, %c0_i32 : i32
    %1 = arith.extui %0 : i1 to i32
    %c0_i32_0 = arith.constant 0 : i32
    %2 = arith.cmpi ne, %1, %c0_i32_0 : i32
    scf.if %2 {
      %cst_8 = arith.constant 0.000000e+00 : f32
      %9 = vector.broadcast %cst_8 : f32 to vector<8x128xf32>
      %c0_9 = arith.constant 0 : index
      %c0_10 = arith.constant 0 : index
      %10 = vector.load %arg3[%c0_9, %c0_10] : memref<8x128xf32, #tpu.memory_space<vmem>>, vector<8x128xf32>
      tpu.vector_store %arg3[%c0_9, %c0_10], %9 {strides = array<i32>} : memref<8x128xf32, #tpu.memory_space<vmem>>, vector<8x128xf32>,
    } else {
    }
    %c0 = arith.constant 0 : index
    %c0_1 = arith.constant 0 : index
    %3 = vector.load %arg3[%c0, %c0_1] : memref<8x128xf32, #tpu.memory_space<vmem>>, vector<8x128xf32>
    %c0_2 = arith.constant 0 : index
    %c0_3 = arith.constant 0 : index
    %4 = vector.load %arg1[%c0_2, %c0_3] : memref<8x128xf32, #tpu.memory_space<vmem>>, vector<8x128xf32>
    %c0_4 = arith.constant 0 : index
    %c0_5 = arith.constant 0 : index
    %5 = vector.load %arg2[%c0_4, %c0_5] : memref<128x128xf32, #tpu.memory_space<vmem>>, vector<128x128xf32>
    %cst = arith.constant dense<0.000000e+00> : vector<8x128xf32>
    %6 = tpu.matmul %4, %5, %cst {dimension_numbers = #tpu.dot_dimension_numbers<[1], [0], [0], [1], [0, 0, 1, 1], [], []>} : vector<8x128xf32>, vector<128x128xf32>, vector<8x128xf32> -> vector<8x128xf32>
    %7 = arith.addf %3, %6 : vector<8x128xf32>
    %c0_6 = arith.constant 0 : index
    %c0_7 = arith.constant 0 : index
    %8 = vector.load %arg3[%c0_6, %c0_7] : memref<8x128xf32, #tpu.memory_space<vmem>>, vector<8x128xf32>
    tpu.vector_store %arg3[%c0_6, %c0_7], %7 {strides = array<i32>} : memref<8x128xf32, #tpu.memory_space<vmem>>, vector<8x128xf32>,
    return
  }
  func.func @transform_0(%arg0: i32) -> (i32, i32) {
    %c0_i32 = arith.constant 0 : i32
    %c0_i32_0 = arith.constant 0 : i32
    return %c0_i32, %arg0 : i32, i32
  }
  func.func @transform_1(%arg0: i32) -> (i32, i32) {
    %c0_i32 = arith.constant 0 : i32
    %c0_i32_0 = arith.constant 0 : i32
    return %arg0, %c0_i32 : i32, i32
  }
  func.func @transform_2(%arg0: i32) -> (i32, i32) {
    %c0_i32 = arith.constant 0 : i32
    %c0_i32_0 = arith.constant 0 : i32
    %c0_i32_1 = arith.constant 0 : i32
    return %c0_i32, %c0_i32_0 : i32, i32
  }
}

</mosaic_0001>

<bundles_post_ra>
// kernel: graph_embedding_forward.4
= control target key start
LH: loop header
LB: loop body
LE: loop exit
PB: predicated region body
PF: predicated region fallthrough
CT: control target
= control target key end

     0   :  { %vm85_vm0 = vcmask 64512   ;;  %s521_s1 = inlined_call_operand.vmem [shape: f32[8,128], index: 1, kind: input, shape index: {}]   ;;  %s522_s0 = inlined_call_operand.vmem [shape: f32[128,8], index: 0, kind: input, shape index: {}]   ;;  %s523_s2 = inlined_call_operand.vmem [shape: f32[1,128], index: 2, kind: input, shape index: {}]   ;;  %s524_s3 = inlined_call_operand.vmem [shape: f32[128,128], index: 3, kind: output, shape index: {0}]   ;;  %s525_s4 = inlined_call_operand.vmem [shape: bf16[128,128], index: 4, kind: output, shape index: {1}]  }
   0x1   :  { %v80_v0 = vld [vmem:[%s521_s1] sm:$0xff]  ;;  %v17_v7 = vld [vmem:[%s522_s0 + $0x8] sm:$0xff]  ;;  %v18_v17 = vld [vmem:[%s522_s0 + $0x10] sm:$0xff] }
   0x2   :  { %v16_v1 = vld [vmem:[%s522_s0] sm:$0xff]  ;;  %149 = vmatpush.msra.mxu0 %v80_v0  ;;  %318 = vmatpush.msra.mxu1 %v80_v0  ;;  %v21_v10 = vld [vmem:[%s522_s0 + $0x28] sm:$0xff]  ;;  %v33_v12 = vadd.f32 1.0, %v17_v7  ;;  %v22_v19 = vld [vmem:[%s522_s0 + $0x30] sm:$0xff]  ;;  %v34_v25 = vadd.f32 1.0, %v18_v17 }
   0x3   :  { %v20_v2 = vld [vmem:[%s522_s0 + $0x20] sm:$0xff]  ;;  %v32_v3 = vadd.f32 1.0, %v16_v1  ;;  %319 = vmatpush.msra.mxu2 %v80_v0  ;;  %320 = vmatpush.msra.mxu3 %v80_v0  ;;  %v25_v11 = vld [vmem:[%s522_s0 + $0x48] sm:$0xff]  ;;  %v37_v14 = vadd.f32 1.0, %v21_v10  ;;  %v26_v22 = vld [vmem:[%s522_s0 + $0x50] sm:$0xff]  ;;  %v38_v29 = vadd.f32 1.0, %v22_v19 }
   0x4   :  { %v36_v4 = vadd.f32 1.0, %v20_v2  ;;  %v24_v5 = vld [vmem:[%s522_s0 + $0x40] sm:$0xff]  ;;  %v29_v13 = vld [vmem:[%s522_s0 + $0x68] sm:$0xff]  ;;  %v41_v15 = vadd.f32 1.0, %v25_v11  ;;  %v30_v26 = vld [vmem:[%s522_s0 + $0x70] sm:$0xff]  ;;  %v42_v32 = vadd.f32 1.0, %v26_v22 }
   0x5   :  { %v28_v6 = vld [vmem:[%s522_s0 + $0x60] sm:$0xff]  ;;  %v40_v8 = vadd.f32 1.0, %v24_v5  ;;  %322 = vlog2.f32 %v32_v3  ;;  %v45_v16 = vadd.f32 1.0, %v29_v13  ;;  %v46_v34 = vadd.f32 1.0, %v30_v26  ;;  %v19_v38 = vld [vmem:[%s522_s0 + $0x18] sm:$0xff] }
   0x6   :  { %v44_v9 = vadd.f32 1.0, %v28_v6  ;;  %324 = vlog2.f32 %v36_v4  ;;  %v23_v40 = vld [vmem:[%s522_s0 + $0x38] sm:$0xff]  ;;  %v35_v44 = vadd.f32 1.0, %v19_v38  ;;  %v321_v1 = vld [vmem:[%s523_s2] ss:$0 sm:$0xff] }
   0x7   :  { %326 = vlog2.f32 %v40_v8  ;;  %v27_v42 = vld [vmem:[%s522_s0 + $0x58] sm:$0xff]  ;;  %v39_v46 = vadd.f32 1.0, %v23_v40 }
   0x8   :  { %328 = vlog2.f32 %v44_v9  ;;  %v31_v45 = vld [vmem:[%s522_s0 + $0x78] sm:$0xff]  ;;  %v43_v48 = vadd.f32 1.0, %v27_v42 }
   0x9   :  { %330 = vlog2.f32 %v33_v12  ;;  %v47_v50 = vadd.f32 1.0, %v31_v45 }
   0xa   :  { %332 = vlog2.f32 %v37_v14 }
   0xb   :  { %v323_v18 = vpop.eup %322  ;;  %334 = vlog2.f32 %v41_v15 }
   0xc   :  { %v325_v20 = vpop.eup %324  ;;  %v49_v21 = vmul.f32 0.6931472, %v323_v18  ;;  %336 = vlog2.f32 %v45_v16 }
   0xd   :  { %v327_v23 = vpop.eup %326  ;;  %v57_v24 = vmul.f32 0.6931472, %v325_v20  ;;  %338 = vlog2.f32 %v34_v25 }
   0xe   :  { %v329_v27 = vpop.eup %328  ;;  %255 = vmatmul.msk.f32.vlgmr.msra.gmra.mxu0 %vm85_vm0, %v49_v21  ;;  %v65_v28 = vmul.f32 0.6931472, %v327_v23  ;;  %340 = vlog2.f32 %v38_v29 }
   0xf   :  { %v331_v30 = vpop.eup %330  ;;  %259 = vmatmul.msk.f32.vlgmr.msra.gmra.mxu1 %vm85_vm0, %v57_v24  ;;  %v73_v31 = vmul.f32 0.6931472, %v329_v27  ;;  %342 = vlog2.f32 %v42_v32 }
  0x10   :  { %v333_v33 = vpop.eup %332  ;;  %263 = vmatmul.msk.f32.vlgmr.msra.gmra.mxu2 %vm85_vm0, %v65_v28  ;;  %v51_v37 = vmul.f32 0.6931472, %v331_v30  ;;  %344 = vlog2.f32 %v46_v34 }
  0x11   :  { %v335_v35 = vpop.eup %334  ;;  %267 = vmatmul.msk.f32.vlgmr.msra.gmra.mxu3 %vm85_vm0, %v73_v31  ;;  %v59_v39 = vmul.f32 0.6931472, %v333_v33  ;;  %346 = vlog2.f32 %v35_v44 }
  0x12   :  { %v337_v36 = vpop.eup %336  ;;  %v67_v41 = vmul.f32 0.6931472, %v335_v35  ;;  %348 = vlog2.f32 %v39_v46 }
  0x13   :  { %v75_v43 = vmul.f32 0.6931472, %v337_v36  ;;  %v339_v47 = vpop.eup %338  ;;  %350 = vlog2.f32 %v43_v48 }
  0x14   :  { %v341_v49 = vpop.eup %340  ;;  %v53_v53 = vmul.f32 0.6931472, %v339_v47  ;;  %352 = vlog2.f32 %v47_v50 }
  0x15   :  { %v343_v51 = vpop.eup %342  ;;  %v61_v54 = vmul.f32 0.6931472, %v341_v49 }
  0x16   :  { %256 = vmatmul.msk.f32.gmra.mxu0 %vm85_vm0, %v51_v37  ;;  %v345_v52 = vpop.eup %344  ;;  %v69_v55 = vmul.f32 0.6931472, %v343_v51 }
  0x17   :  { %260 = vmatmul.msk.f32.gmra.mxu1 %vm85_vm0, %v59_v39  ;;  %v77_v56 = vmul.f32 0.6931472, %v345_v52  ;;  %v347_v57 = vpop.eup %346 }
  0x18   :  { %264 = vmatmul.msk.f32.gmra.mxu2 %vm85_vm0, %v67_v41  ;;  %v349_v58 = vpop.eup %348  ;;  %v55_v61 = vmul.f32 0.6931472, %v347_v57 }
  0x19   :  { %268 = vmatmul.msk.f32.gmra.mxu3 %vm85_vm0, %v75_v43  ;;  %v351_v59 = vpop.eup %350  ;;  %v63_v62 = vmul.f32 0.6931472, %v349_v58 }
  0x1a   :  { %v353_v60 = vpop.eup %352  ;;  %v71_v63 = vmul.f32 0.6931472, %v351_v59 }
  0x1b   :  { %v79_v0 = vmul.f32 0.6931472, %v353_v60 }
  0x1e   :  { %257 = vmatmul.msk.f32.gmra.mxu0 %vm85_vm0, %v53_v53 }
  0x1f   :  { %261 = vmatmul.msk.f32.gmra.mxu1 %vm85_vm0, %v61_v54 }
  0x20   :  { %265 = vmatmul.msk.f32.gmra.mxu2 %vm85_vm0, %v69_v55 }
  0x21   :  { %269 = vmatmul.msk.f32.gmra.mxu3 %vm85_vm0, %v77_v56 }
  0x26   :  { %258 = vmatmul.msk.f32.gmra.mxu0 %vm85_vm0, %v55_v61 }
  0x27   :  { %262 = vmatmul.msk.f32.gmra.mxu1 %vm85_vm0, %v63_v62 }
  0x28   :  { %266 = vmatmul.msk.f32.gmra.mxu2 %vm85_vm0, %v71_v63 }
  0x29   :  { %270 = vmatmul.msk.f32.gmra.mxu3 %vm85_vm0, %v79_v0 }
  0x8b   :  { %v151_v2 = vpop.f32.mrf.mxu0 }
  0x8c   :  { %v152_v3 = vadd.f32 %v321_v1, %v151_v2  ;;  %v163_v4 = vpop.f32.mrf.mxu1 }
  0x8d   :  { %v164_v5 = vadd.f32 %v321_v1, %v163_v4 }
  0x8e   :  { %199 = vst [vmem:[%s524_s3] sm:$0xff] %v152_v3 }
  0x8f   :  { %203 = vst [vmem:[%s524_s3 + $0x20] sm:$0xff] %v164_v5 }
  0x93   :  { %v175_v6 = vpop.f32.mrf.mxu2  ;;  %v154_v7 = vpop.f32.mrf.mxu0 }
  0x94   :  { %v176_v8 = vadd.f32 %v321_v1, %v175_v6  ;;  %v187_v9 = vpop.f32.mrf.mxu3  ;;  %v155_v10 = vadd.f32 %v321_v1, %v154_v7  ;;  %v166_v11 = vpop.f32.mrf.mxu1 }
  0x95   :  { %v188_v12 = vadd.f32 %v321_v1, %v187_v9  ;;  %v167_v13 = vadd.f32 %v321_v1, %v166_v11 }
  0x96   :  { %207 = vst [vmem:[%s524_s3 + $0x40] sm:$0xff] %v176_v8  ;;  %v274_v14 = vpack.c.bf16 %v155_v10, %v152_v3 }
  0x97   :  { %211 = vst [vmem:[%s524_s3 + $0x60] sm:$0xff] %v188_v12  ;;  %v284_v15 = vpack.c.bf16 %v167_v13, %v164_v5 }
  0x98   :  { %200 = vst [vmem:[%s524_s3 + $0x8] sm:$0xff] %v155_v10 }
  0x99   :  { %275 = vst [vmem:[%s525_s4] sm:$0xff] %v274_v14  }
  0x9a   :  { %204 = vst [vmem:[%s524_s3 + $0x28] sm:$0xff] %v167_v13 }
  0x9b   :  { %312 = vst [vmem:[%s525_s4 + $0x10] sm:$0xff] %v284_v15   ;;  %v178_v16 = vpop.f32.mrf.mxu2  ;;  %v157_v17 = vpop.f32.mrf.mxu0 }
  0x9c   :  { %v179_v18 = vadd.f32 %v321_v1, %v178_v16  ;;  %v190_v19 = vpop.f32.mrf.mxu3  ;;  %v169_v20 = vpop.f32.mrf.mxu1  ;;  %v158_v23 = vadd.f32 %v321_v1, %v157_v17 }
  0x9d   :  { %v191_v21 = vadd.f32 %v321_v1, %v190_v19  ;;  %v170_v25 = vadd.f32 %v321_v1, %v169_v20 }
  0x9e   :  { %208 = vst [vmem:[%s524_s3 + $0x48] sm:$0xff] %v179_v18  ;;  %v294_v22 = vpack.c.bf16 %v179_v18, %v176_v8 }
  0x9f   :  { %212 = vst [vmem:[%s524_s3 + $0x68] sm:$0xff] %v191_v21  ;;  %v304_v24 = vpack.c.bf16 %v191_v21, %v188_v12 }
  0xa0   :  { %314 = vst [vmem:[%s525_s4 + $0x20] sm:$0xff] %v294_v22  }
  0xa1   :  { %316 = vst [vmem:[%s525_s4 + $0x30] sm:$0xff] %v304_v24  }
  0xa2   :  { %201 = vst [vmem:[%s524_s3 + $0x10] sm:$0xff] %v158_v23 }
  0xa3   :  { %205 = vst [vmem:[%s524_s3 + $0x30] sm:$0xff] %v170_v25  ;;  %v181_v26 = vpop.f32.mrf.mxu2  ;;  %v160_v27 = vpop.f32.mrf.mxu0 }
  0xa4   :  { %v182_v28 = vadd.f32 %v321_v1, %v181_v26  ;;  %v193_v29 = vpop.f32.mrf.mxu3  ;;  %v161_v30 = vadd.f32 %v321_v1, %v160_v27  ;;  %v172_v31 = vpop.f32.mrf.mxu1 }
  0xa5   :  { %v194_v32 = vadd.f32 %v321_v1, %v193_v29  ;;  %v173_v33 = vadd.f32 %v321_v1, %v172_v31 }
  0xa6   :  { %209 = vst [vmem:[%s524_s3 + $0x50] sm:$0xff] %v182_v28  ;;  %v279_v34 = vpack.c.bf16 %v161_v30, %v158_v23 }
  0xa7   :  { %213 = vst [vmem:[%s524_s3 + $0x70] sm:$0xff] %v194_v32  ;;  %v289_v35 = vpack.c.bf16 %v173_v33, %v170_v25 }
  0xa8   :  { %202 = vst [vmem:[%s524_s3 + $0x18] sm:$0xff] %v161_v30 }
  0xa9   :  { %311 = vst [vmem:[%s525_s4 + $0x8] sm:$0xff] %v279_v34  }
  0xaa   :  { %206 = vst [vmem:[%s524_s3 + $0x38] sm:$0xff] %v173_v33 }
  0xab   :  { %313 = vst [vmem:[%s525_s4 + $0x18] sm:$0xff] %v289_v35   ;;  %v184_v36 = vpop.f32.mrf.mxu2 }
  0xac   :  { %v185_v37 = vadd.f32 %v321_v1, %v184_v36  ;;  %v196_v38 = vpop.f32.mrf.mxu3 }
  0xad   :  { %v197_v39 = vadd.f32 %v321_v1, %v196_v38 }
  0xae   :  { %210 = vst [vmem:[%s524_s3 + $0x58] sm:$0xff] %v185_v37  ;;  %v299_v40 = vpack.c.bf16 %v185_v37, %v182_v28 }
  0xaf   :  { %214 = vst [vmem:[%s524_s3 + $0x78] sm:$0xff] %v197_v39  ;;  %v309_v41 = vpack.c.bf16 %v197_v39, %v194_v32 }
  0xb0   :  { %315 = vst [vmem:[%s525_s4 + $0x28] sm:$0xff] %v299_v40  }
  0xb1   :  { %317 = vst [vmem:[%s525_s4 + $0x38] sm:$0xff] %v309_v41  }

// kernel: graph_embedding_forward.5
= control target key start
LH: loop header
LB: loop body
LE: loop exit
PB: predicated region body
PF: predicated region fallthrough
CT: control target
= control target key end

     0   :  { %v382_v48 = vlaneseq  ;;  %v1811_v52 = vmov 0.0   ;;  %s3037_s1 = inlined_call_operand.vmem [shape: bf16[128,128], index: 1, kind: input, shape index: {}]   ;;  %s3038_s0 = inlined_call_operand.vmem [shape: bf16[128,128], index: 0, kind: input, shape index: {}]   ;;  %s3039_s3 = inlined_call_operand.vmem [shape: f32[128,128], index: 3, kind: input, shape index: {}]   ;;  %s3040_s4 = inlined_call_operand.vmem [shape: f32[1,128], index: 4, kind: input, shape index: {}]   ;;  %s3041_s5 = inlined_call_operand.vmem [shape: f32[1,128], index: 5, kind: input, shape index: {}]   ;;  %s3042_s6 = inlined_call_operand.vmem [shape: f32[1,128], index: 6, kind: input, shape index: {}]   ;;  %s3043_s2 = inlined_call_operand.vmem [shape: f32[128,128], index: 2, kind: input, shape index: {}]   ;;  %s3044_s7 = inlined_call_operand.vmem [shape: f32[128,128], index: 7, kind: output, shape index: {0}]   ;;  %s3045_s8 = inlined_call_operand.vmem [shape: bf16[128,128], index: 8, kind: output, shape index: {1}]  }
   0x1   :  { %v1661_v0 = vld [vmem:[%s3037_s1 + $0x38] sm:$0xff]  ;;  %v1660_v1 = vld [vmem:[%s3037_s1 + $0x30] sm:$0xff]  ;;  %v1659_v2 = vld [vmem:[%s3037_s1 + $0x28] sm:$0xff] }
   0x2   :  { %197 = vmatpush.bf16.msra.mxu0 %v1661_v0  ;;  %1717 = vmatpush.bf16.msra.mxu2 %v1661_v0  ;;  %v1658_v3 = vld [vmem:[%s3037_s1 + $0x20] sm:$0xff]  ;;  %v1657_v4 = vld [vmem:[%s3037_s1 + $0x18] sm:$0xff]  ;;  %v1656_v5 = vld [vmem:[%s3037_s1 + $0x10] sm:$0xff]  ;;  %v383_v49 = vand.u32 127, %v382_v48 }
   0x3   :  { %v1655_v6 = vld [vmem:[%s3037_s1 + $0x8] sm:$0xff]  ;;  %v1654_v7 = vld [vmem:[%s3037_s1] sm:$0xff]  ;;  %v312_v12 = vld [vmem:[%s3039_s3 + $0x78] sm:$0xff] }
   0x4   :  { %v1662_v8 = vld [vmem:[%s3038_s0] sm:$0xff]  ;;  %v1663_v10 = vld [vmem:[%s3038_s0 + $0x8] sm:$0xff]  ;;  %v311_v13 = vld [vmem:[%s3039_s3 + $0x70] sm:$0xff]  ;;  %317 = vmatpush.msra.mxu1 %v312_v12  ;;  %1725 = vmatpush.msra.mxu3 %v312_v12  ;;  %vm384_vm0 = vcmp.lt.s32.totalorder %v383_v49, 32 }
   0x5   :  { %v1666_v9 = vld [vmem:[%s3038_s0 + $0x20] sm:$0xff]  ;;  %v1667_v11 = vld [vmem:[%s3038_s0 + $0x28] sm:$0xff]  ;;  %v308_v16 = vld [vmem:[%s3039_s3 + $0x58] sm:$0xff]  ;;  %v1958_v53 = vsel %vm384_vm0, 1.0, %v1811_v52 }
   0x6   :  { %198 = vmatpush.bf16.msra.mxu0 %v1660_v1  ;;  %1718 = vmatpush.bf16.msra.mxu2 %v1660_v1  ;;  %v310_v14 = vld [vmem:[%s3039_s3 + $0x68] sm:$0xff]  ;;  %v309_v15 = vld [vmem:[%s3039_s3 + $0x60] sm:$0xff]  ;;  %v307_v17 = vld [vmem:[%s3039_s3 + $0x50] sm:$0xff] }
   0x7   :  { %318 = vmatpush.msra.mxu1 %v311_v13  ;;  %1726 = vmatpush.msra.mxu3 %v311_v13  ;;  %v306_v18 = vld [vmem:[%s3039_s3 + $0x48] sm:$0xff]  ;;  %v1664_v19 = vld [vmem:[%s3038_s0 + $0x10] sm:$0xff]  ;;  %v305_v21 = vld [vmem:[%s3039_s3 + $0x40] sm:$0xff] }
   0x8   :  { %v1668_v20 = vld [vmem:[%s3038_s0 + $0x30] sm:$0xff]  ;;  %v304_v22 = vld [vmem:[%s3039_s3 + $0x38] sm:$0xff]  ;;  %v302_v24 = vld [vmem:[%s3039_s3 + $0x28] sm:$0xff] }
   0x9   :  { %319 = vmatpush.msra.mxu1 %v310_v14  ;;  %1727 = vmatpush.msra.mxu3 %v310_v14  ;;  %v303_v23 = vld [vmem:[%s3039_s3 + $0x30] sm:$0xff]  ;;  %v301_v25 = vld [vmem:[%s3039_s3 + $0x20] sm:$0xff]  ;;  %v300_v26 = vld [vmem:[%s3039_s3 + $0x18] sm:$0xff] }
   0xa   :  { %199 = vmatpush.bf16.msra.mxu0 %v1659_v2  ;;  %1719 = vmatpush.bf16.msra.mxu2 %v1659_v2  ;;  %v299_v27 = vld [vmem:[%s3039_s3 + $0x10] sm:$0xff]  ;;  %v298_v28 = vld [vmem:[%s3039_s3 + $0x8] sm:$0xff]  ;;  %v1665_v29 = vld [vmem:[%s3038_s0 + $0x18] sm:$0xff] }
   0xb   :  { %320 = vmatpush.msra.mxu1 %v309_v15  ;;  %1728 = vmatpush.msra.mxu3 %v309_v15  ;;  %v1669_v30 = vld [vmem:[%s3038_s0 + $0x38] sm:$0xff]  ;;  %v297_v31 = vld [vmem:[%s3039_s3] sm:$0xff] }
   0xc   :  { %v1956_v50 = vld [vmem:[%s3040_s4] ss:$0 sm:$0xff] }
   0xd   :  { %321 = vmatpush.msra.mxu1 %v308_v16  ;;  %1729 = vmatpush.msra.mxu3 %v308_v16 }
   0xe   :  { %200 = vmatpush.bf16.msra.mxu0 %v1658_v3  ;;  %1720 = vmatpush.bf16.msra.mxu2 %v1658_v3 }
   0xf   :  { %322 = vmatpush.msra.mxu1 %v307_v17  ;;  %1730 = vmatpush.msra.mxu3 %v307_v17 }
  0x11   :  { %323 = vmatpush.msra.mxu1 %v306_v18  ;;  %1731 = vmatpush.msra.mxu3 %v306_v18 }
  0x12   :  { %201 = vmatpush.bf16.msra.mxu0 %v1657_v4  ;;  %1721 = vmatpush.bf16.msra.mxu2 %v1657_v4 }
  0x13   :  { %324 = vmatpush.msra.mxu1 %v305_v21  ;;  %1732 = vmatpush.msra.mxu3 %v305_v21 }
  0x15   :  { %325 = vmatpush.msra.mxu1 %v304_v22  ;;  %1733 = vmatpush.msra.mxu3 %v304_v22 }
  0x16   :  { %202 = vmatpush.bf16.msra.mxu0 %v1656_v5  ;;  %1722 = vmatpush.bf16.msra.mxu2 %v1656_v5 }
  0x17   :  { %326 = vmatpush.msra.mxu1 %v303_v23  ;;  %1734 = vmatpush.msra.mxu3 %v303_v23 }
  0x19   :  { %327 = vmatpush.msra.mxu1 %v302_v24  ;;  %1735 = vmatpush.msra.mxu3 %v302_v24 }
  0x1a   :  { %203 = vmatpush.bf16.msra.mxu0 %v1655_v6  ;;  %1723 = vmatpush.bf16.msra.mxu2 %v1655_v6 }
  0x1b   :  { %328 = vmatpush.msra.mxu1 %v301_v25  ;;  %1736 = vmatpush.msra.mxu3 %v301_v25 }
  0x1d   :  { %329 = vmatpush.msra.mxu1 %v300_v26  ;;  %1737 = vmatpush.msra.mxu3 %v300_v26 }
  0x1e   :  { %204 = vmatpush.bf16.msra.mxu0 %v1654_v7  ;;  %1724 = vmatpush.bf16.msra.mxu2 %v1654_v7 }
  0x1f   :  { %330 = vmatpush.msra.mxu1 %v299_v27  ;;  %1738 = vmatpush.msra.mxu3 %v299_v27 }
  0x21   :  { %205 = vmatmul.bf16.vlgmr.msra.gmra.mxu0 %v1662_v8  ;;  %225 = vmatmul.bf16.vlgmr.msra.gmra.mxu2 %v1666_v9 }
  0x22   :  { %331 = vmatpush.msra.mxu1 %v298_v28  ;;  %1739 = vmatpush.msra.mxu3 %v298_v28 }
  0x24   :  { %332 = vmatpush.msra.mxu1 %v297_v31  ;;  %1740 = vmatpush.msra.mxu3 %v297_v31 }
  0x31   :  { %210 = vmatmul.bf16.gmra.mxu0 %v1663_v10  ;;  %230 = vmatmul.bf16.gmra.mxu2 %v1667_v11 }
  0x41   :  { %215 = vmatmul.bf16.gmra.mxu0 %v1664_v19  ;;  %235 = vmatmul.bf16.gmra.mxu2 %v1668_v20 }
  0x51   :  { %220 = vmatmul.bf16.gmra.mxu0 %v1665_v29  ;;  %240 = vmatmul.bf16.gmra.mxu2 %v1669_v30 }
  0x9e   :  { %v206_v32 = vpop.f32.mrf.mxu0 }
  0x9f   :  { %333 = vmatmul.f32.vlgmr.msra.gmra.mxu1 %v206_v32 }
  0xa4   :  { %v226_v33 = vpop.f32.mrf.mxu2 }
  0xa5   :  { %357 = vmatmul.f32.vlgmr.msra.gmra.mxu3 %v226_v33 }
  0xa6   :  { %v208_v34 = vpop.f32.mrf.mxu0 }
  0xa7   :  { %336 = vmatmul.f32.gmra.mxu1 %v208_v34 }
  0xac   :  { %v228_v35 = vpop.f32.mrf.mxu2 }
  0xad   :  { %360 = vmatmul.f32.gmra.mxu3 %v228_v35 }
  0xae   :  { %v211_v36 = vpop.f32.mrf.mxu0 }
  0xaf   :  { %339 = vmatmul.f32.gmra.mxu1 %v211_v36 }
  0xb4   :  { %v231_v37 = vpop.f32.mrf.mxu2 }
  0xb5   :  { %363 = vmatmul.f32.gmra.mxu3 %v231_v37 }
  0xb6   :  { %v213_v38 = vpop.f32.mrf.mxu0 }
  0xb7   :  { %342 = vmatmul.f32.gmra.mxu1 %v213_v38 }
  0xbc   :  { %v233_v39 = vpop.f32.mrf.mxu2 }
  0xbd   :  { %366 = vmatmul.f32.gmra.mxu3 %v233_v39 }
  0xbe   :  { %v216_v40 = vpop.f32.mrf.mxu0 }
  0xbf   :  { %345 = vmatmul.f32.gmra.mxu1 %v216_v40 }
  0xc4   :  { %v236_v41 = vpop.f32.mrf.mxu2 }
  0xc5   :  { %369 = vmatmul.f32.gmra.mxu3 %v236_v41 }
  0xc6   :  { %v218_v42 = vpop.f32.mrf.mxu0 }
  0xc7   :  { %348 = vmatmul.f32.gmra.mxu1 %v218_v42 }
  0xcc   :  { %v238_v43 = vpop.f32.mrf.mxu2 }
  0xcd   :  { %372 = vmatmul.f32.gmra.mxu3 %v238_v43 }
  0xce   :  { %v221_v44 = vpop.f32.mrf.mxu0 }
  0xcf   :  { %351 = vmatmul.f32.gmra.mxu1 %v221_v44 }
  0xd4   :  { %v241_v45 = vpop.f32.mrf.mxu2 }
  0xd5   :  { %375 = vmatmul.f32.gmra.mxu3 %v241_v45 }
  0xd6   :  { %v223_v46 = vpop.f32.mrf.mxu0 }
  0xd7   :  { %354 = vmatmul.f32.gmra.mxu1 %v223_v46 }
  0xdc   :  { %v243_v47 = vpop.f32.mrf.mxu2 }
  0xdd   :  { %378 = vmatmul.f32.gmra.mxu3 %v243_v47 }
 0x11c   :  { %v334_v51 = vpop.f32.mrf.mxu1 }
 0x11d   :  { %v1961_v54 = vadd.f32 %v1956_v50, %v334_v51 }
 0x11f   :  { %v387_v55 = vmul.f32 %v1958_v53, %v1961_v54 }
 0x121   :  { %403 = vadd.xlane.f32.xlu0 %v387_v55 }
 0x124   :  { %v337_v56 = vpop.f32.mrf.mxu1 }
 0x125   :  { %v1966_v57 = vadd.f32 %v1956_v50, %v337_v56 }
 0x127   :  { %v388_v58 = vmul.f32 %v1958_v53, %v1966_v57 }
 0x128   :  { %v358_v59 = vpop.f32.mrf.mxu3 }
 0x129   :  { %v1971_v60 = vadd.f32 %v1956_v50, %v358_v59  ;;  %405 = vadd.xlane.f32.xlu0 %v388_v58 }
 0x12b   :  { %v395_v61 = vmul.f32 %v1958_v53, %v1971_v60 }
 0x12c   :  { %v340_v62 = vpop.f32.mrf.mxu1 }
 0x12d   :  { %v1976_v63 = vadd.f32 %v1956_v50, %v340_v62  ;;  %419 = vadd.xlane.f32.xlu2 %v395_v61 }
 0x12f   :  { %v389_v0 = vmul.f32 %v1958_v53, %v1976_v63 }
 0x130   :  { %v361_v1 = vpop.f32.mrf.mxu3 }
 0x131   :  { %v1981_v2 = vadd.f32 %v1956_v50, %v361_v1  ;;  %407 = vadd.xlane.f32.xlu1 %v389_v0 }
 0x133   :  { %v396_v3 = vmul.f32 %v1958_v53, %v1981_v2 }
 0x134   :  { %v343_v4 = vpop.f32.mrf.mxu1 }
 0x135   :  { %v1986_v5 = vadd.f32 %v1956_v50, %v343_v4  ;;  %421 = vadd.xlane.f32.xlu0 %v396_v3 }
 0x137   :  { %v390_v6 = vmul.f32 %v1958_v53, %v1986_v5 }
 0x138   :  { %v364_v7 = vpop.f32.mrf.mxu3 }
 0x139   :  { %409 = vadd.xlane.f32.xlu1 %v390_v6  ;;  %v1991_v8 = vadd.f32 %v1956_v50, %v364_v7 }
 0x13b   :  { %v397_v11 = vmul.f32 %v1958_v53, %v1991_v8 }
 0x13c   :  { %v346_v9 = vpop.f32.mrf.mxu1 }
 0x13d   :  { %v1994_v10 = vadd.f32 %v1956_v50, %v346_v9 }
 0x13f   :  { %v391_v12 = vmul.f32 %v1958_v53, %v1994_v10 }
 0x140   :  { %v367_v13 = vpop.f32.mrf.mxu3 }
 0x141   :  { %423 = vadd.xlane.f32.xlu1 %v397_v11  ;;  %411 = vadd.xlane.f32.xlu2 %v391_v12  ;;  %v2001_v14 = vadd.f32 %v1956_v50, %v367_v13 }
 0x143   :  { %v398_v16 = vmul.f32 %v1958_v53, %v2001_v14 }
 0x144   :  { %v349_v15 = vpop.f32.mrf.mxu1 }
 0x145   :  { %v2009_v19 = vadd.f32 %v1956_v50, %v349_v15 }
 0x147   :  { %v392_v23 = vmul.f32 %v1958_v53, %v2009_v19 }
 0x148   :  { %v370_v17 = vpop.f32.mrf.mxu3 }
 0x149   :  { %v2006_v18 = vadd.f32 %v1956_v50, %v370_v17  ;;  %425 = vadd.xlane.f32.xlu2 %v398_v16 }
 0x14b   :  { %v399_v20 = vmul.f32 %v1958_v53, %v2006_v18 }
 0x14c   :  { %v352_v21 = vpop.f32.mrf.mxu1 }
 0x14d   :  { %v2014_v22 = vadd.f32 %v1956_v50, %v352_v21  ;;  %427 = vadd.xlane.f32.xlu0 %v399_v20 }
 0x14f   :  { %v393_v26 = vmul.f32 %v1958_v53, %v2014_v22 }
 0x150   :  { %v373_v24 = vpop.f32.mrf.mxu3 }
 0x151   :  { %v2019_v25 = vadd.f32 %v1956_v50, %v373_v24  ;;  %413 = vadd.xlane.f32.xlu2 %v392_v23 }
 0x153   :  { %v400_v27 = vmul.f32 %v1958_v53, %v2019_v25 }
 0x154   :  { %v355_v28 = vpop.f32.mrf.mxu1 }
 0x155   :  { %429 = vadd.xlane.f32.xlu1 %v400_v27  ;;  %415 = vadd.xlane.f32.xlu0 %v393_v26  ;;  %v2026_v29 = vadd.f32 %v1956_v50, %v355_v28 }
 0x157   :  { %v394_v33 = vmul.f32 %v1958_v53, %v2026_v29 }
 0x158   :  { %v376_v30 = vpop.f32.mrf.mxu3 }
 0x159   :  { %v2029_v31 = vadd.f32 %v1956_v50, %v376_v30 }
 0x15b   :  { %v401_v32 = vmul.f32 %v1958_v53, %v2029_v31 }
 0x15d   :  { %431 = vadd.xlane.f32.xlu2 %v401_v32  ;;  %417 = vadd.xlane.f32.xlu1 %v394_v33 }
 0x160   :  { %v379_v34 = vpop.f32.mrf.mxu3 }
 0x161   :  { %v2036_v35 = vadd.f32 %v1956_v50, %v379_v34 }
 0x163   :  { %v402_v36 = vmul.f32 %v1958_v53, %v2036_v35 }
 0x165   :  { %433 = vadd.xlane.f32.xlu0 %v402_v36 }
 0x194   :  { %v404_v37 = vpop.xlane.xlu0 %403 }
 0x195   :  { %v435_v38 = vmul.f32 0.03125, %v404_v37 }
 0x197   :  { %v451_v39 = vsub.f32 %v1961_v54, %v435_v38 }
 0x199   :  { %v2042_v40 = vmul.f32 %v1958_v53, %v451_v39 }
 0x19b   :  { %v483_v41 = vmul.f32 %v2042_v40, %v2042_v40 }
 0x19c   :  { %v406_v42 = vpop.xlane.xlu0 %405 }
 0x19d   :  { %v436_v43 = vmul.f32 0.03125, %v406_v42  ;;  %499 = vadd.xlane.f32.xlu1 %v483_v41 }
 0x19f   :  { %v452_v44 = vsub.f32 %v1966_v57, %v436_v43 }
 0x1a0   :  { %v420_v45 = vpop.xlane.xlu2 %419 }
 0x1a1   :  { %v443_v46 = vmul.f32 0.03125, %v420_v45  ;;  %v2048_v47 = vmul.f32 %v1958_v53, %v452_v44 }
 0x1a3   :  { %v459_v48 = vsub.f32 %v1971_v60, %v443_v46  ;;  %v484_v49 = vmul.f32 %v2048_v47, %v2048_v47 }
 0x1a4   :  { %v408_v50 = vpop.xlane.xlu1 %407 }
 0x1a5   :  { %v437_v51 = vmul.f32 0.03125, %v408_v50  ;;  %501 = vadd.xlane.f32.xlu2 %v484_v49  ;;  %v2054_v52 = vmul.f32 %v1958_v53, %v459_v48 }
 0x1a7   :  { %v453_v54 = vsub.f32 %v1976_v63, %v437_v51  ;;  %v491_v55 = vmul.f32 %v2054_v52, %v2054_v52 }
 0x1a8   :  { %v422_v56 = vpop.xlane.xlu0 %421 }
 0x1a9   :  { %v444_v57 = vmul.f32 0.03125, %v422_v56  ;;  %515 = vadd.xlane.f32.xlu0 %v491_v55  ;;  %v2061_v59 = vmul.f32 %v1958_v53, %v453_v54 }
 0x1ab   :  { %v460_v58 = vsub.f32 %v1981_v2, %v444_v57  ;;  %v485_v63 = vmul.f32 %v2061_v59, %v2061_v59 }
 0x1ac   :  { %v410_v60 = vpop.xlane.xlu1 %409 }
 0x1ad   :  { %v438_v61 = vmul.f32 0.03125, %v410_v60  ;;  %v2064_v62 = vmul.f32 %v1958_v53, %v460_v58 }
 0x1af   :  { %v454_v0 = vsub.f32 %v1986_v5, %v438_v61  ;;  %v492_v1 = vmul.f32 %v2064_v62, %v2064_v62 }
 0x1b1   :  { %503 = vadd.xlane.f32.xlu0 %v485_v63  ;;  %517 = vadd.xlane.f32.xlu1 %v492_v1  ;;  %v2072_v2 = vmul.f32 %v1958_v53, %v454_v0 }
 0x1b3   :  { %v486_v5 = vmul.f32 %v2072_v2, %v2072_v2 }
 0x1b4   :  { %v424_v3 = vpop.xlane.xlu1 %423  ;;  %v412_v4 = vpop.xlane.xlu2 %411 }
 0x1b5   :  { %v445_v6 = vmul.f32 0.03125, %v424_v3  ;;  %v439_v9 = vmul.f32 0.03125, %v412_v4 }
 0x1b7   :  { %v461_v7 = vsub.f32 %v1991_v8, %v445_v6  ;;  %v455_v12 = vsub.f32 %v1994_v10, %v439_v9 }
 0x1b9   :  { %505 = vadd.xlane.f32.xlu1 %v486_v5  ;;  %v2078_v11 = vmul.f32 %v1958_v53, %v461_v7  ;;  %v2085_v8 = vmul.f32 %v1958_v53, %v455_v12 }
 0x1bb   :  { %v493_v13 = vmul.f32 %v2078_v11, %v2078_v11  ;;  %v487_v10 = vmul.f32 %v2085_v8, %v2085_v8 }
 0x1bc   :  { %v426_v15 = vpop.xlane.xlu2 %425 }
 0x1bd   :  { %v446_v16 = vmul.f32 0.03125, %v426_v15  ;;  %519 = vadd.xlane.f32.xlu2 %v493_v13 }
 0x1bf   :  { %v462_v17 = vsub.f32 %v2001_v14, %v446_v16 }
 0x1c0   :  { %v428_v20 = vpop.xlane.xlu0 %427 }
 0x1c1   :  { %v447_v21 = vmul.f32 0.03125, %v428_v20  ;;  %v2088_v23 = vmul.f32 %v1958_v53, %v462_v17 }
 0x1c3   :  { %v463_v24 = vsub.f32 %v2006_v18, %v447_v21  ;;  %v494_v26 = vmul.f32 %v2088_v23, %v2088_v23  ;;  %v2139_v21 = vld [vmem:[%s3041_s5] ss:$0 sm:$0xff] }
 0x1c4   :  { %v414_v27 = vpop.xlane.xlu2 %413 }
 0x1c5   :  { %v440_v28 = vmul.f32 0.03125, %v414_v27  ;;  %507 = vadd.xlane.f32.xlu2 %v487_v10  ;;  %521 = vadd.xlane.f32.xlu0 %v494_v26  ;;  %v2096_v14 = vmul.f32 %v1958_v53, %v463_v24 }
 0x1c7   :  { %v456_v30 = vsub.f32 %v2009_v19, %v440_v28  ;;  %v495_v32 = vmul.f32 %v2096_v14, %v2096_v14 }
 0x1c8   :  { %v430_v33 = vpop.xlane.xlu1 %429  ;;  %v416_v18 = vpop.xlane.xlu0 %415 }
 0x1c9   :  { %v441_v34 = vmul.f32 0.03125, %v416_v18  ;;  %523 = vadd.xlane.f32.xlu1 %v495_v32  ;;  %v2102_v36 = vmul.f32 %v1958_v53, %v456_v30  ;;  %v448_v45 = vmul.f32 0.03125, %v430_v33  ;;  %v2144_v30 = vld [vmem:[%s3042_s6] ss:$0 sm:$0xff] }
 0x1cb   :  { %v457_v37 = vsub.f32 %v2014_v22, %v441_v34  ;;  %v488_v38 = vmul.f32 %v2102_v36, %v2102_v36  ;;  %v464_v50 = vsub.f32 %v2019_v25, %v448_v45 }
 0x1cd   :  { %509 = vadd.xlane.f32.xlu0 %v488_v38  ;;  %v2108_v39 = vmul.f32 %v1958_v53, %v457_v37 }
 0x1cf   :  { %v489_v19 = vmul.f32 %v2108_v39, %v2108_v39 }
 0x1d0   :  { %v432_v41 = vpop.xlane.xlu2 %431  ;;  %v418_v42 = vpop.xlane.xlu1 %417 }
 0x1d1   :  { %v449_v43 = vmul.f32 0.03125, %v432_v41  ;;  %v442_v44 = vmul.f32 0.03125, %v418_v42  ;;  %511 = vadd.xlane.f32.xlu1 %v489_v19 }
 0x1d3   :  { %v465_v46 = vsub.f32 %v2029_v31, %v449_v43  ;;  %v458_v22 = vsub.f32 %v2026_v29, %v442_v44  ;;  %v2127_v31 = vmul.f32 %v1958_v53, %v464_v50 }
 0x1d5   :  { %v2115_v48 = vmul.f32 %v1958_v53, %v465_v46  ;;  %v2118_v49 = vmul.f32 %v1958_v53, %v458_v22  ;;  %v496_v58 = vmul.f32 %v2127_v31, %v2127_v31 }
 0x1d7   :  { %v497_v51 = vmul.f32 %v2115_v48, %v2115_v48  ;;  %v490_v54 = vmul.f32 %v2118_v49, %v2118_v49 }
 0x1d8   :  { %v434_v55 = vpop.xlane.xlu0 %433 }
 0x1d9   :  { %v450_v56 = vmul.f32 0.03125, %v434_v55  ;;  %527 = vadd.xlane.f32.xlu0 %v497_v51  ;;  %513 = vadd.xlane.f32.xlu2 %v490_v54 }
 0x1db   :  { %v466_v29 = vsub.f32 %v2036_v35, %v450_v56 }
 0x1dd   :  { %v2130_v57 = vmul.f32 %v1958_v53, %v466_v29 }
 0x1df   :  { %v498_v25 = vmul.f32 %v2130_v57, %v2130_v57 }
 0x1e1   :  { %529 = vadd.xlane.f32.xlu1 %v498_v25  ;;  %525 = vadd.xlane.f32.xlu2 %v496_v58 }
 0x210   :  { %v500_v60 = vpop.xlane.xlu1 %499 }
 0x211   :  { %v531_v61 = vmul.f32 0.03125, %v500_v60 }
 0x213   :  { %v547_v0 = vadd.f32 1e-05, %v531_v61 }
 0x215   :  { %1745 = vrsqrt.f32 %v547_v0  ;;  %vm569_vm2 = vweird.f32 %v547_v0 }
 0x218   :  { %v502_v63 = vpop.xlane.xlu2 %501 }
 0x219   :  { %v532_v35 = vmul.f32 0.03125, %v502_v63 }
 0x21b   :  { %v1746_v1 = vpop.eup %1745  ;;  %v548_v3 = vadd.f32 1e-05, %v532_v35 }
 0x21c   :  { %v564_v4 = vmul.f32 %v1746_v1, %v547_v0  ;;  %v516_v6 = vpop.xlane.xlu0 %515  ;;  %vm570_vm1 = vweird.f32 %v1746_v1 }
 0x21d   :  { %1747 = vrsqrt.f32 %v548_v3  ;;  %v539_v53 = vmul.f32 0.03125, %v516_v6  ;;  %vm571_vm3 = vmor %vm569_vm2, %vm570_vm1  ;;  %vm579_vm5 = vweird.f32 %v548_v3 }
 0x21e   :  { %v565_v7 = vmul.f32 %v1746_v1, %v564_v4 }
 0x21f   :  { %v555_v9 = vadd.f32 1e-05, %v539_v53 }
 0x220   :  { %v566_v5 = vmul.f32 0.5, %v565_v7 }
 0x221   :  { %1749 = vrsqrt.f32 %v555_v9  ;;  %vm649_vm8 = vweird.f32 %v555_v9 }
 0x222   :  { %v567_v12 = vsub.f32 1.5, %v566_v5 }
 0x223   :  { %v1748_v13 = vpop.eup %1747 }
 0x224   :  { %v568_v15 = vmul.f32 %v1746_v1, %v567_v12  ;;  %v574_v16 = vmul.f32 %v1748_v13, %v548_v3  ;;  %v504_v17 = vpop.xlane.xlu0 %503  ;;  %v518_v20 = vpop.xlane.xlu1 %517  ;;  %vm580_vm4 = vweird.f32 %v1748_v13 }
 0x225   :  { %v533_v24 = vmul.f32 0.03125, %v504_v17  ;;  %v540_v10 = vmul.f32 0.03125, %v518_v20  ;;  %vm581_vm6 = vmor %vm579_vm5, %vm580_vm4 }
 0x226   :  { %v572_v26 = vsel %vm571_vm3, %v1746_v1, %v568_v15  ;;  %v575_v27 = vmul.f32 %v1748_v13, %v574_v16 }
 0x227   :  { %v1750_v28 = vpop.eup %1749  ;;  %v723_v32 = vmul.f32 %v572_v26, %v2042_v40  ;;  %v549_v33 = vadd.f32 1e-05, %v533_v24  ;;  %v2147_v18 = vadd.f32 1e-05, %v540_v10 }
 0x228   :  { %v576_v34 = vmul.f32 0.5, %v575_v27  ;;  %v644_v37 = vmul.f32 %v1750_v28, %v555_v9  ;;  %vm650_vm7 = vweird.f32 %v1750_v28 }
 0x229   :  { %v743_v38 = vmul.f32 %v2139_v21, %v723_v32  ;;  %1751 = vrsqrt.f32 %v549_v33  ;;  %vm651_vm9 = vmor %vm649_vm8, %vm650_vm7  ;;  %vm589_vm10 = vweird.f32 %v549_v33  ;;  %vm659_vm14 = vweird.f32 %v2147_v18 }
 0x22a   :  { %v577_v19 = vsub.f32 1.5, %v576_v34  ;;  %v645_v41 = vmul.f32 %v1750_v28, %v644_v37  ;;  %1753 = vrsqrt.f32 %v2147_v18 }
 0x22b   :  { %v2152_v42 = vadd.f32 %v2144_v30, %v743_v38 }
 0x22c   :  { %v578_v43 = vmul.f32 %v1748_v13, %v577_v19  ;;  %v646_v44 = vmul.f32 0.5, %v645_v41  ;;  %v506_v40 = vpop.xlane.xlu1 %505 }
 0x22d   :  { %v2155_v45 = vmul.f32 0.70710677, %v2152_v42  ;;  %v534_v46 = vmul.f32 0.03125, %v506_v40 }
 0x22e   :  { %v582_v22 = vsel %vm581_vm6, %v1748_v13, %v578_v43  ;;  %v647_v50 = vsub.f32 1.5, %v646_v44 }
 0x22f   :  { %v1752_v51 = vpop.eup %1751  ;;  %v811_v54 = vmul.f32 %v2155_v45, %v2155_v45  ;;  %v724_v55 = vmul.f32 %v582_v22, %v2048_v47  ;;  %v2164_v0 = vadd.f32 1e-05, %v534_v46 }
 0x230   :  { %v1754_v56 = vpop.eup %1753  ;;  %v648_v29 = vmul.f32 %v1750_v28, %v647_v50  ;;  %v584_v25 = vmul.f32 %v1752_v51, %v549_v33  ;;  %v520_v7 = vpop.xlane.xlu2 %519  ;;  %vm590_vm11 = vweird.f32 %v1752_v51 }
 0x231   :  { %v2160_v58 = vmin.f32 %v811_v54, 16.0  ;;  %v744_v60 = vmul.f32 %v2139_v21, %v724_v55  ;;  %v654_v61 = vmul.f32 %v1754_v56, %v2147_v18  ;;  %1755 = vrsqrt.f32 %v2164_v0  ;;  %vm591_vm13 = vmor %vm589_vm10, %vm590_vm11 }
 0x232   :  { %v652_v63 = vsel %vm651_vm9, %v1750_v28, %v648_v29  ;;  %v585_v35 = vmul.f32 %v1752_v51, %v584_v25  ;;  %v541_v24 = vmul.f32 0.03125, %v520_v7  ;;  %vm660_vm12 = vweird.f32 %v1754_v56 }
 0x233   :  { %v813_v1 = vmul.f32 2.1237322e-06, %v2160_v58  ;;  %v824_v3 = vmul.f32 3.8918573e-05, %v2160_v58  ;;  %v2169_v47 = vadd.f32 %v2144_v30, %v744_v60  ;;  %v731_v4 = vmul.f32 %v652_v63, %v2054_v52  ;;  %vm661_vm15 = vmor %vm659_vm14, %vm660_vm12 }
 0x234   :  { %v586_v6 = vmul.f32 0.5, %v585_v35  ;;  %v655_v53 = vmul.f32 %v1754_v56, %v654_v61  ;;  %v2196_v33 = vadd.f32 1e-05, %v541_v24  ;;  %vm599_vm1 = vweird.f32 %v2164_v0 }
 0x235   :  { %v814_v9 = vadd.f32 0.00028619796, %v813_v1  ;;  %v825_v5 = vadd.f32 0.001143296, %v824_v3  ;;  %v751_v12 = vmul.f32 %v2139_v21, %v731_v4  ;;  %v2175_v13 = vmul.f32 0.70710677, %v2169_v47 }
 0x236   :  { %v587_v15 = vsub.f32 1.5, %v586_v6  ;;  %v656_v16 = vmul.f32 0.5, %v655_v53  ;;  %1757 = vrsqrt.f32 %v2196_v33  ;;  %vm669_vm11 = vweird.f32 %v2196_v33 }
 0x237   :  { %v815_v17 = vmul.f32 %v814_v9, %v2160_v58  ;;  %v826_v52 = vmul.f32 %v825_v5, %v2160_v58  ;;  %v2180_v20 = vadd.f32 %v2144_v30, %v751_v12  ;;  %v851_v10 = vmul.f32 %v2175_v13, %v2175_v13  ;;  %v2191_v41 = vpop.eup %1755 }
 0x238   :  { %v588_v26 = vmul.f32 %v1752_v51, %v587_v15  ;;  %v657_v27 = vsub.f32 1.5, %v656_v16  ;;  %v594_v61 = vmul.f32 %v2191_v41, %v2164_v0  ;;  %vm600_vm0 = vweird.f32 %v2191_v41 }
 0x239   :  { %v816_v28 = vadd.f32 0.0036580483, %v815_v17  ;;  %v827_v32 = vadd.f32 0.014752088, %v826_v52  ;;  %v2186_v34 = vmin.f32 %v851_v10, 16.0  ;;  %vm2312_vm8 = vmor %vm599_vm1, %vm600_vm0 }
 0x23a   :  { %v2189_v37 = vmul.f32 0.70710677, %v2180_v20  ;;  %v592_v38 = vsel %vm591_vm13, %v1752_v51, %v588_v26  ;;  %v658_v19 = vmul.f32 %v1754_v56, %v657_v27  ;;  %v595_v26 = vmul.f32 %v2191_v41, %v594_v61 }
 0x23b   :  { %v817_v43 = vmul.f32 %v816_v28, %v2160_v58  ;;  %v828_v44 = vmul.f32 %v827_v32, %v2160_v58  ;;  %v725_v40 = vmul.f32 %v592_v38, %v2061_v59  ;;  %v853_v18 = vmul.f32 2.1237322e-06, %v2186_v34 }
 0x23c   :  { %v864_v46 = vmul.f32 3.8918573e-05, %v2186_v34  ;;  %v1131_v22 = vmul.f32 %v2189_v37, %v2189_v37  ;;  %v662_v50 = vsel %vm661_vm15, %v1754_v56, %v658_v19 }
 0x23d   :  { %v818_v51 = vadd.f32 0.05243302, %v817_v43  ;;  %v829_v54 = vadd.f32 0.112945676, %v828_v44  ;;  %v745_v55 = vmul.f32 %v2139_v21, %v725_v40  ;;  %v732_v29 = vmul.f32 %v662_v50, %v2064_v62 }
 0x23e   :  { %v854_v25 = vadd.f32 0.00028619796, %v853_v18  ;;  %v865_v60 = vadd.f32 0.001143296, %v864_v46  ;;  %v2204_v59 = vmin.f32 %v1131_v22, 16.0  ;;  %v2237_v18 = vmul.f32 0.5, %v2152_v42 }
 0x23f   :  { %v819_v63 = vmul.f32 %v818_v51, %v2160_v58  ;;  %v830_v35 = vmul.f32 %v829_v54, %v2160_v58  ;;  %v765_v1 = vadd.f32 %v2144_v30, %v745_v55  ;;  %v752_v56 = vmul.f32 %v2139_v21, %v732_v29  ;;  %v2245_v54 = vpop.eup %1757 }
 0x240   :  { %v855_v3 = vmul.f32 %v854_v25, %v2186_v34  ;;  %v866_v4 = vmul.f32 %v865_v60, %v2186_v34  ;;  %v1133_v62 = vmul.f32 2.1237322e-06, %v2204_v59  ;;  %v1144_v6 = vmul.f32 3.8918573e-05, %v2204_v59 }
 0x241   :  { %v820_v53 = vadd.f32 0.18741608, %v819_v63  ;;  %v831_v7 = vadd.f32 0.4994258, %v830_v35  ;;  %v2217_v12 = vadd.f32 %v2144_v30, %v752_v56  ;;  %v2223_v10 = vmul.f32 0.70710677, %v765_v1 }
 0x242   :  { %v856_v9 = vadd.f32 0.0036580483, %v855_v3  ;;  %v867_v5 = vadd.f32 0.014752088, %v866_v4  ;;  %v1134_v16 = vadd.f32 0.00028619796, %v1133_v62  ;;  %vm670_vm0 = vweird.f32 %v2245_v54 }
 0x243   :  { %v832_v15 = vmul.f32 %v831_v7, %v2160_v58  ;;  %v1145_v17 = vadd.f32 0.001143296, %v1144_v6  ;;  %v821_v27 = vmul.f32 %v820_v53, %v2160_v58  ;;  %v891_v44 = vmul.f32 %v2223_v10, %v2223_v10 }
 0x244   :  { %v857_v52 = vmul.f32 %v856_v9, %v2186_v34  ;;  %v868_v24 = vmul.f32 %v867_v5, %v2186_v34  ;;  %v1135_v32 = vmul.f32 %v1134_v16, %v2204_v59  ;;  %v2234_v40 = vmul.f32 0.70710677, %v2217_v12 }
 0x245   :  { %v2227_v28 = vadd.f32 1.0, %v832_v15  ;;  %v1146_v38 = vmul.f32 %v1145_v17, %v2204_v59  ;;  %v2241_v58 = vmul.f32 0.5, %v2169_v47  ;;  %v596_v51 = vmul.f32 0.5, %v595_v26 }
 0x246   :  { %v858_v19 = vadd.f32 0.05243302, %v857_v52  ;;  %v869_v43 = vadd.f32 0.112945676, %v868_v24  ;;  %v1136_v50 = vadd.f32 0.0036580483, %v1135_v32  ;;  %v1171_v63 = vmul.f32 %v2234_v40, %v2234_v40 }
 0x247   :  { %1759 = vrcp.f32 %v2227_v28  ;;  %v2248_v55 = vmul.f32 0.5, %v2180_v20  ;;  %v1147_v29 = vadd.f32 0.014752088, %v1146_v38  ;;  %v2250_v25 = vmul.f32 0.5, %v765_v1 }
 0x248   :  { %v859_v46 = vmul.f32 %v858_v19, %v2186_v34  ;;  %v870_v22 = vmul.f32 %v869_v43, %v2186_v34  ;;  %v2252_v42 = vmin.f32 %v891_v44, 16.0  ;;  %v822_v60 = vadd.f32 1.1283791, %v821_v27 }
 0x249   :  { %v1137_v47 = vmul.f32 %v1136_v50, %v2204_v59  ;;  %v1148_v56 = vmul.f32 %v1147_v29, %v2204_v59  ;;  %v843_v4 = vand.u32 2147483647, %v2227_v28  ;;  %v845_v1 = vand.u32 2147483648, %v2227_v28 }
 0x24a   :  { %v871_v61 = vadd.f32 0.4994258, %v870_v22  ;;  %v860_v35 = vadd.f32 0.18741608, %v859_v46  ;;  %v893_v3 = vmul.f32 2.1237322e-06, %v2252_v42  ;;  %v823_v15 = vmul.f32 %v822_v60, %v2155_v45 }
 0x24b   :  { %v904_v20 = vmul.f32 3.8918573e-05, %v2252_v42  ;;  %v597_v6 = vsub.f32 1.5, %v596_v51  ;;  %v1138_v7 = vadd.f32 0.05243302, %v1137_v47  ;;  %v2268_v52 = vmin.f32 %v1171_v63, 16.0 }
 0x24c   :  { %v872_v62 = vmul.f32 %v871_v61, %v2186_v34  ;;  %v1149_v9 = vadd.f32 0.112945676, %v1148_v56  ;;  %v894_v5 = vadd.f32 0.00028619796, %v893_v3  ;;  %v861_v24 = vmul.f32 %v860_v35, %v2186_v34 }
 0x24d   :  { %v1760_v53 = vpop.eup %1759  ;;  %v905_v32 = vadd.f32 0.001143296, %v904_v20  ;;  %vm839_vm2 = vweird.f32 %v2227_v28  ;;  %vm2275_vm3 = vcmp.eq.f32.partialorder %v843_v4, 8.507059e+37  ;;  %v846_v19 = vor.u32 1.1754944e-38, %v845_v1 }
 0x24e   :  { %v835_v16 = vmul.f32 %v1760_v53, %v2227_v28  ;;  %v2266_v17 = vadd.f32 1.0, %v872_v62  ;;  %v1150_v26 = vmul.f32 %v1149_v9, %v2204_v59  ;;  %v895_v27 = vmul.f32 %v894_v5, %v2252_v42 }
 0x24f   :  { %vm840_vm4 = vweird.f32 %v1760_v53  ;;  %v1139_v34 = vmul.f32 %v1138_v7, %v2204_v59  ;;  %v906_v43 = vmul.f32 %v905_v32, %v2252_v42  ;;  %v1173_v50 = vmul.f32 2.1237322e-06, %v2268_v52 }
 0x250   :  { %v836_v38 = vsub.f32 1.0, %v835_v16  ;;  %1761 = vrcp.f32 %v2266_v17  ;;  %v1151_v46 = vadd.f32 0.4994258, %v1150_v26  ;;  %v896_v22 = vadd.f32 0.0036580483, %v895_v27  ;;  %vm841_vm5 = vmor %vm839_vm2, %vm840_vm4 }
 0x251   :  { %v862_v51 = vadd.f32 1.1283791, %v861_v24  ;;  %v883_v29 = vand.u32 2147483647, %v2266_v17  ;;  %v907_v60 = vadd.f32 0.014752088, %v906_v43  ;;  %v598_v61 = vmul.f32 %v2191_v41, %v597_v6  ;;  %vm671_vm2 = vmor %vm669_vm11, %vm670_vm0 }
 0x252   :  { %v837_v44 = vmul.f32 %v1760_v53, %v836_v38  ;;  %v1152_v63 = vmul.f32 %v1151_v46, %v2204_v59  ;;  %v897_v35 = vmul.f32 %v896_v22, %v2252_v42  ;;  %v1174_v56 = vadd.f32 0.00028619796, %v1173_v50 }
 0x253   :  { %v1140_v3 = vadd.f32 0.18741608, %v1139_v34  ;;  %v908_v20 = vmul.f32 %v907_v60, %v2252_v42  ;;  %v1184_v4 = vmul.f32 3.8918573e-05, %v2268_v52  ;;  %v664_v1 = vmul.f32 %v2245_v54, %v2196_v33  ;;  %v1491_v33 = vld [vmem:[%s3043_s2 + $0x40] sm:$0xff] }
 0x254   :  { %v838_v47 = vadd.f32 %v1760_v53, %v837_v44  ;;  %v2294_v7 = vadd.f32 1.0, %v1152_v63  ;;  %v898_v9 = vadd.f32 0.05243302, %v897_v35  ;;  %v1175_v5 = vmul.f32 %v1174_v56, %v2268_v52 }
 0x255   :  { %v863_v28 = vmul.f32 %v862_v51, %v2175_v13  ;;  %vm879_vm6 = vweird.f32 %v2266_v17  ;;  %vm2302_vm7 = vcmp.eq.f32.partialorder %v883_v29, 8.507059e+37  ;;  %v602_v45 = vsel %vm2312_vm8, %v2191_v41, %v598_v61  ;;  %v1483_v41 = vld [vmem:[%s3043_s2] sm:$0xff] }
 0x256   :  { %v1762_v62 = vpop.eup %1761  ;;  %v842_v6 = vsel %vm841_vm5, %v1760_v53, %v838_v47  ;;  %v885_v53 = vand.u32 2147483648, %v2266_v17  ;;  %1763 = vrcp.f32 %v2294_v7  ;;  %v899_v38 = vmul.f32 %v898_v9, %v2252_v42 }
 0x257   :  { %v847_v16 = vsel %vm2275_vm3, %v846_v19, %v842_v6  ;;  %v875_v24 = vmul.f32 %v1762_v62, %v2266_v17  ;;  %v1141_v34 = vmul.f32 %v1140_v3, %v2204_v59  ;;  %v1176_v43 = vadd.f32 0.0036580483, %v1175_v5 }
 0x258   :  { %v848_v26 = vmul.f32 %v847_v16, %v823_v15  ;;  %v909_v15 = vadd.f32 0.112945676, %v908_v20  ;;  %v1185_v44 = vadd.f32 0.001143296, %v1184_v4  ;;  %vm880_vm9 = vweird.f32 %v1762_v62 }
 0x259   :  { %v876_v13 = vsub.f32 1.0, %v875_v24  ;;  %v900_v0 = vadd.f32 0.18741608, %v899_v38  ;;  %v1177_v51 = vmul.f32 %v1176_v43, %v2268_v52  ;;  %v726_v60 = vmul.f32 %v602_v45, %v2072_v2  ;;  %vm881_vm10 = vmor %vm879_vm6, %vm880_vm9 }
 0x25a   :  { %v1638_v19 = vclamps-f32 %v848_v26, 1.0  ;;  %v910_v22 = vmul.f32 %v909_v15, %v2252_v42  ;;  %v1186_v29 = vmul.f32 %v1185_v44, %v2268_v52  ;;  %v886_v59 = vor.u32 1.1754944e-38, %v885_v53 }
 0x25b   :  { %v877_v46 = vmul.f32 %v1762_v62, %v876_v13  ;;  %v901_v47 = vmul.f32 %v900_v0, %v2252_v42  ;;  %v1178_v3 = vadd.f32 0.05243302, %v1177_v51  ;;  %v746_v4 = vmul.f32 %v2139_v21, %v726_v60  ;;  %v1484_v0 = vld [vmem:[%s3043_s2 + $0x8] sm:$0xff] }
 0x25c   :  { %v1451_v50 = vadd.f32 1.0, %v1638_v19  ;;  %v911_v63 = vadd.f32 0.4994258, %v910_v22  ;;  %v1764_v35 = vpop.eup %1763  ;;  %v1187_v20 = vadd.f32 0.014752088, %v1186_v29  ;;  %v665_v17 = vmul.f32 %v2245_v54, %v664_v1 }
 0x25d   :  { %v878_v61 = vadd.f32 %v1762_v62, %v877_v46  ;;  %v1142_v6 = vadd.f32 1.1283791, %v1141_v34  ;;  %v1155_v9 = vmul.f32 %v1764_v35, %v2294_v7  ;;  %v1163_v5 = vand.u32 2147483647, %v2294_v7  ;;  %v508_v46 = vpop.xlane.xlu2 %507 }
 0x25e   :  { %v1467_v56 = vmul.f32 %v1451_v50, %v2237_v18  ;;  %v912_v18 = vmul.f32 %v911_v63, %v2252_v42  ;;  %v1165_v32 = vand.u32 2147483648, %v2294_v7  ;;  %v902_v13 = vadd.f32 1.1283791, %v901_v47 }
 0x25f   :  { %v882_v2 = vsel %vm881_vm10, %v1762_v62, %v878_v61  ;;  %v1156_v53 = vsub.f32 1.0, %v1155_v9  ;;  %v1188_v62 = vmul.f32 %v1187_v20, %v2268_v52  ;;  %v1179_v27 = vmul.f32 %v1178_v3, %v2268_v52 }
 0x260   :  { %v2335_v16 = vadd.f32 %v1483_v41, %v1467_v56  ;;  %v887_v24 = vsel %vm2302_vm7, %v886_v59, %v882_v2  ;;  %v2347_v38 = vadd.f32 1.0, %v912_v18  ;;  %v2351_v42 = vadd.f32 %v2144_v30, %v746_v4 }
 0x261   :  { %v888_v26 = vmul.f32 %v887_v24, %v863_v28  ;;  %v1157_v28 = vmul.f32 %v1764_v35, %v1156_v53  ;;  %vm1160_vm12 = vweird.f32 %v1764_v35  ;;  %v1189_v15 = vadd.f32 0.112945676, %v1188_v62 }
 0x262   :  { %1515 = vst [vmem:[%s3044_s7] sm:$0xff] %v2335_v16  ;;  %v1143_v45 = vmul.f32 %v1142_v6, %v2189_v37  ;;  %vm1159_vm13 = vweird.f32 %v2294_v7  ;;  %1765 = vrcp.f32 %v2347_v38  ;;  %v666_v19 = vmul.f32 0.5, %v665_v17 }
 0x263   :  { %v1639_v1 = vclamps-f32 %v888_v26, 1.0  ;;  %v1158_v43 = vadd.f32 %v1764_v35, %v1157_v28  ;;  %vm1164_vm14 = vcmp.eq.f32.partialorder %v1163_v5, 8.507059e+37  ;;  %v1190_v44 = vmul.f32 %v1189_v15, %v2268_v52  ;;  %vm1161_vm15 = vmor %vm1159_vm13, %vm1160_vm12 }
 0x264   :  { %v1166_v22 = vor.u32 1.1754944e-38, %v1165_v32  ;;  %v2362_v50 = vmul.f32 %v902_v13, %v2223_v10  ;;  %v1180_v37 = vadd.f32 0.18741608, %v1179_v27  ;;  %v2365_v7 = vmul.f32 0.70710677, %v2351_v42 }
 0x265   :  { %v1452_v34 = vadd.f32 1.0, %v1639_v1  ;;  %v1162_v29 = vsel %vm1161_vm15, %v1764_v35, %v1158_v43  ;;  %v1191_v60 = vadd.f32 0.4994258, %v1190_v44  ;;  %v667_v59 = vsub.f32 1.5, %v666_v19 }
 0x266   :  { %v1167_v41 = vsel %vm1164_vm14, %v1166_v22, %v1162_v29  ;;  %v931_v61 = vmul.f32 %v2365_v7, %v2365_v7  ;;  %v535_v47 = vmul.f32 0.03125, %v508_v46  ;;  %vm919_vm1 = vweird.f32 %v2347_v38  ;;  %v524_v29 = vpop.xlane.xlu1 %523 }
 0x267   :  { %v1468_v51 = vmul.f32 %v1452_v34, %v2241_v58  ;;  %v1168_v56 = vmul.f32 %v1167_v41, %v1143_v45  ;;  %v923_v10 = vand.u32 2147483647, %v2347_v38  ;;  %v1192_v3 = vmul.f32 %v1191_v60, %v2268_v52 }
 0x268   :  { %v1766_v20 = vpop.eup %1765  ;;  %v1181_v58 = vmul.f32 %v1180_v37, %v2268_v52  ;;  %v2375_v35 = vmin.f32 %v931_v61, 16.0  ;;  %v668_v4 = vmul.f32 %v2245_v54, %v667_v59  ;;  %v2378_v2 = vadd.f32 1e-05, %v535_v47  ;;  %v522_v52 = vpop.xlane.xlu0 %521 }
 0x269   :  { %v1500_v63 = vadd.f32 %v1484_v0, %v1468_v51  ;;  %v1646_v9 = vclamps-f32 %v1168_v56, 1.0  ;;  %v915_v5 = vmul.f32 %v1766_v20, %v2347_v38  ;;  %v925_v24 = vand.u32 2147483648, %v2347_v38 }
 0x26a   :  { %v2390_v18 = vadd.f32 1.0, %v1192_v3  ;;  %v933_v17 = vmul.f32 2.1237322e-06, %v2375_v35  ;;  %v944_v26 = vmul.f32 3.8918573e-05, %v2375_v35  ;;  %v672_v53 = vsel %vm671_vm2, %v2245_v54, %v668_v4 }
 0x26b   :  { %1516 = vst [vmem:[%s3044_s7 + $0x8] sm:$0xff] %v1500_v63  ;;  %v1673_v6 = vpack.c.bf16 %v1500_v63, %v2335_v16  ;;  %v1459_v16 = vadd.f32 1.0, %v1646_v9  ;;  %v916_v32 = vsub.f32 1.0, %v915_v5  ;;  %v733_v62 = vmul.f32 %v672_v53, %v2078_v11 }
 0x26c   :  { %1767 = vrsqrt.f32 %v2378_v2  ;;  %vm920_vm3 = vweird.f32 %v1766_v20  ;;  %v1182_v13 = vadd.f32 1.1283791, %v1181_v58  ;;  %v542_v27 = vmul.f32 0.03125, %v522_v52 }
 0x26d   :  { %1674 = vst [vmem:[%s3045_s8] sm:$0xff] %v1673_v6   ;;  %1769 = vrcp.f32 %v2390_v18  ;;  %v1475_v54 = vmul.f32 %v1459_v16, %v2248_v55  ;;  %v917_v1 = vmul.f32 %v1766_v20, %v916_v32  ;;  %v934_v28 = vadd.f32 0.00028619796, %v933_v17  ;;  %vm921_vm5 = vmor %vm919_vm1, %vm920_vm3 }
 0x26e   :  { %v945_v15 = vadd.f32 0.001143296, %v944_v26  ;;  %vm2405_vm4 = vcmp.eq.f32.partialorder %v923_v10, 8.507059e+37  ;;  %v926_v11 = vor.u32 1.1754944e-38, %v925_v24  ;;  %v1205_v19 = vand.u32 2147483648, %v2390_v18 }
 0x26f   :  { %v753_v34 = vmul.f32 %v2139_v21, %v733_v62  ;;  %v2411_v43 = vadd.f32 %v1491_v33, %v1475_v54  ;;  %v918_v44 = vadd.f32 %v1766_v20, %v917_v1  ;;  %v935_v46 = vmul.f32 %v934_v28, %v2375_v35  ;;  %v1485_v33 = vld [vmem:[%s3043_s2 + $0x10] sm:$0xff] }
 0x270   :  { %v946_v0 = vmul.f32 %v945_v15, %v2375_v35  ;;  %v1183_v55 = vmul.f32 %v1182_v13, %v2234_v40  ;;  %v1203_v22 = vand.u32 2147483647, %v2390_v18  ;;  %v2423_v51 = vadd.f32 1e-05, %v542_v27 }
 0x271   :  { %v2421_v37 = vadd.f32 %v2144_v30, %v753_v34  ;;  %1523 = vst [vmem:[%s3044_s7 + $0x40] sm:$0xff] %v2411_v43  ;;  %v922_v41 = vsel %vm921_vm5, %v1766_v20, %v918_v44  ;;  %vm1199_vm6 = vweird.f32 %v2390_v18  ;;  %v936_v38 = vadd.f32 0.0036580483, %v935_v46 }
 0x272   :  { %v2425_v60 = vpop.eup %1767  ;;  %v947_v40 = vadd.f32 0.014752088, %v946_v0  ;;  %v927_v59 = vsel %vm2405_vm4, %v926_v11, %v922_v41  ;;  %v1206_v47 = vor.u32 1.1754944e-38, %v1205_v19  ;;  %v543_v58 = vmul.f32 0.03125, %v524_v29 }
 0x273   :  { %v1770_v61 = vpop.eup %1769  ;;  %v2435_v63 = vmul.f32 0.70710677, %v2421_v37  ;;  %v604_v56 = vmul.f32 %v2425_v60, %v2378_v2  ;;  %v928_v10 = vmul.f32 %v927_v59, %v2362_v50  ;;  %v937_v20 = vmul.f32 %v936_v38, %v2375_v35  ;;  %v510_v59 = vpop.xlane.xlu0 %509 }
 0x274   :  { %v1195_v3 = vmul.f32 %v1770_v61, %v2390_v18  ;;  %vm1200_vm7 = vweird.f32 %v1770_v61  ;;  %v948_v4 = vmul.f32 %v947_v40, %v2375_v35  ;;  %1771 = vrsqrt.f32 %v2423_v51 }
 0x275   :  { %v1211_v6 = vmul.f32 %v2435_v63, %v2435_v63  ;;  %v605_v9 = vmul.f32 %v2425_v60, %v604_v56  ;;  %v1640_v5 = vclamps-f32 %v928_v10, 1.0  ;;  %v938_v52 = vadd.f32 0.05243302, %v937_v20  ;;  %vm1201_vm9 = vmor %vm1199_vm6, %vm1200_vm7 }
 0x276   :  { %v1196_v24 = vsub.f32 1.0, %v1195_v3  ;;  %v949_v17 = vadd.f32 0.112945676, %v948_v4  ;;  %vm610_vm8 = vweird.f32 %v2425_v60  ;;  %v2451_v62 = vadd.f32 1e-05, %v543_v58 }
 0x277   :  { %v2447_v50 = vmin.f32 %v1211_v6, 16.0  ;;  %v606_v26 = vmul.f32 0.5, %v605_v9  ;;  %v1453_v53 = vadd.f32 1.0, %v1640_v5  ;;  %v939_v32 = vmul.f32 %v938_v52, %v2375_v35 }
 0x278   :  { %v1197_v16 = vmul.f32 %v1770_v61, %v1196_v24  ;;  %v950_v13 = vmul.f32 %v949_v17, %v2375_v35  ;;  %1773 = vrsqrt.f32 %v2451_v62  ;;  %vm1204_vm10 = vcmp.eq.f32.partialorder %v1203_v22, 8.507059e+37 }
 0x279   :  { %v1213_v27 = vmul.f32 2.1237322e-06, %v2447_v50  ;;  %v1224_v54 = vmul.f32 3.8918573e-05, %v2447_v50  ;;  %v607_v1 = vsub.f32 1.5, %v606_v26  ;;  %v1469_v28 = vmul.f32 %v1453_v53, %v2250_v25 }
 0x27a   :  { %v1198_v15 = vadd.f32 %v1770_v61, %v1197_v16  ;;  %v940_v45 = vadd.f32 0.18741608, %v939_v32  ;;  %v951_v11 = vadd.f32 0.4994258, %v950_v13  ;;  %v2465_v46 = vpop.eup %1771  ;;  %vm609_vm11 = vweird.f32 %v2378_v2 }
 0x27b   :  { %v1214_v19 = vadd.f32 0.00028619796, %v1213_v27  ;;  %v1225_v34 = vadd.f32 0.001143296, %v1224_v54  ;;  %v608_v44 = vmul.f32 %v2425_v60, %v607_v1  ;;  %v2467_v0 = vadd.f32 %v1485_v33, %v1469_v28  ;;  %vm611_vm12 = vmor %vm609_vm11, %vm610_vm8 }
 0x27c   :  { %v1202_v29 = vsel %vm1201_vm9, %v1770_v61, %v1198_v15  ;;  %v952_v41 = vmul.f32 %v951_v11, %v2375_v35  ;;  %v941_v22 = vmul.f32 %v940_v45, %v2375_v35  ;;  %v674_v61 = vmul.f32 %v2465_v46, %v2423_v51 }
 0x27d   :  { %v1207_v25 = vsel %vm1204_vm10, %v1206_v47, %v1202_v29  ;;  %v1215_v38 = vmul.f32 %v1214_v19, %v2447_v50  ;;  %v1226_v18 = vmul.f32 %v1225_v34, %v2447_v50  ;;  %1517 = vst [vmem:[%s3044_s7 + $0x10] sm:$0xff] %v2467_v0  ;;  %v612_v2 = vsel %vm611_vm12, %v2425_v60, %v608_v44 }
 0x27e   :  { %v1208_v40 = vmul.f32 %v1207_v25, %v1183_v55  ;;  %v2483_v47 = vadd.f32 1.0, %v952_v41  ;;  %v727_v3 = vmul.f32 %v612_v2, %v2085_v8  ;;  %v2486_v20 = vpop.eup %1773  ;;  %v675_v4 = vmul.f32 %v2465_v46, %v674_v61  ;;  %v1492_v8 = vld [vmem:[%s3043_s2 + $0x48] sm:$0xff] }
 0x27f   :  { %v1216_v56 = vadd.f32 0.0036580483, %v1215_v38  ;;  %v1227_v10 = vadd.f32 0.014752088, %v1226_v18  ;;  %v788_v55 = vmul.f32 0.5, %v2217_v12  ;;  %v536_v35 = vmul.f32 0.03125, %v510_v59 }
 0x280   :  { %v1647_v58 = vclamps-f32 %v1208_v40, 1.0  ;;  %1775 = vrcp.f32 %v2483_v47  ;;  %v747_v5 = vmul.f32 %v2139_v21, %v727_v3  ;;  %v2498_v24 = vmul.f32 0.5, %v2351_v42 }
 0x281   :  { %v1217_v6 = vmul.f32 %v1216_v56, %v2447_v50  ;;  %v1228_v9 = vmul.f32 %v1227_v10, %v2447_v50  ;;  %v942_v52 = vadd.f32 1.1283791, %v941_v22  ;;  %v676_v17 = vmul.f32 0.5, %v675_v4 }
 0x282   :  { %v1460_v60 = vadd.f32 1.0, %v1647_v58  ;;  %v684_v12 = vmul.f32 %v2486_v20, %v2451_v62  ;;  %v2503_v32 = vadd.f32 %v2144_v30, %v747_v5  ;;  %vm679_vm13 = vweird.f32 %v2423_v51 }
 0x283   :  { %v1218_v53 = vadd.f32 0.05243302, %v1217_v6  ;;  %v1229_v16 = vadd.f32 0.112945676, %v1228_v9  ;;  %v677_v33 = vsub.f32 1.5, %v676_v17  ;;  %vm680_vm14 = vweird.f32 %v2465_v46 }
 0x284   :  { %v1476_v26 = vmul.f32 %v1460_v60, %v788_v55  ;;  %v685_v13 = vmul.f32 %v2486_v20, %v684_v12  ;;  %vm689_vm15 = vweird.f32 %v2451_v62  ;;  %v2510_v54 = vadd.f32 1e-05, %v536_v35  ;;  %vm681_vm0 = vmor %vm679_vm13, %vm680_vm14 }
 0x285   :  { %v1230_v27 = vmul.f32 %v1229_v16, %v2447_v50  ;;  %v943_v28 = vmul.f32 %v942_v52, %v2365_v7  ;;  %v2514_v15 = vmul.f32 0.70710677, %v2503_v32  ;;  %v678_v45 = vmul.f32 %v2465_v46, %v677_v33 }
 0x286   :  { %v1508_v42 = vadd.f32 %v1492_v8, %v1476_v26  ;;  %v1776_v1 = vpop.eup %1775  ;;  %v686_v11 = vmul.f32 0.5, %v685_v13  ;;  %v1219_v44 = vmul.f32 %v1218_v53, %v2447_v50  ;;  %vm690_vm1 = vweird.f32 %v2486_v20 }
 0x287   :  { %v955_v34 = vmul.f32 %v1776_v1, %v2483_v47  ;;  %v1231_v7 = vadd.f32 0.4994258, %v1230_v27  ;;  %v971_v29 = vmul.f32 %v2514_v15, %v2514_v15  ;;  %v682_v25 = vsel %vm681_vm0, %v2465_v46, %v678_v45  ;;  %vm691_vm3 = vmor %vm689_vm15, %vm690_vm1 }
 0x288   :  { %1524 = vst [vmem:[%s3044_s7 + $0x48] sm:$0xff] %v1508_v42  ;;  %v1693_v19 = vpack.c.bf16 %v1508_v42, %v2411_v43  ;;  %v687_v41 = vsub.f32 1.5, %v686_v11  ;;  %v963_v38 = vand.u32 2147483647, %v2483_v47  ;;  %v734_v18 = vmul.f32 %v682_v25, %v2088_v23  ;;  %v512_v23 = vpop.xlane.xlu1 %511 }
 0x289   :  { %v956_v43 = vsub.f32 1.0, %v955_v34  ;;  %1777 = vrsqrt.f32 %v2510_v54  ;;  %v965_v51 = vand.u32 2147483648, %v2483_v47  ;;  %v1232_v40 = vmul.f32 %v1231_v7, %v2447_v50  ;;  %v528_v7 = vpop.xlane.xlu0 %527 }
 0x28a   :  { %1713 = vst [vmem:[%s3045_s8 + $0x20] sm:$0xff] %v1693_v19   ;;  %v2539_v22 = vmin.f32 %v971_v29, 16.0  ;;  %v688_v46 = vmul.f32 %v2486_v20, %v687_v41  ;;  %vm960_vm2 = vweird.f32 %v1776_v1  ;;  %v1220_v61 = vadd.f32 0.18741608, %v1219_v44 }
 0x28b   :  { %v957_v2 = vmul.f32 %v1776_v1, %v956_v43  ;;  %v754_v59 = vmul.f32 %v2139_v21, %v734_v18  ;;  %v2547_v56 = vadd.f32 1.0, %v1232_v40  ;;  %vm959_vm4 = vweird.f32 %v2483_v47 }
 0x28c   :  { %v973_v10 = vmul.f32 2.1237322e-06, %v2539_v22  ;;  %v984_v3 = vmul.f32 3.8918573e-05, %v2539_v22  ;;  %v692_v58 = vsel %vm691_vm3, %v2486_v20, %v688_v46  ;;  %vm961_vm5 = vmor %vm959_vm4, %vm960_vm2  ;;  %vm964_vm6 = vcmp.eq.f32.partialorder %v963_v38, 8.507059e+37 }
 0x28d   :  { %v958_v4 = vadd.f32 %v1776_v1, %v957_v2  ;;  %v2554_v55 = vadd.f32 %v2144_v30, %v754_v59  ;;  %v735_v35 = vmul.f32 %v692_v58, %v2096_v14  ;;  %v966_v62 = vor.u32 1.1754944e-38, %v965_v51 }
 0x28e   :  { %1779 = vrcp.f32 %v2547_v56  ;;  %v537_v60 = vmul.f32 0.03125, %v512_v23  ;;  %v1221_v5 = vmul.f32 %v1220_v61, %v2447_v50  ;;  %v974_v20 = vadd.f32 0.00028619796, %v973_v10 }
 0x28f   :  { %v2558_v6 = vpop.eup %1777  ;;  %v962_v9 = vsel %vm961_vm5, %v1776_v1, %v958_v4  ;;  %v985_v8 = vadd.f32 0.001143296, %v984_v3  ;;  %v1243_v47 = vand.u32 2147483647, %v2547_v56  ;;  %v1245_v17 = vand.u32 2147483648, %v2547_v56 }
 0x290   :  { %v967_v52 = vsel %vm964_vm6, %v966_v62, %v962_v9  ;;  %v2564_v14 = vmul.f32 0.70710677, %v2554_v55  ;;  %v975_v26 = vmul.f32 %v974_v20, %v2539_v22  ;;  %v755_v16 = vmul.f32 %v2139_v21, %v735_v35 }
 0x291   :  { %v968_v12 = vmul.f32 %v967_v52, %v943_v28  ;;  %v986_v53 = vmul.f32 %v985_v8, %v2539_v22  ;;  %v2570_v33 = vmul.f32 0.5, %v2421_v37  ;;  %v614_v13 = vmul.f32 %v2558_v6, %v2510_v54 }
 0x292   :  { %v1251_v50 = vmul.f32 %v2564_v14, %v2564_v14  ;;  %v2576_v42 = vadd.f32 1e-05, %v537_v60  ;;  %v976_v1 = vadd.f32 0.0036580483, %v975_v26  ;;  %v2579_v45 = vadd.f32 %v2144_v30, %v755_v16  ;;  %v1486_v30 = vld [vmem:[%s3043_s2 + $0x18] sm:$0xff] }
 0x293   :  { %v1641_v27 = vclamps-f32 %v968_v12, 1.0  ;;  %v987_v28 = vadd.f32 0.014752088, %v986_v53  ;;  %v1222_v19 = vadd.f32 1.1283791, %v1221_v5  ;;  %vm1239_vm7 = vweird.f32 %v2547_v56 }
 0x294   :  { %v1780_v11 = vpop.eup %1779  ;;  %v1246_v21 = vor.u32 1.1754944e-38, %v1245_v17  ;;  %v2582_v37 = vmin.f32 %v1251_v50, 16.0  ;;  %vm2585_vm8 = vcmp.eq.f32.partialorder %v1243_v47, 8.507059e+37  ;;  %v977_v29 = vmul.f32 %v976_v1, %v2539_v22 }
 0x295   :  { %v1454_v34 = vadd.f32 1.0, %v1641_v27  ;;  %v1235_v44 = vmul.f32 %v1780_v11, %v2547_v56  ;;  %v615_v25 = vmul.f32 %v2558_v6, %v614_v13  ;;  %v988_v41 = vmul.f32 %v987_v28, %v2539_v22 }
 0x296   :  { %v1253_v43 = vmul.f32 2.1237322e-06, %v2582_v37  ;;  %v1264_v38 = vmul.f32 3.8918573e-05, %v2582_v37  ;;  %1781 = vrsqrt.f32 %v2576_v42  ;;  %v978_v40 = vadd.f32 0.05243302, %v977_v29 }
 0x297   :  { %v1470_v18 = vmul.f32 %v1454_v34, %v2498_v24  ;;  %v1236_v51 = vsub.f32 1.0, %v1235_v44  ;;  %v2600_v46 = vmul.f32 0.70710677, %v2579_v45  ;;  %vm1240_vm9 = vweird.f32 %v1780_v11 }
 0x298   :  { %v989_v2 = vadd.f32 0.112945676, %v988_v41  ;;  %v1254_v61 = vadd.f32 0.00028619796, %v1253_v43  ;;  %v1265_v59 = vadd.f32 0.001143296, %v1264_v38  ;;  %v979_v3 = vmul.f32 %v978_v40, %v2539_v22  ;;  %vm1241_vm10 = vmor %vm1239_vm7, %vm1240_vm9 }
 0x299   :  { %v1502_v23 = vadd.f32 %v1486_v30, %v1470_v18  ;;  %v1237_v10 = vmul.f32 %v1780_v11, %v1236_v51  ;;  %v1291_v58 = vmul.f32 %v2600_v46, %v2600_v46  ;;  %v616_v62 = vmul.f32 0.5, %v615_v25  ;;  %v1493_v51 = vld [vmem:[%s3043_s2 + $0x50] sm:$0xff] }
 0x29a   :  { %v990_v4 = vmul.f32 %v989_v2, %v2539_v22  ;;  %v1255_v24 = vmul.f32 %v1254_v61, %v2582_v37  ;;  %v1266_v35 = vmul.f32 %v1265_v59, %v2582_v37  ;;  %v980_v5 = vadd.f32 0.18741608, %v979_v3 }
 0x29b   :  { %1518 = vst [vmem:[%s3044_s7 + $0x18] sm:$0xff] %v1502_v23  ;;  %v1678_v60 = vpack.c.bf16 %v1502_v23, %v2467_v0  ;;  %v1238_v9 = vadd.f32 %v1780_v11, %v1237_v10  ;;  %v2612_v20 = vmin.f32 %v1291_v58, 16.0  ;;  %v1223_v52 = vmul.f32 %v1222_v19, %v2435_v63 }
 0x29c   :  { %v2614_v8 = vpop.eup %1781  ;;  %v991_v47 = vadd.f32 0.4994258, %v990_v4  ;;  %v1256_v17 = vadd.f32 0.0036580483, %v1255_v24  ;;  %v1267_v12 = vadd.f32 0.014752088, %v1266_v35  ;;  %v981_v26 = vmul.f32 %v980_v5, %v2539_v22 }
 0x29d   :  { %1710 = vst [vmem:[%s3045_s8 + $0x8] sm:$0xff] %v1678_v60   ;;  %v1242_v0 = vsel %vm1241_vm10, %v1780_v11, %v1238_v9  ;;  %v1293_v53 = vmul.f32 2.1237322e-06, %v2612_v20  ;;  %v1304_v16 = vmul.f32 3.8918573e-05, %v2612_v20  ;;  %v2632_v1 = vmul.f32 0.5, %v2503_v32 }
 0x29e   :  { %v1247_v63 = vsel %vm2585_vm8, %v1246_v21, %v1242_v0  ;;  %v992_v56 = vmul.f32 %v991_v47, %v2539_v22  ;;  %v1257_v50 = vmul.f32 %v1256_v17, %v2582_v37  ;;  %v1268_v13 = vmul.f32 %v1267_v12, %v2582_v37  ;;  %v514_v17 = vpop.xlane.xlu2 %513 }
 0x29f   :  { %v1248_v27 = vmul.f32 %v1247_v63, %v1223_v52  ;;  %v1294_v28 = vadd.f32 0.00028619796, %v1293_v53  ;;  %v1305_v11 = vadd.f32 0.001143296, %v1304_v16  ;;  %v617_v29 = vsub.f32 1.5, %v616_v62 }
 0x2a0   :  { %v2634_v19 = vadd.f32 1.0, %v992_v56  ;;  %v1258_v34 = vadd.f32 0.05243302, %v1257_v50  ;;  %v1269_v44 = vadd.f32 0.112945676, %v1268_v13  ;;  %vm619_vm11 = vweird.f32 %v2510_v54 }
 0x2a1   :  { %v1648_v25 = vclamps-f32 %v1248_v27, 1.0  ;;  %v1295_v21 = vmul.f32 %v1294_v28, %v2612_v20  ;;  %v1306_v22 = vmul.f32 %v1305_v11, %v2612_v20  ;;  %v982_v30 = vadd.f32 1.1283791, %v981_v26  ;;  %v2692_v27 = vld [vmem:[%s3042_s6] ss:$0 sm:$0xff] }
 0x2a2   :  { %1783 = vrcp.f32 %v2634_v19  ;;  %vm620_vm12 = vweird.f32 %v2558_v6  ;;  %v624_v32 = vmul.f32 %v2614_v8, %v2576_v42  ;;  %v1259_v43 = vmul.f32 %v1258_v34, %v2582_v37 }
 0x2a3   :  { %v1461_v41 = vadd.f32 1.0, %v1648_v25  ;;  %v1270_v38 = vmul.f32 %v1269_v44, %v2582_v37  ;;  %v1296_v18 = vadd.f32 0.0036580483, %v1295_v21  ;;  %v2649_v40 = vmul.f32 0.5, %v2554_v55  ;;  %vm621_vm13 = vmor %vm619_vm11, %vm620_vm12 }
 0x2a4   :  { %v1307_v2 = vadd.f32 0.014752088, %v1306_v22  ;;  %v618_v61 = vmul.f32 %v2558_v6, %v617_v29  ;;  %v545_v59 = vmul.f32 0.03125, %v528_v7  ;;  %v1260_v10 = vadd.f32 0.18741608, %v1259_v43 }
 0x2a5   :  { %v1477_v23 = vmul.f32 %v1461_v41, %v2570_v33  ;;  %v1271_v3 = vadd.f32 0.4994258, %v1270_v38  ;;  %v1297_v58 = vmul.f32 %v1296_v18, %v2612_v20  ;;  %v625_v24 = vmul.f32 %v2614_v8, %v624_v32 }
 0x2a6   :  { %v1308_v4 = vmul.f32 %v1307_v2, %v2612_v20  ;;  %v622_v55 = vsel %vm621_vm13, %v2558_v6, %v618_v61  ;;  %vm629_vm14 = vweird.f32 %v2576_v42  ;;  %v983_v33 = vmul.f32 %v982_v30, %v2514_v15 }
 0x2a7   :  { %v2662_v35 = vadd.f32 %v1493_v51, %v1477_v23  ;;  %v1272_v62 = vmul.f32 %v1271_v3, %v2582_v37  ;;  %v1298_v60 = vadd.f32 0.05243302, %v1297_v58  ;;  %v1261_v5 = vmul.f32 %v1260_v10, %v2582_v37 }
 0x2a8   :  { %v1784_v9 = vpop.eup %1783  ;;  %v1309_v54 = vadd.f32 0.112945676, %v1308_v4  ;;  %v728_v52 = vmul.f32 %v622_v55, %v2102_v36  ;;  %v626_v47 = vmul.f32 0.5, %v625_v24  ;;  %v1003_v15 = vand.u32 2147483647, %v2634_v19 }
 0x2a9   :  { %1525 = vst [vmem:[%s3044_s7 + $0x50] sm:$0xff] %v2662_v35  ;;  %v995_v6 = vmul.f32 %v1784_v9, %v2634_v19  ;;  %v2674_v12 = vadd.f32 1.0, %v1272_v62  ;;  %v2676_v0 = vadd.f32 1e-05, %v545_v59  ;;  %v1299_v37 = vmul.f32 %v1298_v60, %v2612_v20  ;;  %v2683_v36 = vld [vmem:[%s3041_s5] ss:$0 sm:$0xff] }
 0x2aa   :  { %v1310_v26 = vmul.f32 %v1309_v54, %v2612_v20  ;;  %v748_v53 = vmul.f32 %v2683_v36, %v728_v52  ;;  %v627_v16 = vsub.f32 1.5, %v626_v47  ;;  %v1005_v56 = vand.u32 2147483648, %v2634_v19 }
 0x2ab   :  { %v996_v63 = vsub.f32 1.0, %v995_v6  ;;  %1785 = vrcp.f32 %v2674_v12  ;;  %vm630_vm15 = vweird.f32 %v2614_v8  ;;  %vm1000_vm0 = vweird.f32 %v1784_v9  ;;  %v1487_v6 = vld [vmem:[%s3043_s2 + $0x20] sm:$0xff] }
 0x2ac   :  { %v1262_v50 = vadd.f32 1.1283791, %v1261_v5  ;;  %v1300_v13 = vadd.f32 0.18741608, %v1299_v37  ;;  %v2695_v28 = vadd.f32 %v2692_v27, %v748_v53  ;;  %v1311_v34 = vadd.f32 0.4994258, %v1310_v26  ;;  %vm631_vm2 = vmor %vm629_vm14, %vm630_vm15 }
 0x2ad   :  { %v997_v11 = vmul.f32 %v1784_v9, %v996_v63  ;;  %v628_v44 = vmul.f32 %v2614_v8, %v627_v16  ;;  %1787 = vrsqrt.f32 %v2676_v0  ;;  %vm999_vm1 = vweird.f32 %v2634_v19 }
 0x2ae   :  { %v1283_v29 = vand.u32 2147483647, %v2674_v12  ;;  %v1285_v25 = vand.u32 2147483648, %v2674_v12  ;;  %v1301_v21 = vmul.f32 %v1300_v13, %v2612_v20  ;;  %v1312_v7 = vmul.f32 %v1311_v34, %v2612_v20  ;;  %vm1001_vm3 = vmor %vm999_vm1, %vm1000_vm0 }
 0x2af   :  { %v998_v22 = vadd.f32 %v1784_v9, %v997_v11  ;;  %v2707_v30 = vmul.f32 0.70710677, %v2695_v28  ;;  %v632_v32 = vsel %vm631_vm2, %v2614_v8, %v628_v44  ;;  %vm1004_vm4 = vcmp.eq.f32.partialorder %v1003_v15, 8.507059e+37 }
 0x2b0   :  { %v1006_v19 = vor.u32 1.1754944e-38, %v1005_v56  ;;  %v1263_v41 = vmul.f32 %v1262_v50, %v2564_v14  ;;  %v729_v43 = vmul.f32 %v632_v32, %v2108_v39  ;;  %vm1279_vm5 = vweird.f32 %v2674_v12  ;;  %v526_v14 = vpop.xlane.xlu2 %525 }
 0x2b1   :  { %v1786_v38 = vpop.eup %1785  ;;  %v1002_v18 = vsel %vm1001_vm3, %v1784_v9, %v998_v22  ;;  %v2714_v42 = vadd.f32 1.0, %v1312_v7  ;;  %v1011_v20 = vmul.f32 %v2707_v30, %v2707_v30  ;;  %vm2719_vm6 = vcmp.eq.f32.partialorder %v1283_v29, 8.507059e+37 }
 0x2b2   :  { %v1007_v51 = vsel %vm1004_vm4, %v1006_v19, %v1002_v18  ;;  %v1275_v8 = vmul.f32 %v1786_v38, %v2674_v12  ;;  %v1286_v61 = vor.u32 1.1754944e-38, %v1285_v25  ;;  %v2725_v23 = vadd.f32 1.1283791, %v1301_v21 }
 0x2b3   :  { %v2723_v59 = vpop.eup %1787  ;;  %v1008_v39 = vmul.f32 %v1007_v51, %v983_v33  ;;  %1789 = vrcp.f32 %v2714_v42  ;;  %v538_v10 = vmul.f32 0.03125, %v514_v17  ;;  %v1325_v58 = vand.u32 2147483648, %v2714_v42 }
 0x2b4   :  { %v1276_v3 = vsub.f32 1.0, %v1275_v8  ;;  %v2729_v4 = vmin.f32 %v1011_v20, 16.0  ;;  %v749_v55 = vmul.f32 %v2683_v36, %v729_v43  ;;  %vm1280_vm7 = vweird.f32 %v1786_v38 }
 0x2b5   :  { %v1642_v24 = vclamps-f32 %v1008_v39, 1.0  ;;  %v704_v62 = vmul.f32 %v2723_v59, %v2676_v0  ;;  %v544_v60 = vmul.f32 0.03125, %v526_v14  ;;  %v1323_v33 = vand.u32 2147483647, %v2714_v42  ;;  %vm1281_vm11 = vmor %vm1279_vm5, %vm1280_vm7  ;;  %v1494_v14 = vld [vmem:[%s3043_s2 + $0x58] sm:$0xff] }
 0x2b6   :  { %v1277_v9 = vmul.f32 %v1786_v38, %v1276_v3  ;;  %v1013_v5 = vmul.f32 2.1237322e-06, %v2729_v4  ;;  %v1024_v54 = vmul.f32 3.8918573e-05, %v2729_v4  ;;  %vm709_vm8 = vweird.f32 %v2676_v0 }
 0x2b7   :  { %v1455_v52 = vadd.f32 1.0, %v1642_v24  ;;  %v2739_v47 = vadd.f32 %v2692_v27, %v749_v55  ;;  %v705_v17 = vmul.f32 %v2723_v59, %v704_v62  ;;  %vm710_vm9 = vweird.f32 %v2723_v59 }
 0x2b8   :  { %v1278_v15 = vadd.f32 %v1786_v38, %v1277_v9  ;;  %vm1319_vm10 = vweird.f32 %v2714_v42  ;;  %v1326_v37 = vor.u32 1.1754944e-38, %v1325_v58  ;;  %v1014_v26 = vadd.f32 0.00028619796, %v1013_v5  ;;  %vm711_vm13 = vmor %vm709_vm8, %vm710_vm9 }
 0x2b9   :  { %v1025_v53 = vadd.f32 0.001143296, %v1024_v54  ;;  %v1790_v16 = vpop.eup %1789  ;;  %v1471_v63 = vmul.f32 %v1455_v52, %v2632_v1  ;;  %v2752_v56 = vmul.f32 0.70710677, %v2739_v47  ;;  %v706_v50 = vmul.f32 0.5, %v705_v17 }
 0x2ba   :  { %v2754_v13 = vadd.f32 1e-05, %v538_v10  ;;  %v1282_v11 = vsel %vm1281_vm11, %v1786_v38, %v1278_v15  ;;  %v1315_v34 = vmul.f32 %v1790_v16, %v2714_v42  ;;  %v1015_v44 = vmul.f32 %v1014_v26, %v2729_v4 }
 0x2bb   :  { %v2758_v29 = vadd.f32 1e-05, %v544_v60  ;;  %v2760_v25 = vadd.f32 %v1487_v6, %v1471_v63  ;;  %v1287_v1 = vsel %vm2719_vm6, %v1286_v61, %v1282_v11  ;;  %v1026_v12 = vmul.f32 %v1025_v53, %v2729_v4 }
 0x2bc   :  { %v1051_v21 = vmul.f32 %v2752_v56, %v2752_v56  ;;  %v1288_v22 = vmul.f32 %v1287_v1, %v1263_v41  ;;  %v1316_v7 = vsub.f32 1.0, %v1315_v34  ;;  %v1016_v32 = vadd.f32 0.0036580483, %v1015_v44 }
 0x2bd   :  { %v707_v19 = vsub.f32 1.5, %v706_v50  ;;  %1519 = vst [vmem:[%s3044_s7 + $0x20] sm:$0xff] %v2760_v25  ;;  %vm1320_vm12 = vweird.f32 %v1790_v16  ;;  %v1027_v43 = vadd.f32 0.014752088, %v1026_v12  ;;  %1791 = vrsqrt.f32 %v2754_v13 }
 0x2be   :  { %v2771_v38 = vmin.f32 %v1051_v21, 16.0  ;;  %v1649_v18 = vclamps-f32 %v1288_v22, 1.0  ;;  %v1317_v20 = vmul.f32 %v1790_v16, %v1316_v7  ;;  %v1017_v51 = vmul.f32 %v1016_v32, %v2729_v4  ;;  %vm1321_vm14 = vmor %vm1319_vm10, %vm1320_vm12 }
 0x2bf   :  { %v708_v41 = vmul.f32 %v2723_v59, %v707_v19  ;;  %v1028_v8 = vmul.f32 %v1027_v43, %v2729_v4  ;;  %1793 = vrsqrt.f32 %v2758_v29  ;;  %v1303_v9 = vmul.f32 %v2725_v23, %v2600_v46 }
 0x2c0   :  { %v1053_v2 = vmul.f32 2.1237322e-06, %v2771_v38  ;;  %v1064_v61 = vmul.f32 3.8918573e-05, %v2771_v38  ;;  %v1462_v39 = vadd.f32 1.0, %v1649_v18  ;;  %v1318_v10 = vadd.f32 %v1790_v16, %v1317_v20 }
 0x2c1   :  { %v1018_v3 = vadd.f32 0.05243302, %v1017_v51  ;;  %v712_v58 = vsel %vm711_vm13, %v2723_v59, %v708_v41  ;;  %v1029_v55 = vadd.f32 0.112945676, %v1028_v8  ;;  %vm1324_vm15 = vcmp.eq.f32.partialorder %v1323_v33, 8.507059e+37 }
 0x2c2   :  { %v1054_v24 = vadd.f32 0.00028619796, %v1053_v2  ;;  %v1065_v62 = vadd.f32 0.001143296, %v1064_v61  ;;  %v737_v0 = vmul.f32 %v712_v58, %v2115_v48  ;;  %v1478_v60 = vmul.f32 %v1462_v39, %v2649_v40  ;;  %v530_v2 = vpop.xlane.xlu1 %529 }
 0x2c3   :  { %v1322_v5 = vsel %vm1321_vm14, %v1790_v16, %v1318_v10  ;;  %v2795_v54 = vpop.eup %1791  ;;  %v1030_v59 = vmul.f32 %v1029_v55, %v2729_v4  ;;  %v1019_v48 = vmul.f32 %v1018_v3, %v2729_v4  ;;  %v791_v1 = vmul.f32 0.5, %v2579_v45 }
 0x2c4   :  { %v1327_v52 = vsel %vm1324_vm15, %v1326_v37, %v1322_v5  ;;  %v1055_v42 = vmul.f32 %v1054_v24, %v2771_v38  ;;  %v1066_v17 = vmul.f32 %v1065_v62, %v2771_v38  ;;  %v1510_v6 = vadd.f32 %v1494_v14, %v1478_v60 }
 0x2c5   :  { %v1328_v15 = vmul.f32 %v1327_v52, %v1303_v9  ;;  %v757_v40 = vmul.f32 %v2683_v36, %v737_v0  ;;  %v2802_v26 = vpop.eup %1793  ;;  %v1031_v46 = vadd.f32 0.4994258, %v1030_v59  ;;  %v634_v37 = vmul.f32 %v2795_v54, %v2754_v13 }
 0x2c6   :  { %v1056_v23 = vadd.f32 0.0036580483, %v1055_v42  ;;  %v1067_v33 = vadd.f32 0.014752088, %v1066_v17  ;;  %1526 = vst [vmem:[%s3044_s7 + $0x58] sm:$0xff] %v1510_v6  ;;  %v1698_v53 = vpack.c.bf16 %v1510_v6, %v2662_v35  ;;  %v1495_v35 = vld [vmem:[%s3043_s2 + $0x60] sm:$0xff]  ;;  %v694_v20 = vmul.f32 %v2802_v26, %v2758_v29 }
 0x2c7   :  { %v1650_v16 = vclamps-f32 %v1328_v15, 1.0  ;;  %v2811_v63 = vadd.f32 %v2692_v27, %v757_v40  ;;  %v1032_v50 = vmul.f32 %v1031_v46, %v2729_v4  ;;  %v635_v44 = vmul.f32 %v2795_v54, %v634_v37 }
 0x2c8   :  { %v1057_v11 = vmul.f32 %v1056_v23, %v2771_v38  ;;  %v1068_v34 = vmul.f32 %v1067_v33, %v2771_v38  ;;  %1714 = vst [vmem:[%s3045_s8 + $0x28] sm:$0xff] %v1698_v53   ;;  %v1020_v21 = vadd.f32 0.18741608, %v1019_v48  ;;  %vm640_vm0 = vweird.f32 %v2795_v54 }
 0x2c9   :  { %v1463_v12 = vadd.f32 1.0, %v1650_v16  ;;  %v2824_v22 = vadd.f32 1.0, %v1032_v50  ;;  %v636_v19 = vmul.f32 0.5, %v635_v44  ;;  %v2827_v18 = vmul.f32 0.70710677, %v2811_v63 }
 0x2ca   :  { %v1058_v7 = vadd.f32 0.05243302, %v1057_v11  ;;  %v1069_v32 = vadd.f32 0.112945676, %v1068_v34  ;;  %v1021_v45 = vmul.f32 %v1020_v21, %v2729_v4  ;;  %v695_v39 = vmul.f32 %v2802_v26, %v694_v20 }
 0x2cb   :  { %v1479_v43 = vmul.f32 %v1463_v12, %v791_v1  ;;  %1795 = vrcp.f32 %v2824_v22  ;;  %v1371_v8 = vmul.f32 %v2827_v18, %v2827_v18  ;;  %v637_v14 = vsub.f32 1.5, %v636_v19 }
 0x2cc   :  { %v1070_v41 = vmul.f32 %v1069_v32, %v2771_v38  ;;  %v1059_v61 = vmul.f32 %v1058_v7, %v2771_v38  ;;  %vm639_vm1 = vweird.f32 %v2754_v13  ;;  %v696_v58 = vmul.f32 0.5, %v695_v39 }
 0x2cd   :  { %v2832_v51 = vadd.f32 %v1495_v35, %v1479_v43  ;;  %v2845_v4 = vmin.f32 %v1371_v8, 16.0  ;;  %v638_v3 = vmul.f32 %v2795_v54, %v637_v14  ;;  %v546_v55 = vmul.f32 0.03125, %v530_v2  ;;  %vm641_vm2 = vmor %vm639_vm1, %vm640_vm0 }
 0x2ce   :  { %v1071_v10 = vadd.f32 0.4994258, %v1070_v41  ;;  %vm699_vm3 = vweird.f32 %v2758_v29  ;;  %v1022_v9 = vadd.f32 1.1283791, %v1021_v45  ;;  %v1060_v5 = vadd.f32 0.18741608, %v1059_v61 }
 0x2cf   :  { %1527 = vst [vmem:[%s3044_s7 + $0x60] sm:$0xff] %v2832_v51  ;;  %v1373_v62 = vmul.f32 2.1237322e-06, %v2845_v4  ;;  %v1384_v0 = vmul.f32 3.8918573e-05, %v2845_v4  ;;  %v642_v52 = vsel %vm641_vm2, %v2795_v54, %v638_v3  ;;  %v697_v59 = vsub.f32 1.5, %v696_v58 }
 0x2d0   :  { %v1072_v24 = vmul.f32 %v1071_v10, %v2771_v38  ;;  %vm700_vm4 = vweird.f32 %v2802_v26  ;;  %v2858_v17 = vadd.f32 1e-05, %v546_v55  ;;  %v730_v48 = vmul.f32 %v642_v52, %v2118_v49  ;;  %v1488_v52 = vld [vmem:[%s3043_s2 + $0x28] sm:$0xff] }
 0x2d1   :  { %v1796_v60 = vpop.eup %1795  ;;  %v1374_v6 = vadd.f32 0.00028619796, %v1373_v62  ;;  %v1385_v15 = vadd.f32 0.001143296, %v1384_v0  ;;  %v698_v40 = vmul.f32 %v2802_v26, %v697_v59  ;;  %v1043_v23 = vand.u32 2147483647, %v2824_v22  ;;  %vm701_vm6 = vmor %vm699_vm3, %vm700_vm4 }
 0x2d2   :  { %v1035_v42 = vmul.f32 %v1796_v60, %v2824_v22  ;;  %v2855_v13 = vadd.f32 1.0, %v1072_v24  ;;  %v1045_v54 = vand.u32 2147483648, %v2824_v22  ;;  %vm1040_vm5 = vweird.f32 %v1796_v60 }
 0x2d3   :  { %v1061_v33 = vmul.f32 %v1060_v5, %v2771_v38  ;;  %v1375_v37 = vmul.f32 %v1374_v6, %v2845_v4  ;;  %v1386_v53 = vmul.f32 %v1385_v15, %v2845_v4  ;;  %v750_v16 = vmul.f32 %v2683_v36, %v730_v48 }
 0x2d4   :  { %v1036_v46 = vsub.f32 1.0, %v1035_v42  ;;  %1797 = vrcp.f32 %v2855_v13  ;;  %v702_v50 = vsel %vm701_vm6, %v2802_v26, %v698_v40  ;;  %v1023_v11 = vmul.f32 %v1022_v9, %v2707_v30 }
 0x2d5   :  { %1799 = vrsqrt.f32 %v2858_v17  ;;  %v1376_v34 = vadd.f32 0.0036580483, %v1375_v37  ;;  %v1387_v44 = vadd.f32 0.014752088, %v1386_v53  ;;  %vm1039_vm7 = vweird.f32 %v2824_v22 }
 0x2d6   :  { %v1037_v49 = vmul.f32 %v1796_v60, %v1036_v46  ;;  %v2876_v38 = vadd.f32 %v2692_v27, %v750_v16  ;;  %v736_v29 = vmul.f32 %v702_v50, %v2127_v31  ;;  %vm1041_vm8 = vmor %vm1039_vm7, %vm1040_vm5  ;;  %v1046_v1 = vor.u32 1.1754944e-38, %v1045_v54 }
 0x2d7   :  { %v1062_v12 = vadd.f32 1.1283791, %v1061_v33  ;;  %v1377_v26 = vmul.f32 %v1376_v34, %v2845_v4  ;;  %v1388_v21 = vmul.f32 %v1387_v44, %v2845_v4  ;;  %vm1044_vm9 = vcmp.eq.f32.partialorder %v1043_v23, 8.507059e+37 }
 0x2d8   :  { %v1038_v35 = vadd.f32 %v1796_v60, %v1037_v49  ;;  %v2883_v32 = vmul.f32 0.70710677, %v2876_v38  ;;  %v756_v22 = vmul.f32 %v2683_v36, %v736_v29  ;;  %v784_v19 = vmul.f32 0.5, %v2695_v28 }
 0x2d9   :  { %v1085_v20 = vand.u32 2147483648, %v2855_v13  ;;  %v1389_v8 = vadd.f32 0.112945676, %v1388_v21  ;;  %v1063_v14 = vmul.f32 %v1062_v12, %v2752_v56  ;;  %vm1079_vm10 = vweird.f32 %v2855_v13 }
 0x2da   :  { %v1798_v7 = vpop.eup %1797  ;;  %v1042_v30 = vsel %vm1041_vm8, %v1796_v60, %v1038_v35  ;;  %v1091_v2 = vmul.f32 %v2883_v32, %v2883_v32  ;;  %v2894_v61 = vadd.f32 %v2692_v27, %v756_v22  ;;  %v1378_v28 = vadd.f32 0.05243302, %v1377_v26 }
 0x2db   :  { %v1047_v43 = vsel %vm1044_vm9, %v1046_v1, %v1042_v30  ;;  %v1075_v31 = vmul.f32 %v1798_v7, %v2855_v13  ;;  %v2889_v45 = vpop.eup %1799  ;;  %v1390_v3 = vmul.f32 %v1389_v8, %v2845_v4  ;;  %vm1080_vm11 = vweird.f32 %v1798_v7 }
 0x2dc   :  { %v1048_v41 = vmul.f32 %v1047_v43, %v1023_v11  ;;  %v2899_v58 = vmin.f32 %v1091_v2, 16.0  ;;  %v714_v55 = vmul.f32 %v2889_v45, %v2858_v17  ;;  %v1083_v62 = vand.u32 2147483647, %v2855_v13  ;;  %vm1081_vm12 = vmor %vm1079_vm10, %vm1080_vm11 }
 0x2dd   :  { %v1076_v39 = vsub.f32 1.0, %v1075_v31  ;;  %v2905_v0 = vmul.f32 0.70710677, %v2894_v61  ;;  %v1086_v60 = vor.u32 1.1754944e-38, %v1085_v20  ;;  %v1391_v9 = vadd.f32 0.4994258, %v1390_v3 }
 0x2de   :  { %v1643_v10 = vclamps-f32 %v1048_v41, 1.0  ;;  %v1093_v5 = vmul.f32 2.1237322e-06, %v2899_v58  ;;  %v1379_v42 = vmul.f32 %v1378_v28, %v2845_v4  ;;  %v1104_v6 = vmul.f32 3.8918573e-05, %v2899_v58 }
 0x2df   :  { %v1077_v24 = vmul.f32 %v1798_v7, %v1076_v39  ;;  %v1331_v15 = vmul.f32 %v2905_v0, %v2905_v0  ;;  %v1392_v40 = vmul.f32 %v1391_v9, %v2845_v4  ;;  %v715_v23 = vmul.f32 %v2889_v45, %v714_v55 }
 0x2e0   :  { %v1456_v56 = vadd.f32 1.0, %v1643_v10  ;;  %v1094_v46 = vadd.f32 0.00028619796, %v1093_v5  ;;  %vm1084_vm13 = vcmp.eq.f32.partialorder %v1083_v62, 8.507059e+37  ;;  %v1105_v33 = vadd.f32 0.001143296, %v1104_v6 }
 0x2e1   :  { %v1078_v59 = vadd.f32 %v1798_v7, %v1077_v24  ;;  %v2919_v37 = vmin.f32 %v1331_v15, 16.0  ;;  %v2921_v16 = vadd.f32 1.0, %v1392_v40  ;;  %v1380_v35 = vadd.f32 0.18741608, %v1379_v42 }
 0x2e2   :  { %v1472_v48 = vmul.f32 %v1456_v56, %v784_v19  ;;  %v1095_v50 = vmul.f32 %v1094_v46, %v2899_v58  ;;  %v1106_v13 = vmul.f32 %v1105_v33, %v2899_v58  ;;  %v716_v29 = vmul.f32 0.5, %v715_v23 }
 0x2e3   :  { %v1082_v54 = vsel %vm1081_vm12, %v1798_v7, %v1078_v59  ;;  %v1333_v34 = vmul.f32 2.1237322e-06, %v2919_v37  ;;  %1801 = vrcp.f32 %v2921_v16  ;;  %v1344_v7 = vmul.f32 3.8918573e-05, %v2919_v37 }
 0x2e4   :  { %v1504_v53 = vadd.f32 %v1488_v52, %v1472_v48  ;;  %v1087_v49 = vsel %vm1084_vm13, %v1086_v60, %v1082_v54  ;;  %v1096_v12 = vadd.f32 0.0036580483, %v1095_v50  ;;  %v1107_v26 = vadd.f32 0.014752088, %v1106_v13 }
 0x2e5   :  { %v1088_v11 = vmul.f32 %v1087_v49, %v1063_v14  ;;  %v1334_v21 = vadd.f32 0.00028619796, %v1333_v34  ;;  %v785_v30 = vmul.f32 0.5, %v2739_v47  ;;  %v1345_v43 = vadd.f32 0.001143296, %v1344_v7 }
 0x2e6   :  { %1520 = vst [vmem:[%s3044_s7 + $0x28] sm:$0xff] %v1504_v53  ;;  %v1683_v44 = vpack.c.bf16 %v1504_v53, %v2760_v25  ;;  %v1108_v19 = vmul.f32 %v1107_v26, %v2899_v58  ;;  %v1489_v25 = vld [vmem:[%s3043_s2 + $0x30] sm:$0xff]  ;;  %v717_v31 = vsub.f32 1.5, %v716_v29  ;;  %vm720_vm14 = vweird.f32 %v2889_v45 }
 0x2e7   :  { %v1644_v1 = vclamps-f32 %v1088_v11, 1.0  ;;  %v1381_v41 = vmul.f32 %v1380_v35, %v2845_v4  ;;  %v1335_v2 = vmul.f32 %v1334_v21, %v2919_v37  ;;  %v1097_v47 = vmul.f32 %v1096_v12, %v2899_v58 }
 0x2e8   :  { %1711 = vst [vmem:[%s3045_s8 + $0x10] sm:$0xff] %v1683_v44   ;;  %v1109_v8 = vadd.f32 0.112945676, %v1108_v19  ;;  %v1346_v39 = vmul.f32 %v1345_v43, %v2919_v37  ;;  %v718_v28 = vmul.f32 %v2889_v45, %v717_v31  ;;  %vm719_vm15 = vweird.f32 %v2858_v17 }
 0x2e9   :  { %v1457_v22 = vadd.f32 1.0, %v1644_v1  ;;  %v1802_v14 = vpop.eup %1801  ;;  %vm721_vm0 = vmor %vm719_vm15, %vm720_vm14  ;;  %v1382_v62 = vadd.f32 1.1283791, %v1381_v41  ;;  %v1336_v60 = vadd.f32 0.0036580483, %v1335_v2  ;;  %v1405_v9 = vand.u32 2147483648, %v2921_v16 }
 0x2ea   :  { %v1395_v3 = vmul.f32 %v1802_v14, %v2921_v16  ;;  %v1110_v55 = vmul.f32 %v1109_v8, %v2899_v58  ;;  %v1347_v4 = vadd.f32 0.014752088, %v1346_v39  ;;  %v722_v24 = vsel %vm721_vm0, %v2889_v45, %v718_v28 }
 0x2eb   :  { %v1473_v20 = vmul.f32 %v1457_v22, %v785_v30  ;;  %v738_v17 = vmul.f32 %v722_v24, %v2130_v57  ;;  %v1098_v5 = vadd.f32 0.05243302, %v1097_v47  ;;  %vm1400_vm1 = vweird.f32 %v1802_v14  ;;  %v1497_v30 = vld [vmem:[%s3043_s2 + $0x70] sm:$0xff] }
 0x2ec   :  { %v1396_v56 = vsub.f32 1.0, %v1395_v3  ;;  %v1111_v52 = vadd.f32 0.4994258, %v1110_v55  ;;  %v1348_v59 = vmul.f32 %v1347_v4, %v2919_v37  ;;  %v1403_v45 = vand.u32 2147483647, %v2921_v16 }
 0x2ed   :  { %v2947_v10 = vadd.f32 %v1489_v25, %v1473_v20  ;;  %v758_v6 = vmul.f32 %v2683_v36, %v738_v17  ;;  %vm1399_vm2 = vweird.f32 %v2921_v16  ;;  %v1337_v57 = vmul.f32 %v1336_v60, %v2919_v37 }
 0x2ee   :  { %v1397_v42 = vmul.f32 %v1802_v14, %v1396_v56  ;;  %v1112_v15 = vmul.f32 %v1111_v52, %v2899_v58  ;;  %v1349_v48 = vadd.f32 0.112945676, %v1348_v59  ;;  %vm1401_vm3 = vmor %vm1399_vm2, %vm1400_vm1  ;;  %v1406_v23 = vor.u32 1.1754944e-38, %v1405_v9 }
 0x2ef   :  { %1521 = vst [vmem:[%s3044_s7 + $0x30] sm:$0xff] %v2947_v10  ;;  %v2965_v46 = vadd.f32 %v2692_v27, %v758_v6  ;;  %v1099_v54 = vmul.f32 %v1098_v5, %v2899_v58  ;;  %v1383_v36 = vmul.f32 %v1382_v62, %v2827_v18  ;;  %vm1404_vm4 = vcmp.eq.f32.partialorder %v1403_v45, 8.507059e+37 }
 0x2f0   :  { %v1398_v40 = vadd.f32 %v1802_v14, %v1397_v42  ;;  %v1113_v33 = vadd.f32 1.0, %v1112_v15  ;;  %v1350_v53 = vmul.f32 %v1349_v48, %v2919_v37  ;;  %v1338_v13 = vadd.f32 0.05243302, %v1337_v57 }
 0x2f1   :  { %v2971_v50 = vmul.f32 0.70710677, %v2965_v46  ;;  %v1100_v34 = vadd.f32 0.18741608, %v1099_v54  ;;  %v793_v18 = vmul.f32 0.5, %v2811_v63 }
 0x2f2   :  { %v1402_v49 = vsel %vm1401_vm3, %v1802_v14, %v1398_v40  ;;  %1803 = vrcp.f32 %v1113_v33  ;;  %v1351_v27 = vadd.f32 0.4994258, %v1350_v53  ;;  %v1339_v26 = vmul.f32 %v1338_v13, %v2919_v37 }
 0x2f3   :  { %v1407_v16 = vsel %vm1404_vm4, %v1406_v23, %v1402_v49  ;;  %v1411_v44 = vmul.f32 %v2971_v50, %v2971_v50  ;;  %v1101_v22 = vmul.f32 %v1100_v34, %v2899_v58  ;;  %v1125_v47 = vand.u32 2147483648, %v1113_v33 }
 0x2f4   :  { %v1408_v11 = vmul.f32 %v1407_v16, %v1383_v36  ;;  %v1352_v29 = vmul.f32 %v1351_v27, %v2919_v37  ;;  %v1340_v8 = vadd.f32 0.18741608, %v1339_v26  ;;  %v1123_v28 = vand.u32 2147483647, %v1113_v33  ;;  %v1490_v16 = vld [vmem:[%s3043_s2 + $0x38] sm:$0xff] }
 0x2f5   :  { %v2976_v1 = vmin.f32 %v1411_v44, 16.0  ;;  %v1102_v14 = vadd.f32 1.1283791, %v1101_v22  ;;  %vm1119_vm6 = vweird.f32 %v1113_v33  ;;  %v1126_v56 = vor.u32 1.1754944e-38, %v1125_v47 }
 0x2f6   :  { %v1652_v35 = vclamps-f32 %v1408_v11, 1.0  ;;  %v1353_v21 = vadd.f32 1.0, %v1352_v29  ;;  %v1341_v24 = vmul.f32 %v1340_v8, %v2919_v37  ;;  %vm1124_vm8 = vcmp.eq.f32.partialorder %v1123_v28, 8.507059e+37 }
 0x2f7   :  { %v1413_v19 = vmul.f32 2.1237322e-06, %v2976_v1  ;;  %v1424_v25 = vmul.f32 3.8918573e-05, %v2976_v1  ;;  %v1103_v9 = vmul.f32 %v1102_v14, %v2883_v32  ;;  %v786_v32 = vmul.f32 0.5, %v2876_v38 }
 0x2f8   :  { %v1465_v12 = vadd.f32 1.0, %v1652_v35  ;;  %v1804_v7 = vpop.eup %1803  ;;  %1805 = vrcp.f32 %v1353_v21  ;;  %v1342_v6 = vadd.f32 1.1283791, %v1341_v24  ;;  %v1365_v15 = vand.u32 2147483648, %v1353_v21  ;;  %v1498_v24 = vld [vmem:[%s3043_s2 + $0x78] sm:$0xff] }
 0x2f9   :  { %v1115_v31 = vmul.f32 %v1804_v7, %v1113_v33  ;;  %v1414_v20 = vadd.f32 0.00028619796, %v1413_v19  ;;  %v1425_v2 = vadd.f32 0.001143296, %v1424_v25  ;;  %vm1120_vm5 = vweird.f32 %v1804_v7 }
 0x2fa   :  { %v1481_v43 = vmul.f32 %v1465_v12, %v793_v18  ;;  %vm1121_vm7 = vmor %vm1119_vm6, %vm1120_vm5  ;;  %v1363_v37 = vand.u32 2147483647, %v1353_v21  ;;  %vm1359_vm10 = vweird.f32 %v1353_v21  ;;  %v1366_v36 = vor.u32 1.1754944e-38, %v1365_v15 }
 0x2fb   :  { %v1116_v41 = vsub.f32 1.0, %v1115_v31  ;;  %v1415_v39 = vmul.f32 %v1414_v20, %v2976_v1  ;;  %v1426_v3 = vmul.f32 %v1425_v2, %v2976_v1  ;;  %v1343_v11 = vmul.f32 %v1342_v6, %v2905_v0 }
 0x2fc   :  { %v2986_v63 = vadd.f32 %v1497_v30, %v1481_v43  ;;  %vm1364_vm12 = vcmp.eq.f32.partialorder %v1363_v37, 8.507059e+37  ;;  %v792_v0 = vmul.f32 0.5, %v2894_v61  ;;  %v1496_v30 = vld [vmem:[%s3043_s2 + $0x68] sm:$0xff] }
 0x2fd   :  { %v1117_v58 = vmul.f32 %v1804_v7, %v1116_v41  ;;  %v1427_v62 = vadd.f32 0.014752088, %v1426_v3  ;;  %v1416_v17 = vadd.f32 0.0036580483, %v1415_v39 }
 0x2fe   :  { %1529 = vst [vmem:[%s3044_s7 + $0x70] sm:$0xff] %v2986_v63  ;;  %v1806_v55 = vpop.eup %1805 }
 0x2ff   :  { %v1118_v4 = vadd.f32 %v1804_v7, %v1117_v58  ;;  %v1355_v60 = vmul.f32 %v1806_v55, %v1353_v21  ;;  %v1428_v52 = vmul.f32 %v1427_v62, %v2976_v1  ;;  %vm1360_vm9 = vweird.f32 %v1806_v55 }
 0x300   :  { %v1417_v57 = vmul.f32 %v1416_v17, %v2976_v1  ;;  %vm1361_vm11 = vmor %vm1359_vm10, %vm1360_vm9 }
 0x301   :  { %v1122_v5 = vsel %vm1121_vm7, %v1804_v7, %v1118_v4  ;;  %v1356_v42 = vsub.f32 1.0, %v1355_v60  ;;  %v1429_v48 = vadd.f32 0.112945676, %v1428_v52 }
 0x302   :  { %v1127_v59 = vsel %vm1124_vm8, %v1126_v56, %v1122_v5  ;;  %v1418_v27 = vadd.f32 0.05243302, %v1417_v57 }
 0x303   :  { %v1128_v45 = vmul.f32 %v1127_v59, %v1103_v9  ;;  %v1357_v40 = vmul.f32 %v1806_v55, %v1356_v42  ;;  %v1430_v54 = vmul.f32 %v1429_v48, %v2976_v1 }
 0x304   :  { %v1419_v26 = vmul.f32 %v1418_v27, %v2976_v1 }
 0x305   :  { %v1645_v23 = vclamps-f32 %v1128_v45, 1.0  ;;  %v1358_v33 = vadd.f32 %v1806_v55, %v1357_v40  ;;  %v1431_v49 = vadd.f32 0.4994258, %v1430_v54 }
 0x306   :  { %v1420_v19 = vadd.f32 0.18741608, %v1419_v26 }
 0x307   :  { %v1458_v53 = vadd.f32 1.0, %v1645_v23  ;;  %v1362_v13 = vsel %vm1361_vm11, %v1806_v55, %v1358_v33  ;;  %v1432_v35 = vmul.f32 %v1431_v49, %v2976_v1  ;;  %v794_v55 = vmul.f32 0.5, %v2965_v46 }
 0x308   :  { %v1367_v44 = vsel %vm1364_vm12, %v1366_v36, %v1362_v13  ;;  %v1421_v61 = vmul.f32 %v1420_v19, %v2976_v1 }
 0x309   :  { %v1474_v34 = vmul.f32 %v1458_v53, %v786_v32  ;;  %v1368_v29 = vmul.f32 %v1367_v44, %v1343_v11  ;;  %v1433_v38 = vadd.f32 1.0, %v1432_v35 }
 0x30a   :  { %v1422_v8 = vadd.f32 1.1283791, %v1421_v61 }
 0x30b   :  { %v1506_v18 = vadd.f32 %v1490_v16, %v1474_v34  ;;  %v1651_v12 = vclamps-f32 %v1368_v29, 1.0  ;;  %1807 = vrcp.f32 %v1433_v38  ;;  %v1445_v41 = vand.u32 2147483648, %v1433_v38 }
 0x30c   :  { %v1443_v14 = vand.u32 2147483647, %v1433_v38  ;;  %vm1439_vm14 = vweird.f32 %v1433_v38  ;;  %v1423_v58 = vmul.f32 %v1422_v8, %v2971_v50 }
 0x30d   :  { %1522 = vst [vmem:[%s3044_s7 + $0x38] sm:$0xff] %v1506_v18  ;;  %v1688_v21 = vpack.c.bf16 %v1506_v18, %v2947_v10  ;;  %v1464_v7 = vadd.f32 1.0, %v1651_v12  ;;  %v1446_v39 = vor.u32 1.1754944e-38, %v1445_v41 }
 0x30e   :  { %vm1444_vm0 = vcmp.eq.f32.partialorder %v1443_v14, 8.507059e+37 }
 0x30f   :  { %1712 = vst [vmem:[%s3045_s8 + $0x18] sm:$0xff] %v1688_v21   ;;  %v1480_v22 = vmul.f32 %v1464_v7, %v792_v0 }
 0x311   :  { %v1512_v25 = vadd.f32 %v1496_v30, %v1480_v22  ;;  %v1808_v43 = vpop.eup %1807 }
 0x312   :  { %v1435_v31 = vmul.f32 %v1808_v43, %v1433_v38  ;;  %vm1440_vm13 = vweird.f32 %v1808_v43 }
 0x313   :  { %1528 = vst [vmem:[%s3044_s7 + $0x68] sm:$0xff] %v1512_v25  ;;  %v1703_v10 = vpack.c.bf16 %v1512_v25, %v2832_v51  ;;  %vm1441_vm15 = vmor %vm1439_vm14, %vm1440_vm13 }
 0x314   :  { %v1436_v20 = vsub.f32 1.0, %v1435_v31 }
 0x315   :  { %1715 = vst [vmem:[%s3045_s8 + $0x30] sm:$0xff] %v1703_v10  }
 0x316   :  { %v1437_v2 = vmul.f32 %v1808_v43, %v1436_v20 }
 0x318   :  { %v1438_v47 = vadd.f32 %v1808_v43, %v1437_v2 }
 0x31a   :  { %v1442_v51 = vsel %vm1441_vm15, %v1808_v43, %v1438_v47 }
 0x31b   :  { %v1447_v1 = vsel %vm1444_vm0, %v1446_v39, %v1442_v51 }
 0x31c   :  { %v1448_v28 = vmul.f32 %v1447_v1, %v1423_v58 }
 0x31e   :  { %v1653_v3 = vclamps-f32 %v1448_v28, 1.0 }
 0x320   :  { %v1466_v4 = vadd.f32 1.0, %v1653_v3 }
 0x322   :  { %v1482_v62 = vmul.f32 %v1466_v4, %v794_v55 }
 0x324   :  { %v1514_v56 = vadd.f32 %v1498_v24, %v1482_v62 }
 0x326   :  { %1530 = vst [vmem:[%s3044_s7 + $0x78] sm:$0xff] %v1514_v56  ;;  %v1708_v50 = vpack.c.bf16 %v1514_v56, %v2986_v63 }
 0x328   :  { %1716 = vst [vmem:[%s3045_s8 + $0x38] sm:$0xff] %v1708_v50  }

// kernel: graph_embedding_forward.6
= control target key start
LH: loop header
LB: loop body
LE: loop exit
PB: predicated region body
PF: predicated region fallthrough
CT: control target
= control target key end

     0   :  { %s3063_s0 = inlined_call_operand.vmem [shape: bf16[128,128], index: 0, kind: input, shape index: {}]   ;;  %s3064_s1 = inlined_call_operand.vmem [shape: bf16[128,128], index: 1, kind: input, shape index: {}]   ;;  %s3065_s2 = inlined_call_operand.vmem [shape: f32[128,128], index: 2, kind: input, shape index: {}]   ;;  %s3066_s3 = inlined_call_operand.vmem [shape: f32[128,128], index: 3, kind: input, shape index: {}]   ;;  %s3067_s4 = inlined_call_operand.vmem [shape: f32[1,128], index: 4, kind: input, shape index: {}]   ;;  %s3068_s5 = inlined_call_operand.vmem [shape: f32[1,128], index: 5, kind: input, shape index: {}]   ;;  %s3069_s6 = inlined_call_operand.vmem [shape: f32[1,128], index: 6, kind: input, shape index: {}]   ;;  %s3070_s7 = inlined_call_operand.vmem [shape: f32[128,128], index: 7, kind: output, shape index: {0}]   ;;  %s3071_s8 = inlined_call_operand.hbm [shape: bf16[128,128], index: 8, kind: output, shape index: {1}]  }
   0x1   :  { %v1676_v0 = vld [vmem:[%s3064_s1 + $0x38] sm:$0xff]  ;;  %v1675_v1 = vld [vmem:[%s3064_s1 + $0x30] sm:$0xff] }
   0x2   :  { %198 = vmatpush.bf16.msra.mxu0 %v1676_v0  ;;  %1732 = vmatpush.bf16.msra.mxu2 %v1676_v0 }
   0x3   :  { %14 = vsyncpa [#allocation4], 0  ;;  %v1674_v2 = vld [vmem:[%s3064_s1 + $0x28] sm:$0xff]  ;;  %v1673_v3 = vld [vmem:[%s3064_s1 + $0x20] sm:$0xff]  ;;  %v383_v48 = vlaneseq  ;;  %v1855_v52 = vmov 0.0   ;;  %s1856_s13 = smov [#allocation3]  }
   0x4   :  { %v1672_v4 = vld [vmem:[%s3064_s1 + $0x18] sm:$0xff]  ;;  %v1671_v5 = vld [vmem:[%s3064_s1 + $0x10] sm:$0xff]  ;;  %v1670_v6 = vld [vmem:[%s3064_s1 + $0x8] sm:$0xff]  ;;  %s1570_s14 = sshll.u32 %s1856_s13, 4  ;;  %s1572_s17 = sshll.u32 %s3071_s8, 4  ;;  %s1571_s14 = int_to_ptr.vmem [resolvable:$true] %s1570_s14  ;;  %s1573_s17 = int_to_ptr.hbm [resolvable:$true] %s1572_s17 }
   0x5   :  { %v1669_v7 = vld [vmem:[%s3064_s1] sm:$0xff]  ;;  %v1678_v10 = vld [vmem:[%s3063_s0 + $0x8] sm:$0xff]  ;;  %v313_v12 = vld [vmem:[%s3066_s3 + $0x78] sm:$0xff]  ;;  %v384_v49 = vand.u32 127, %v383_v48  ;;  %s1857_s20 = smov 64   ;;  %s1858_s21 = smov 4  }
   0x6   :  { %199 = vmatpush.bf16.msra.mxu0 %v1675_v1  ;;  %1733 = vmatpush.bf16.msra.mxu2 %v1675_v1  ;;  %v1677_v8 = vld [vmem:[%s3063_s0] sm:$0xff]  ;;  %v1682_v11 = vld [vmem:[%s3063_s0 + $0x28] sm:$0xff]  ;;  %v312_v13 = vld [vmem:[%s3066_s3 + $0x70] sm:$0xff] }
   0x7   :  { %v1681_v9 = vld [vmem:[%s3063_s0 + $0x20] sm:$0xff]  ;;  %318 = vmatpush.msra.mxu1 %v313_v12  ;;  %1740 = vmatpush.msra.mxu3 %v313_v12  ;;  %v311_v14 = vld [vmem:[%s3066_s3 + $0x68] sm:$0xff]  ;;  %v309_v16 = vld [vmem:[%s3066_s3 + $0x58] sm:$0xff]  ;;  %vm385_vm0 = vcmp.lt.s32.totalorder %v384_v49, 32 }
   0x8   :  { %v310_v15 = vld [vmem:[%s3066_s3 + $0x60] sm:$0xff]  ;;  %v308_v17 = vld [vmem:[%s3066_s3 + $0x50] sm:$0xff]  ;;  %v307_v18 = vld [vmem:[%s3066_s3 + $0x48] sm:$0xff]  ;;  %v2005_v53 = vsel %vm385_vm0, 1.0, %v1855_v52 }
   0x9   :  { %319 = vmatpush.msra.mxu1 %v312_v13  ;;  %1741 = vmatpush.msra.mxu3 %v312_v13  ;;  %v1679_v19 = vld [vmem:[%s3063_s0 + $0x10] sm:$0xff]  ;;  %v306_v21 = vld [vmem:[%s3066_s3 + $0x40] sm:$0xff]  ;;  %v305_v22 = vld [vmem:[%s3066_s3 + $0x38] sm:$0xff] }
   0xa   :  { %200 = vmatpush.bf16.msra.mxu0 %v1674_v2  ;;  %1734 = vmatpush.bf16.msra.mxu2 %v1674_v2  ;;  %v1683_v20 = vld [vmem:[%s3063_s0 + $0x30] sm:$0xff]  ;;  %v303_v24 = vld [vmem:[%s3066_s3 + $0x28] sm:$0xff]  ;;  %v302_v25 = vld [vmem:[%s3066_s3 + $0x20] sm:$0xff] }
   0xb   :  { %320 = vmatpush.msra.mxu1 %v311_v14  ;;  %1742 = vmatpush.msra.mxu3 %v311_v14  ;;  %v304_v23 = vld [vmem:[%s3066_s3 + $0x30] sm:$0xff]  ;;  %v301_v26 = vld [vmem:[%s3066_s3 + $0x18] sm:$0xff]  ;;  %v299_v28 = vld [vmem:[%s3066_s3 + $0x8] sm:$0xff] }
   0xc   :  { %v300_v27 = vld [vmem:[%s3066_s3 + $0x10] sm:$0xff]  ;;  %v1680_v29 = vld [vmem:[%s3063_s0 + $0x18] sm:$0xff]  ;;  %v298_v31 = vld [vmem:[%s3066_s3] sm:$0xff] }
   0xd   :  { %321 = vmatpush.msra.mxu1 %v310_v15  ;;  %1743 = vmatpush.msra.mxu3 %v310_v15  ;;  %v1684_v30 = vld [vmem:[%s3063_s0 + $0x38] sm:$0xff]  ;;  %v2003_v50 = vld [vmem:[%s3067_s4] ss:$0 sm:$0xff] }
   0xe   :  { %201 = vmatpush.bf16.msra.mxu0 %v1673_v3  ;;  %1735 = vmatpush.bf16.msra.mxu2 %v1673_v3 }
   0xf   :  { %322 = vmatpush.msra.mxu1 %v309_v16  ;;  %1744 = vmatpush.msra.mxu3 %v309_v16 }
  0x11   :  { %323 = vmatpush.msra.mxu1 %v308_v17  ;;  %1745 = vmatpush.msra.mxu3 %v308_v17 }
  0x12   :  { %202 = vmatpush.bf16.msra.mxu0 %v1672_v4  ;;  %1736 = vmatpush.bf16.msra.mxu2 %v1672_v4 }
  0x13   :  { %324 = vmatpush.msra.mxu1 %v307_v18  ;;  %1746 = vmatpush.msra.mxu3 %v307_v18 }
  0x15   :  { %325 = vmatpush.msra.mxu1 %v306_v21  ;;  %1747 = vmatpush.msra.mxu3 %v306_v21 }
  0x16   :  { %203 = vmatpush.bf16.msra.mxu0 %v1671_v5  ;;  %1737 = vmatpush.bf16.msra.mxu2 %v1671_v5 }
  0x17   :  { %326 = vmatpush.msra.mxu1 %v305_v22  ;;  %1748 = vmatpush.msra.mxu3 %v305_v22 }
  0x19   :  { %327 = vmatpush.msra.mxu1 %v304_v23  ;;  %1749 = vmatpush.msra.mxu3 %v304_v23 }
  0x1a   :  { %204 = vmatpush.bf16.msra.mxu0 %v1670_v6  ;;  %1738 = vmatpush.bf16.msra.mxu2 %v1670_v6 }
  0x1b   :  { %328 = vmatpush.msra.mxu1 %v303_v24  ;;  %1750 = vmatpush.msra.mxu3 %v303_v24 }
  0x1d   :  { %329 = vmatpush.msra.mxu1 %v302_v25  ;;  %1751 = vmatpush.msra.mxu3 %v302_v25 }
  0x1e   :  { %205 = vmatpush.bf16.msra.mxu0 %v1669_v7  ;;  %1739 = vmatpush.bf16.msra.mxu2 %v1669_v7 }
  0x1f   :  { %330 = vmatpush.msra.mxu1 %v301_v26  ;;  %1752 = vmatpush.msra.mxu3 %v301_v26 }
  0x21   :  { %206 = vmatmul.bf16.vlgmr.msra.gmra.mxu0 %v1677_v8  ;;  %226 = vmatmul.bf16.vlgmr.msra.gmra.mxu2 %v1681_v9 }
  0x22   :  { %331 = vmatpush.msra.mxu1 %v300_v27  ;;  %1753 = vmatpush.msra.mxu3 %v300_v27 }
  0x24   :  { %332 = vmatpush.msra.mxu1 %v299_v28  ;;  %1754 = vmatpush.msra.mxu3 %v299_v28 }
  0x26   :  { %333 = vmatpush.msra.mxu1 %v298_v31  ;;  %1755 = vmatpush.msra.mxu3 %v298_v31 }
  0x31   :  { %211 = vmatmul.bf16.gmra.mxu0 %v1678_v10  ;;  %231 = vmatmul.bf16.gmra.mxu2 %v1682_v11 }
  0x41   :  { %216 = vmatmul.bf16.gmra.mxu0 %v1679_v19  ;;  %236 = vmatmul.bf16.gmra.mxu2 %v1683_v20 }
  0x51   :  { %221 = vmatmul.bf16.gmra.mxu0 %v1680_v29  ;;  %241 = vmatmul.bf16.gmra.mxu2 %v1684_v30 }
  0x9e   :  { %v207_v32 = vpop.f32.mrf.mxu0 }
  0x9f   :  { %334 = vmatmul.f32.vlgmr.msra.gmra.mxu1 %v207_v32 }
  0xa4   :  { %v227_v33 = vpop.f32.mrf.mxu2 }
  0xa5   :  { %358 = vmatmul.f32.vlgmr.msra.gmra.mxu3 %v227_v33 }
  0xa6   :  { %v209_v34 = vpop.f32.mrf.mxu0 }
  0xa7   :  { %337 = vmatmul.f32.gmra.mxu1 %v209_v34 }
  0xac   :  { %v229_v35 = vpop.f32.mrf.mxu2 }
  0xad   :  { %361 = vmatmul.f32.gmra.mxu3 %v229_v35 }
  0xae   :  { %v212_v36 = vpop.f32.mrf.mxu0 }
  0xaf   :  { %340 = vmatmul.f32.gmra.mxu1 %v212_v36 }
  0xb4   :  { %v232_v37 = vpop.f32.mrf.mxu2 }
  0xb5   :  { %364 = vmatmul.f32.gmra.mxu3 %v232_v37 }
  0xb6   :  { %v214_v38 = vpop.f32.mrf.mxu0 }
  0xb7   :  { %343 = vmatmul.f32.gmra.mxu1 %v214_v38 }
  0xbc   :  { %v234_v39 = vpop.f32.mrf.mxu2 }
  0xbd   :  { %367 = vmatmul.f32.gmra.mxu3 %v234_v39 }
  0xbe   :  { %v217_v40 = vpop.f32.mrf.mxu0 }
  0xbf   :  { %346 = vmatmul.f32.gmra.mxu1 %v217_v40 }
  0xc4   :  { %v237_v41 = vpop.f32.mrf.mxu2 }
  0xc5   :  { %370 = vmatmul.f32.gmra.mxu3 %v237_v41 }
  0xc6   :  { %v219_v42 = vpop.f32.mrf.mxu0 }
  0xc7   :  { %349 = vmatmul.f32.gmra.mxu1 %v219_v42 }
  0xcc   :  { %v239_v43 = vpop.f32.mrf.mxu2 }
  0xcd   :  { %373 = vmatmul.f32.gmra.mxu3 %v239_v43 }
  0xce   :  { %v222_v44 = vpop.f32.mrf.mxu0 }
  0xcf   :  { %352 = vmatmul.f32.gmra.mxu1 %v222_v44 }
  0xd4   :  { %v242_v45 = vpop.f32.mrf.mxu2 }
  0xd5   :  { %376 = vmatmul.f32.gmra.mxu3 %v242_v45 }
  0xd6   :  { %v224_v46 = vpop.f32.mrf.mxu0 }
  0xd7   :  { %355 = vmatmul.f32.gmra.mxu1 %v224_v46 }
  0xdc   :  { %v244_v47 = vpop.f32.mrf.mxu2 }
  0xdd   :  { %379 = vmatmul.f32.gmra.mxu3 %v244_v47 }
 0x11c   :  { %v335_v51 = vpop.f32.mrf.mxu1 }
 0x11d   :  { %v2008_v54 = vadd.f32 %v2003_v50, %v335_v51 }
 0x11f   :  { %v388_v55 = vmul.f32 %v2005_v53, %v2008_v54 }
 0x121   :  { %404 = vadd.xlane.f32.xlu0 %v388_v55 }
 0x124   :  { %v338_v56 = vpop.f32.mrf.mxu1 }
 0x125   :  { %v2013_v57 = vadd.f32 %v2003_v50, %v338_v56 }
 0x127   :  { %v389_v58 = vmul.f32 %v2005_v53, %v2013_v57 }
 0x128   :  { %v359_v59 = vpop.f32.mrf.mxu3 }
 0x129   :  { %v2018_v60 = vadd.f32 %v2003_v50, %v359_v59  ;;  %406 = vadd.xlane.f32.xlu0 %v389_v58 }
 0x12b   :  { %v396_v61 = vmul.f32 %v2005_v53, %v2018_v60 }
 0x12c   :  { %v341_v62 = vpop.f32.mrf.mxu1 }
 0x12d   :  { %v2023_v63 = vadd.f32 %v2003_v50, %v341_v62  ;;  %420 = vadd.xlane.f32.xlu2 %v396_v61 }
 0x12f   :  { %v390_v0 = vmul.f32 %v2005_v53, %v2023_v63 }
 0x130   :  { %v362_v1 = vpop.f32.mrf.mxu3 }
 0x131   :  { %v2028_v2 = vadd.f32 %v2003_v50, %v362_v1  ;;  %408 = vadd.xlane.f32.xlu1 %v390_v0 }
 0x133   :  { %v397_v3 = vmul.f32 %v2005_v53, %v2028_v2 }
 0x134   :  { %v344_v4 = vpop.f32.mrf.mxu1 }
 0x135   :  { %v2033_v5 = vadd.f32 %v2003_v50, %v344_v4  ;;  %422 = vadd.xlane.f32.xlu0 %v397_v3 }
 0x137   :  { %v391_v6 = vmul.f32 %v2005_v53, %v2033_v5 }
 0x138   :  { %v365_v7 = vpop.f32.mrf.mxu3 }
 0x139   :  { %410 = vadd.xlane.f32.xlu1 %v391_v6  ;;  %v2038_v8 = vadd.f32 %v2003_v50, %v365_v7 }
 0x13b   :  { %v398_v11 = vmul.f32 %v2005_v53, %v2038_v8 }
 0x13c   :  { %v347_v9 = vpop.f32.mrf.mxu1 }
 0x13d   :  { %v2041_v10 = vadd.f32 %v2003_v50, %v347_v9 }
 0x13f   :  { %v392_v12 = vmul.f32 %v2005_v53, %v2041_v10 }
 0x140   :  { %v368_v13 = vpop.f32.mrf.mxu3 }
 0x141   :  { %424 = vadd.xlane.f32.xlu1 %v398_v11  ;;  %412 = vadd.xlane.f32.xlu2 %v392_v12  ;;  %v2048_v14 = vadd.f32 %v2003_v50, %v368_v13 }
 0x143   :  { %v399_v16 = vmul.f32 %v2005_v53, %v2048_v14 }
 0x144   :  { %v350_v15 = vpop.f32.mrf.mxu1 }
 0x145   :  { %v2056_v19 = vadd.f32 %v2003_v50, %v350_v15 }
 0x147   :  { %v393_v23 = vmul.f32 %v2005_v53, %v2056_v19 }
 0x148   :  { %v371_v17 = vpop.f32.mrf.mxu3 }
 0x149   :  { %v2053_v18 = vadd.f32 %v2003_v50, %v371_v17  ;;  %426 = vadd.xlane.f32.xlu2 %v399_v16 }
 0x14b   :  { %v400_v20 = vmul.f32 %v2005_v53, %v2053_v18 }
 0x14c   :  { %v353_v21 = vpop.f32.mrf.mxu1 }
 0x14d   :  { %v2061_v22 = vadd.f32 %v2003_v50, %v353_v21  ;;  %428 = vadd.xlane.f32.xlu0 %v400_v20 }
 0x14f   :  { %v394_v26 = vmul.f32 %v2005_v53, %v2061_v22 }
 0x150   :  { %v374_v24 = vpop.f32.mrf.mxu3 }
 0x151   :  { %v2066_v25 = vadd.f32 %v2003_v50, %v374_v24  ;;  %414 = vadd.xlane.f32.xlu2 %v393_v23 }
 0x153   :  { %v401_v27 = vmul.f32 %v2005_v53, %v2066_v25 }
 0x154   :  { %v356_v28 = vpop.f32.mrf.mxu1 }
 0x155   :  { %430 = vadd.xlane.f32.xlu1 %v401_v27  ;;  %416 = vadd.xlane.f32.xlu0 %v394_v26  ;;  %v2073_v29 = vadd.f32 %v2003_v50, %v356_v28 }
 0x157   :  { %v395_v33 = vmul.f32 %v2005_v53, %v2073_v29 }
 0x158   :  { %v377_v30 = vpop.f32.mrf.mxu3 }
 0x159   :  { %v2076_v31 = vadd.f32 %v2003_v50, %v377_v30 }
 0x15b   :  { %v402_v32 = vmul.f32 %v2005_v53, %v2076_v31 }
 0x15d   :  { %432 = vadd.xlane.f32.xlu2 %v402_v32  ;;  %418 = vadd.xlane.f32.xlu1 %v395_v33 }
 0x160   :  { %v380_v34 = vpop.f32.mrf.mxu3 }
 0x161   :  { %v2083_v35 = vadd.f32 %v2003_v50, %v380_v34 }
 0x163   :  { %v403_v36 = vmul.f32 %v2005_v53, %v2083_v35 }
 0x165   :  { %434 = vadd.xlane.f32.xlu0 %v403_v36 }
 0x194   :  { %v405_v37 = vpop.xlane.xlu0 %404 }
 0x195   :  { %v436_v38 = vmul.f32 0.03125, %v405_v37 }
 0x197   :  { %v452_v39 = vsub.f32 %v2008_v54, %v436_v38 }
 0x199   :  { %v2089_v40 = vmul.f32 %v2005_v53, %v452_v39 }
 0x19b   :  { %v484_v41 = vmul.f32 %v2089_v40, %v2089_v40 }
 0x19c   :  { %v407_v42 = vpop.xlane.xlu0 %406 }
 0x19d   :  { %v437_v43 = vmul.f32 0.03125, %v407_v42  ;;  %500 = vadd.xlane.f32.xlu1 %v484_v41 }
 0x19f   :  { %v453_v44 = vsub.f32 %v2013_v57, %v437_v43 }
 0x1a0   :  { %v421_v45 = vpop.xlane.xlu2 %420 }
 0x1a1   :  { %v444_v46 = vmul.f32 0.03125, %v421_v45  ;;  %v2095_v47 = vmul.f32 %v2005_v53, %v453_v44 }
 0x1a3   :  { %v460_v48 = vsub.f32 %v2018_v60, %v444_v46  ;;  %v485_v49 = vmul.f32 %v2095_v47, %v2095_v47 }
 0x1a4   :  { %v409_v50 = vpop.xlane.xlu1 %408 }
 0x1a5   :  { %v438_v51 = vmul.f32 0.03125, %v409_v50  ;;  %502 = vadd.xlane.f32.xlu2 %v485_v49  ;;  %v2101_v52 = vmul.f32 %v2005_v53, %v460_v48 }
 0x1a7   :  { %v454_v54 = vsub.f32 %v2023_v63, %v438_v51  ;;  %v492_v55 = vmul.f32 %v2101_v52, %v2101_v52 }
 0x1a8   :  { %v423_v56 = vpop.xlane.xlu0 %422 }
 0x1a9   :  { %v445_v57 = vmul.f32 0.03125, %v423_v56  ;;  %516 = vadd.xlane.f32.xlu0 %v492_v55  ;;  %v2108_v59 = vmul.f32 %v2005_v53, %v454_v54 }
 0x1ab   :  { %v461_v58 = vsub.f32 %v2028_v2, %v445_v57  ;;  %v486_v63 = vmul.f32 %v2108_v59, %v2108_v59 }
 0x1ac   :  { %v411_v60 = vpop.xlane.xlu1 %410 }
 0x1ad   :  { %v439_v61 = vmul.f32 0.03125, %v411_v60  ;;  %v2111_v62 = vmul.f32 %v2005_v53, %v461_v58 }
 0x1af   :  { %v455_v0 = vsub.f32 %v2033_v5, %v439_v61  ;;  %v493_v1 = vmul.f32 %v2111_v62, %v2111_v62 }
 0x1b1   :  { %504 = vadd.xlane.f32.xlu0 %v486_v63  ;;  %518 = vadd.xlane.f32.xlu1 %v493_v1  ;;  %v2119_v2 = vmul.f32 %v2005_v53, %v455_v0 }
 0x1b3   :  { %v487_v5 = vmul.f32 %v2119_v2, %v2119_v2 }
 0x1b4   :  { %v425_v3 = vpop.xlane.xlu1 %424  ;;  %v413_v4 = vpop.xlane.xlu2 %412 }
 0x1b5   :  { %v446_v6 = vmul.f32 0.03125, %v425_v3  ;;  %v440_v9 = vmul.f32 0.03125, %v413_v4 }
 0x1b7   :  { %v462_v7 = vsub.f32 %v2038_v8, %v446_v6  ;;  %v456_v12 = vsub.f32 %v2041_v10, %v440_v9 }
 0x1b9   :  { %506 = vadd.xlane.f32.xlu1 %v487_v5  ;;  %v2125_v11 = vmul.f32 %v2005_v53, %v462_v7  ;;  %v2132_v8 = vmul.f32 %v2005_v53, %v456_v12 }
 0x1bb   :  { %v494_v13 = vmul.f32 %v2125_v11, %v2125_v11  ;;  %v488_v10 = vmul.f32 %v2132_v8, %v2132_v8 }
 0x1bc   :  { %v427_v15 = vpop.xlane.xlu2 %426 }
 0x1bd   :  { %v447_v16 = vmul.f32 0.03125, %v427_v15  ;;  %520 = vadd.xlane.f32.xlu2 %v494_v13 }
 0x1bf   :  { %v463_v17 = vsub.f32 %v2048_v14, %v447_v16 }
 0x1c0   :  { %v429_v20 = vpop.xlane.xlu0 %428 }
 0x1c1   :  { %v448_v21 = vmul.f32 0.03125, %v429_v20  ;;  %v2135_v23 = vmul.f32 %v2005_v53, %v463_v17 }
 0x1c3   :  { %v464_v24 = vsub.f32 %v2053_v18, %v448_v21  ;;  %v495_v26 = vmul.f32 %v2135_v23, %v2135_v23  ;;  %v2186_v21 = vld [vmem:[%s3068_s5] ss:$0 sm:$0xff] }
 0x1c4   :  { %v415_v27 = vpop.xlane.xlu2 %414 }
 0x1c5   :  { %v441_v28 = vmul.f32 0.03125, %v415_v27  ;;  %508 = vadd.xlane.f32.xlu2 %v488_v10  ;;  %522 = vadd.xlane.f32.xlu0 %v495_v26  ;;  %v2143_v14 = vmul.f32 %v2005_v53, %v464_v24 }
 0x1c7   :  { %v457_v30 = vsub.f32 %v2056_v19, %v441_v28  ;;  %v496_v32 = vmul.f32 %v2143_v14, %v2143_v14 }
 0x1c8   :  { %v431_v33 = vpop.xlane.xlu1 %430  ;;  %v417_v18 = vpop.xlane.xlu0 %416 }
 0x1c9   :  { %v442_v34 = vmul.f32 0.03125, %v417_v18  ;;  %524 = vadd.xlane.f32.xlu1 %v496_v32  ;;  %v2149_v36 = vmul.f32 %v2005_v53, %v457_v30  ;;  %v449_v45 = vmul.f32 0.03125, %v431_v33  ;;  %v2191_v30 = vld [vmem:[%s3069_s6] ss:$0 sm:$0xff] }
 0x1cb   :  { %v458_v37 = vsub.f32 %v2061_v22, %v442_v34  ;;  %v489_v38 = vmul.f32 %v2149_v36, %v2149_v36  ;;  %v465_v50 = vsub.f32 %v2066_v25, %v449_v45 }
 0x1cd   :  { %510 = vadd.xlane.f32.xlu0 %v489_v38  ;;  %v2155_v39 = vmul.f32 %v2005_v53, %v458_v37 }
 0x1cf   :  { %v490_v19 = vmul.f32 %v2155_v39, %v2155_v39 }
 0x1d0   :  { %v433_v41 = vpop.xlane.xlu2 %432  ;;  %v419_v42 = vpop.xlane.xlu1 %418 }
 0x1d1   :  { %v450_v43 = vmul.f32 0.03125, %v433_v41  ;;  %v443_v44 = vmul.f32 0.03125, %v419_v42  ;;  %512 = vadd.xlane.f32.xlu1 %v490_v19 }
 0x1d3   :  { %v466_v46 = vsub.f32 %v2076_v31, %v450_v43  ;;  %v459_v22 = vsub.f32 %v2073_v29, %v443_v44  ;;  %v2174_v31 = vmul.f32 %v2005_v53, %v465_v50 }
 0x1d5   :  { %v2162_v48 = vmul.f32 %v2005_v53, %v466_v46  ;;  %v2165_v49 = vmul.f32 %v2005_v53, %v459_v22  ;;  %v497_v58 = vmul.f32 %v2174_v31, %v2174_v31 }
 0x1d7   :  { %v498_v51 = vmul.f32 %v2162_v48, %v2162_v48  ;;  %v491_v54 = vmul.f32 %v2165_v49, %v2165_v49 }
 0x1d8   :  { %v435_v55 = vpop.xlane.xlu0 %434 }
 0x1d9   :  { %v451_v56 = vmul.f32 0.03125, %v435_v55  ;;  %528 = vadd.xlane.f32.xlu0 %v498_v51  ;;  %514 = vadd.xlane.f32.xlu2 %v491_v54 }
 0x1db   :  { %v467_v29 = vsub.f32 %v2083_v35, %v451_v56 }
 0x1dd   :  { %v2177_v57 = vmul.f32 %v2005_v53, %v467_v29 }
 0x1df   :  { %v499_v25 = vmul.f32 %v2177_v57, %v2177_v57 }
 0x1e1   :  { %530 = vadd.xlane.f32.xlu1 %v499_v25  ;;  %526 = vadd.xlane.f32.xlu2 %v497_v58 }
 0x210   :  { %v501_v60 = vpop.xlane.xlu1 %500 }
 0x211   :  { %v532_v61 = vmul.f32 0.03125, %v501_v60 }
 0x213   :  { %v548_v0 = vadd.f32 1e-05, %v532_v61 }
 0x215   :  { %1763 = vrsqrt.f32 %v548_v0  ;;  %vm570_vm2 = vweird.f32 %v548_v0 }
 0x218   :  { %v503_v63 = vpop.xlane.xlu2 %502 }
 0x219   :  { %v533_v35 = vmul.f32 0.03125, %v503_v63 }
 0x21b   :  { %v1764_v1 = vpop.eup %1763  ;;  %v549_v3 = vadd.f32 1e-05, %v533_v35 }
 0x21c   :  { %v565_v4 = vmul.f32 %v1764_v1, %v548_v0  ;;  %v517_v6 = vpop.xlane.xlu0 %516  ;;  %vm571_vm1 = vweird.f32 %v1764_v1 }
 0x21d   :  { %1765 = vrsqrt.f32 %v549_v3  ;;  %v540_v53 = vmul.f32 0.03125, %v517_v6  ;;  %vm572_vm3 = vmor %vm570_vm2, %vm571_vm1  ;;  %vm580_vm5 = vweird.f32 %v549_v3 }
 0x21e   :  { %v566_v7 = vmul.f32 %v1764_v1, %v565_v4 }
 0x21f   :  { %v556_v9 = vadd.f32 1e-05, %v540_v53 }
 0x220   :  { %v567_v5 = vmul.f32 0.5, %v566_v7 }
 0x221   :  { %1767 = vrsqrt.f32 %v556_v9  ;;  %vm650_vm8 = vweird.f32 %v556_v9 }
 0x222   :  { %v568_v12 = vsub.f32 1.5, %v567_v5 }
 0x223   :  { %v1766_v13 = vpop.eup %1765 }
 0x224   :  { %v569_v15 = vmul.f32 %v1764_v1, %v568_v12  ;;  %v575_v16 = vmul.f32 %v1766_v13, %v549_v3  ;;  %v505_v17 = vpop.xlane.xlu0 %504  ;;  %v519_v20 = vpop.xlane.xlu1 %518  ;;  %vm581_vm4 = vweird.f32 %v1766_v13 }
 0x225   :  { %v534_v24 = vmul.f32 0.03125, %v505_v17  ;;  %v541_v10 = vmul.f32 0.03125, %v519_v20  ;;  %vm582_vm6 = vmor %vm580_vm5, %vm581_vm4 }
 0x226   :  { %v573_v26 = vsel %vm572_vm3, %v1764_v1, %v569_v15  ;;  %v576_v27 = vmul.f32 %v1766_v13, %v575_v16 }
 0x227   :  { %v1768_v28 = vpop.eup %1767  ;;  %v724_v32 = vmul.f32 %v573_v26, %v2089_v40  ;;  %v550_v33 = vadd.f32 1e-05, %v534_v24  ;;  %v2194_v18 = vadd.f32 1e-05, %v541_v10 }
 0x228   :  { %v577_v34 = vmul.f32 0.5, %v576_v27  ;;  %v645_v37 = vmul.f32 %v1768_v28, %v556_v9  ;;  %vm651_vm7 = vweird.f32 %v1768_v28 }
 0x229   :  { %v744_v38 = vmul.f32 %v2186_v21, %v724_v32  ;;  %1769 = vrsqrt.f32 %v550_v33  ;;  %vm652_vm9 = vmor %vm650_vm8, %vm651_vm7  ;;  %vm590_vm10 = vweird.f32 %v550_v33  ;;  %vm660_vm14 = vweird.f32 %v2194_v18 }
 0x22a   :  { %v578_v19 = vsub.f32 1.5, %v577_v34  ;;  %v646_v41 = vmul.f32 %v1768_v28, %v645_v37  ;;  %1771 = vrsqrt.f32 %v2194_v18 }
 0x22b   :  { %v2199_v42 = vadd.f32 %v2191_v30, %v744_v38 }
 0x22c   :  { %v579_v43 = vmul.f32 %v1766_v13, %v578_v19  ;;  %v647_v44 = vmul.f32 0.5, %v646_v41  ;;  %v507_v40 = vpop.xlane.xlu1 %506 }
 0x22d   :  { %v2202_v45 = vmul.f32 0.70710677, %v2199_v42  ;;  %v535_v46 = vmul.f32 0.03125, %v507_v40 }
 0x22e   :  { %v583_v22 = vsel %vm582_vm6, %v1766_v13, %v579_v43  ;;  %v648_v50 = vsub.f32 1.5, %v647_v44 }
 0x22f   :  { %v1770_v51 = vpop.eup %1769  ;;  %v812_v54 = vmul.f32 %v2202_v45, %v2202_v45  ;;  %v725_v55 = vmul.f32 %v583_v22, %v2095_v47  ;;  %v2211_v0 = vadd.f32 1e-05, %v535_v46 }
 0x230   :  { %v1772_v56 = vpop.eup %1771  ;;  %v649_v29 = vmul.f32 %v1768_v28, %v648_v50  ;;  %v585_v25 = vmul.f32 %v1770_v51, %v550_v33  ;;  %v521_v7 = vpop.xlane.xlu2 %520  ;;  %vm591_vm11 = vweird.f32 %v1770_v51 }
 0x231   :  { %v2207_v58 = vmin.f32 %v812_v54, 16.0  ;;  %v745_v60 = vmul.f32 %v2186_v21, %v725_v55  ;;  %v655_v61 = vmul.f32 %v1772_v56, %v2194_v18  ;;  %1773 = vrsqrt.f32 %v2211_v0  ;;  %vm592_vm13 = vmor %vm590_vm10, %vm591_vm11 }
 0x232   :  { %v653_v63 = vsel %vm652_vm9, %v1768_v28, %v649_v29  ;;  %v586_v35 = vmul.f32 %v1770_v51, %v585_v25  ;;  %v542_v24 = vmul.f32 0.03125, %v521_v7  ;;  %vm661_vm12 = vweird.f32 %v1772_v56 }
 0x233   :  { %v814_v1 = vmul.f32 2.1237322e-06, %v2207_v58  ;;  %v825_v3 = vmul.f32 3.8918573e-05, %v2207_v58  ;;  %v2216_v47 = vadd.f32 %v2191_v30, %v745_v60  ;;  %v732_v4 = vmul.f32 %v653_v63, %v2101_v52  ;;  %vm662_vm15 = vmor %vm660_vm14, %vm661_vm12 }
 0x234   :  { %v587_v6 = vmul.f32 0.5, %v586_v35  ;;  %v656_v53 = vmul.f32 %v1772_v56, %v655_v61  ;;  %v2243_v33 = vadd.f32 1e-05, %v542_v24  ;;  %vm600_vm1 = vweird.f32 %v2211_v0 }
 0x235   :  { %v815_v9 = vadd.f32 0.00028619796, %v814_v1  ;;  %v826_v5 = vadd.f32 0.001143296, %v825_v3  ;;  %v752_v12 = vmul.f32 %v2186_v21, %v732_v4  ;;  %v2222_v13 = vmul.f32 0.70710677, %v2216_v47 }
 0x236   :  { %v588_v15 = vsub.f32 1.5, %v587_v6  ;;  %v657_v16 = vmul.f32 0.5, %v656_v53  ;;  %1775 = vrsqrt.f32 %v2243_v33  ;;  %vm670_vm11 = vweird.f32 %v2243_v33 }
 0x237   :  { %v816_v17 = vmul.f32 %v815_v9, %v2207_v58  ;;  %v827_v52 = vmul.f32 %v826_v5, %v2207_v58  ;;  %v2227_v20 = vadd.f32 %v2191_v30, %v752_v12  ;;  %v852_v10 = vmul.f32 %v2222_v13, %v2222_v13  ;;  %v2238_v41 = vpop.eup %1773 }
 0x238   :  { %v589_v26 = vmul.f32 %v1770_v51, %v588_v15  ;;  %v658_v27 = vsub.f32 1.5, %v657_v16  ;;  %v595_v61 = vmul.f32 %v2238_v41, %v2211_v0  ;;  %vm601_vm0 = vweird.f32 %v2238_v41 }
 0x239   :  { %v817_v28 = vadd.f32 0.0036580483, %v816_v17  ;;  %v828_v32 = vadd.f32 0.014752088, %v827_v52  ;;  %v2233_v34 = vmin.f32 %v852_v10, 16.0  ;;  %vm2359_vm8 = vmor %vm600_vm1, %vm601_vm0 }
 0x23a   :  { %v2236_v37 = vmul.f32 0.70710677, %v2227_v20  ;;  %v593_v38 = vsel %vm592_vm13, %v1770_v51, %v589_v26  ;;  %v659_v19 = vmul.f32 %v1772_v56, %v658_v27  ;;  %v596_v26 = vmul.f32 %v2238_v41, %v595_v61 }
 0x23b   :  { %v818_v43 = vmul.f32 %v817_v28, %v2207_v58  ;;  %v829_v44 = vmul.f32 %v828_v32, %v2207_v58  ;;  %v726_v40 = vmul.f32 %v593_v38, %v2108_v59  ;;  %v854_v18 = vmul.f32 2.1237322e-06, %v2233_v34 }
 0x23c   :  { %v865_v46 = vmul.f32 3.8918573e-05, %v2233_v34  ;;  %v1132_v22 = vmul.f32 %v2236_v37, %v2236_v37  ;;  %v663_v50 = vsel %vm662_vm15, %v1772_v56, %v659_v19 }
 0x23d   :  { %v819_v51 = vadd.f32 0.05243302, %v818_v43  ;;  %v830_v54 = vadd.f32 0.112945676, %v829_v44  ;;  %v746_v55 = vmul.f32 %v2186_v21, %v726_v40  ;;  %v733_v29 = vmul.f32 %v663_v50, %v2111_v62 }
 0x23e   :  { %v855_v25 = vadd.f32 0.00028619796, %v854_v18  ;;  %v866_v60 = vadd.f32 0.001143296, %v865_v46  ;;  %v2251_v59 = vmin.f32 %v1132_v22, 16.0  ;;  %v2284_v18 = vmul.f32 0.5, %v2199_v42 }
 0x23f   :  { %v820_v63 = vmul.f32 %v819_v51, %v2207_v58  ;;  %v831_v35 = vmul.f32 %v830_v54, %v2207_v58  ;;  %v766_v1 = vadd.f32 %v2191_v30, %v746_v55  ;;  %v753_v56 = vmul.f32 %v2186_v21, %v733_v29  ;;  %v2292_v54 = vpop.eup %1775 }
 0x240   :  { %v856_v3 = vmul.f32 %v855_v25, %v2233_v34  ;;  %v867_v4 = vmul.f32 %v866_v60, %v2233_v34  ;;  %v1134_v62 = vmul.f32 2.1237322e-06, %v2251_v59  ;;  %v1145_v6 = vmul.f32 3.8918573e-05, %v2251_v59 }
 0x241   :  { %v821_v53 = vadd.f32 0.18741608, %v820_v63  ;;  %v832_v7 = vadd.f32 0.4994258, %v831_v35  ;;  %v2264_v12 = vadd.f32 %v2191_v30, %v753_v56  ;;  %v2270_v10 = vmul.f32 0.70710677, %v766_v1 }
 0x242   :  { %v857_v9 = vadd.f32 0.0036580483, %v856_v3  ;;  %v868_v5 = vadd.f32 0.014752088, %v867_v4  ;;  %v1135_v16 = vadd.f32 0.00028619796, %v1134_v62  ;;  %vm671_vm0 = vweird.f32 %v2292_v54 }
 0x243   :  { %v833_v15 = vmul.f32 %v832_v7, %v2207_v58  ;;  %v1146_v17 = vadd.f32 0.001143296, %v1145_v6  ;;  %v822_v27 = vmul.f32 %v821_v53, %v2207_v58  ;;  %v892_v44 = vmul.f32 %v2270_v10, %v2270_v10 }
 0x244   :  { %v858_v52 = vmul.f32 %v857_v9, %v2233_v34  ;;  %v869_v24 = vmul.f32 %v868_v5, %v2233_v34  ;;  %v1136_v32 = vmul.f32 %v1135_v16, %v2251_v59  ;;  %v2281_v40 = vmul.f32 0.70710677, %v2264_v12 }
 0x245   :  { %v2274_v28 = vadd.f32 1.0, %v833_v15  ;;  %v1147_v38 = vmul.f32 %v1146_v17, %v2251_v59  ;;  %v2288_v58 = vmul.f32 0.5, %v2216_v47  ;;  %v597_v51 = vmul.f32 0.5, %v596_v26 }
 0x246   :  { %v859_v19 = vadd.f32 0.05243302, %v858_v52  ;;  %v870_v43 = vadd.f32 0.112945676, %v869_v24  ;;  %v1137_v50 = vadd.f32 0.0036580483, %v1136_v32  ;;  %v1172_v63 = vmul.f32 %v2281_v40, %v2281_v40 }
 0x247   :  { %1777 = vrcp.f32 %v2274_v28  ;;  %v2295_v55 = vmul.f32 0.5, %v2227_v20  ;;  %v1148_v29 = vadd.f32 0.014752088, %v1147_v38  ;;  %v2297_v25 = vmul.f32 0.5, %v766_v1 }
 0x248   :  { %v860_v46 = vmul.f32 %v859_v19, %v2233_v34  ;;  %v871_v22 = vmul.f32 %v870_v43, %v2233_v34  ;;  %v2299_v42 = vmin.f32 %v892_v44, 16.0  ;;  %v823_v60 = vadd.f32 1.1283791, %v822_v27 }
 0x249   :  { %v1138_v47 = vmul.f32 %v1137_v50, %v2251_v59  ;;  %v1149_v56 = vmul.f32 %v1148_v29, %v2251_v59  ;;  %v844_v4 = vand.u32 2147483647, %v2274_v28  ;;  %v846_v1 = vand.u32 2147483648, %v2274_v28 }
 0x24a   :  { %v872_v61 = vadd.f32 0.4994258, %v871_v22  ;;  %v861_v35 = vadd.f32 0.18741608, %v860_v46  ;;  %v894_v3 = vmul.f32 2.1237322e-06, %v2299_v42  ;;  %v824_v15 = vmul.f32 %v823_v60, %v2202_v45 }
 0x24b   :  { %v905_v20 = vmul.f32 3.8918573e-05, %v2299_v42  ;;  %v598_v6 = vsub.f32 1.5, %v597_v51  ;;  %v1139_v7 = vadd.f32 0.05243302, %v1138_v47  ;;  %v2315_v52 = vmin.f32 %v1172_v63, 16.0 }
 0x24c   :  { %v873_v62 = vmul.f32 %v872_v61, %v2233_v34  ;;  %v1150_v9 = vadd.f32 0.112945676, %v1149_v56  ;;  %v895_v5 = vadd.f32 0.00028619796, %v894_v3  ;;  %v862_v24 = vmul.f32 %v861_v35, %v2233_v34 }
 0x24d   :  { %v1778_v53 = vpop.eup %1777  ;;  %v906_v32 = vadd.f32 0.001143296, %v905_v20  ;;  %vm840_vm2 = vweird.f32 %v2274_v28  ;;  %vm2322_vm3 = vcmp.eq.f32.partialorder %v844_v4, 8.507059e+37  ;;  %v847_v19 = vor.u32 1.1754944e-38, %v846_v1 }
 0x24e   :  { %v836_v16 = vmul.f32 %v1778_v53, %v2274_v28  ;;  %v2313_v17 = vadd.f32 1.0, %v873_v62  ;;  %v1151_v26 = vmul.f32 %v1150_v9, %v2251_v59  ;;  %v896_v27 = vmul.f32 %v895_v5, %v2299_v42 }
 0x24f   :  { %vm841_vm4 = vweird.f32 %v1778_v53  ;;  %v1140_v34 = vmul.f32 %v1139_v7, %v2251_v59  ;;  %v907_v43 = vmul.f32 %v906_v32, %v2299_v42  ;;  %v1174_v50 = vmul.f32 2.1237322e-06, %v2315_v52 }
 0x250   :  { %v837_v38 = vsub.f32 1.0, %v836_v16  ;;  %1779 = vrcp.f32 %v2313_v17  ;;  %v1152_v46 = vadd.f32 0.4994258, %v1151_v26  ;;  %v897_v22 = vadd.f32 0.0036580483, %v896_v27  ;;  %vm842_vm5 = vmor %vm840_vm2, %vm841_vm4 }
 0x251   :  { %v863_v51 = vadd.f32 1.1283791, %v862_v24  ;;  %v884_v29 = vand.u32 2147483647, %v2313_v17  ;;  %v908_v60 = vadd.f32 0.014752088, %v907_v43  ;;  %v599_v61 = vmul.f32 %v2238_v41, %v598_v6  ;;  %vm672_vm2 = vmor %vm670_vm11, %vm671_vm0 }
 0x252   :  { %v838_v44 = vmul.f32 %v1778_v53, %v837_v38  ;;  %v1153_v63 = vmul.f32 %v1152_v46, %v2251_v59  ;;  %v898_v35 = vmul.f32 %v897_v22, %v2299_v42  ;;  %v1175_v56 = vadd.f32 0.00028619796, %v1174_v50 }
 0x253   :  { %v1141_v3 = vadd.f32 0.18741608, %v1140_v34  ;;  %v909_v20 = vmul.f32 %v908_v60, %v2299_v42  ;;  %v1185_v4 = vmul.f32 3.8918573e-05, %v2315_v52  ;;  %v665_v1 = vmul.f32 %v2292_v54, %v2243_v33  ;;  %v1492_v33 = vld [vmem:[%s3065_s2 + $0x40] sm:$0xff] }
 0x254   :  { %v839_v47 = vadd.f32 %v1778_v53, %v838_v44  ;;  %v2341_v7 = vadd.f32 1.0, %v1153_v63  ;;  %v899_v9 = vadd.f32 0.05243302, %v898_v35  ;;  %v1176_v5 = vmul.f32 %v1175_v56, %v2315_v52 }
 0x255   :  { %v864_v28 = vmul.f32 %v863_v51, %v2222_v13  ;;  %vm880_vm6 = vweird.f32 %v2313_v17  ;;  %vm2349_vm7 = vcmp.eq.f32.partialorder %v884_v29, 8.507059e+37  ;;  %v603_v45 = vsel %vm2359_vm8, %v2238_v41, %v599_v61  ;;  %v1484_v41 = vld [vmem:[%s3065_s2] sm:$0xff] }
 0x256   :  { %v1780_v62 = vpop.eup %1779  ;;  %v843_v6 = vsel %vm842_vm5, %v1778_v53, %v839_v47  ;;  %v886_v53 = vand.u32 2147483648, %v2313_v17  ;;  %1781 = vrcp.f32 %v2341_v7  ;;  %v900_v38 = vmul.f32 %v899_v9, %v2299_v42 }
 0x257   :  { %v848_v16 = vsel %vm2322_vm3, %v847_v19, %v843_v6  ;;  %v876_v24 = vmul.f32 %v1780_v62, %v2313_v17  ;;  %v1142_v34 = vmul.f32 %v1141_v3, %v2251_v59  ;;  %v1177_v43 = vadd.f32 0.0036580483, %v1176_v5 }
 0x258   :  { %v849_v26 = vmul.f32 %v848_v16, %v824_v15  ;;  %v910_v15 = vadd.f32 0.112945676, %v909_v20  ;;  %v1186_v44 = vadd.f32 0.001143296, %v1185_v4  ;;  %vm881_vm9 = vweird.f32 %v1780_v62 }
 0x259   :  { %v877_v13 = vsub.f32 1.0, %v876_v24  ;;  %v901_v0 = vadd.f32 0.18741608, %v900_v38  ;;  %v1178_v51 = vmul.f32 %v1177_v43, %v2315_v52  ;;  %v727_v60 = vmul.f32 %v603_v45, %v2119_v2  ;;  %vm882_vm10 = vmor %vm880_vm6, %vm881_vm9 }
 0x25a   :  { %v1653_v19 = vclamps-f32 %v849_v26, 1.0  ;;  %v911_v22 = vmul.f32 %v910_v15, %v2299_v42  ;;  %v1187_v29 = vmul.f32 %v1186_v44, %v2315_v52  ;;  %v887_v59 = vor.u32 1.1754944e-38, %v886_v53 }
 0x25b   :  { %v878_v46 = vmul.f32 %v1780_v62, %v877_v13  ;;  %v902_v47 = vmul.f32 %v901_v0, %v2299_v42  ;;  %v1179_v3 = vadd.f32 0.05243302, %v1178_v51  ;;  %v747_v4 = vmul.f32 %v2186_v21, %v727_v60  ;;  %v1485_v0 = vld [vmem:[%s3065_s2 + $0x8] sm:$0xff] }
 0x25c   :  { %v1452_v50 = vadd.f32 1.0, %v1653_v19  ;;  %v912_v63 = vadd.f32 0.4994258, %v911_v22  ;;  %v1782_v35 = vpop.eup %1781  ;;  %v1188_v20 = vadd.f32 0.014752088, %v1187_v29  ;;  %v666_v17 = vmul.f32 %v2292_v54, %v665_v1 }
 0x25d   :  { %v879_v61 = vadd.f32 %v1780_v62, %v878_v46  ;;  %v1143_v6 = vadd.f32 1.1283791, %v1142_v34  ;;  %v1156_v9 = vmul.f32 %v1782_v35, %v2341_v7  ;;  %v1164_v5 = vand.u32 2147483647, %v2341_v7  ;;  %v509_v46 = vpop.xlane.xlu2 %508 }
 0x25e   :  { %v1468_v56 = vmul.f32 %v1452_v50, %v2284_v18  ;;  %v913_v18 = vmul.f32 %v912_v63, %v2299_v42  ;;  %v1166_v32 = vand.u32 2147483648, %v2341_v7  ;;  %v903_v13 = vadd.f32 1.1283791, %v902_v47 }
 0x25f   :  { %v883_v2 = vsel %vm882_vm10, %v1780_v62, %v879_v61  ;;  %v1157_v53 = vsub.f32 1.0, %v1156_v9  ;;  %v1189_v62 = vmul.f32 %v1188_v20, %v2315_v52  ;;  %v1180_v27 = vmul.f32 %v1179_v3, %v2315_v52 }
 0x260   :  { %v2382_v16 = vadd.f32 %v1484_v41, %v1468_v56  ;;  %v888_v24 = vsel %vm2349_vm7, %v887_v59, %v883_v2  ;;  %v2394_v38 = vadd.f32 1.0, %v913_v18  ;;  %v2398_v42 = vadd.f32 %v2191_v30, %v747_v4 }
 0x261   :  { %v889_v26 = vmul.f32 %v888_v24, %v864_v28  ;;  %v1158_v28 = vmul.f32 %v1782_v35, %v1157_v53  ;;  %vm1161_vm12 = vweird.f32 %v1782_v35  ;;  %v1190_v15 = vadd.f32 0.112945676, %v1189_v62 }
 0x262   :  { %1516 = vst [vmem:[%s3070_s7] sm:$0xff] %v2382_v16  ;;  %v1144_v45 = vmul.f32 %v1143_v6, %v2236_v37  ;;  %vm1160_vm13 = vweird.f32 %v2341_v7  ;;  %1783 = vrcp.f32 %v2394_v38  ;;  %v667_v19 = vmul.f32 0.5, %v666_v17 }
 0x263   :  { %v1654_v1 = vclamps-f32 %v889_v26, 1.0  ;;  %v1159_v43 = vadd.f32 %v1782_v35, %v1158_v28  ;;  %vm1165_vm14 = vcmp.eq.f32.partialorder %v1164_v5, 8.507059e+37  ;;  %v1191_v44 = vmul.f32 %v1190_v15, %v2315_v52  ;;  %vm1162_vm15 = vmor %vm1160_vm13, %vm1161_vm12 }
 0x264   :  { %v1167_v22 = vor.u32 1.1754944e-38, %v1166_v32  ;;  %v2409_v50 = vmul.f32 %v903_v13, %v2270_v10  ;;  %v1181_v37 = vadd.f32 0.18741608, %v1180_v27  ;;  %v2412_v7 = vmul.f32 0.70710677, %v2398_v42 }
 0x265   :  { %v1453_v34 = vadd.f32 1.0, %v1654_v1  ;;  %v1163_v29 = vsel %vm1162_vm15, %v1782_v35, %v1159_v43  ;;  %v1192_v60 = vadd.f32 0.4994258, %v1191_v44  ;;  %v668_v59 = vsub.f32 1.5, %v667_v19 }
 0x266   :  { %v1168_v41 = vsel %vm1165_vm14, %v1167_v22, %v1163_v29  ;;  %v932_v61 = vmul.f32 %v2412_v7, %v2412_v7  ;;  %v536_v47 = vmul.f32 0.03125, %v509_v46  ;;  %vm920_vm1 = vweird.f32 %v2394_v38  ;;  %v525_v29 = vpop.xlane.xlu1 %524 }
 0x267   :  { %v1469_v51 = vmul.f32 %v1453_v34, %v2288_v58  ;;  %v1169_v56 = vmul.f32 %v1168_v41, %v1144_v45  ;;  %v924_v10 = vand.u32 2147483647, %v2394_v38  ;;  %v1193_v3 = vmul.f32 %v1192_v60, %v2315_v52 }
 0x268   :  { %v1784_v20 = vpop.eup %1783  ;;  %v1182_v58 = vmul.f32 %v1181_v37, %v2315_v52  ;;  %v2422_v35 = vmin.f32 %v932_v61, 16.0  ;;  %v669_v4 = vmul.f32 %v2292_v54, %v668_v59  ;;  %v2425_v2 = vadd.f32 1e-05, %v536_v47  ;;  %v523_v52 = vpop.xlane.xlu0 %522 }
 0x269   :  { %v1501_v63 = vadd.f32 %v1485_v0, %v1469_v51  ;;  %v1661_v9 = vclamps-f32 %v1169_v56, 1.0  ;;  %v916_v5 = vmul.f32 %v1784_v20, %v2394_v38  ;;  %v926_v24 = vand.u32 2147483648, %v2394_v38 }
 0x26a   :  { %v2437_v18 = vadd.f32 1.0, %v1193_v3  ;;  %v934_v17 = vmul.f32 2.1237322e-06, %v2422_v35  ;;  %v945_v26 = vmul.f32 3.8918573e-05, %v2422_v35  ;;  %v673_v53 = vsel %vm672_vm2, %v2292_v54, %v669_v4 }
 0x26b   :  { %1517 = vst [vmem:[%s3070_s7 + $0x8] sm:$0xff] %v1501_v63  ;;  %v1688_v6 = vpack.c.bf16 %v1501_v63, %v2382_v16  ;;  %v1460_v16 = vadd.f32 1.0, %v1661_v9  ;;  %v917_v32 = vsub.f32 1.0, %v916_v5  ;;  %v734_v62 = vmul.f32 %v673_v53, %v2125_v11 }
 0x26c   :  { %1785 = vrsqrt.f32 %v2425_v2  ;;  %vm921_vm3 = vweird.f32 %v1784_v20  ;;  %v1183_v13 = vadd.f32 1.1283791, %v1182_v58  ;;  %v543_v27 = vmul.f32 0.03125, %v523_v52 }
 0x26d   :  { %1689 = vst [vmem:[#allocation3] sm:$0xff] %v1688_v6   ;;  %1787 = vrcp.f32 %v2437_v18  ;;  %v1476_v1 = vmul.f32 %v1460_v16, %v2295_v55  ;;  %v918_v28 = vmul.f32 %v1784_v20, %v917_v32  ;;  %v935_v54 = vadd.f32 0.00028619796, %v934_v17  ;;  %vm922_vm5 = vmor %vm920_vm1, %vm921_vm3 }
 0x26e   :  { %v946_v15 = vadd.f32 0.001143296, %v945_v26  ;;  %vm2449_vm4 = vcmp.eq.f32.partialorder %v924_v10, 8.507059e+37  ;;  %v927_v11 = vor.u32 1.1754944e-38, %v926_v24  ;;  %v1206_v19 = vand.u32 2147483648, %v2437_v18 }
 0x26f   :  { %v754_v34 = vmul.f32 %v2186_v21, %v734_v62  ;;  %v2455_v43 = vadd.f32 %v1492_v33, %v1476_v1  ;;  %v919_v44 = vadd.f32 %v1784_v20, %v918_v28  ;;  %v936_v46 = vmul.f32 %v935_v54, %v2422_v35  ;;  %v1486_v33 = vld [vmem:[%s3065_s2 + $0x10] sm:$0xff] }
 0x270   :  { %v947_v0 = vmul.f32 %v946_v15, %v2422_v35  ;;  %v1184_v55 = vmul.f32 %v1183_v13, %v2281_v40  ;;  %v1204_v22 = vand.u32 2147483647, %v2437_v18  ;;  %v2467_v51 = vadd.f32 1e-05, %v543_v27 }
 0x271   :  { %v2465_v37 = vadd.f32 %v2191_v30, %v754_v34  ;;  %1524 = vst [vmem:[%s3070_s7 + $0x40] sm:$0xff] %v2455_v43  ;;  %v923_v41 = vsel %vm922_vm5, %v1784_v20, %v919_v44  ;;  %vm1200_vm6 = vweird.f32 %v2437_v18  ;;  %v937_v38 = vadd.f32 0.0036580483, %v936_v46 }
 0x272   :  { %v2469_v60 = vpop.eup %1785  ;;  %v948_v40 = vadd.f32 0.014752088, %v947_v0  ;;  %v928_v59 = vsel %vm2449_vm4, %v927_v11, %v923_v41  ;;  %v1207_v47 = vor.u32 1.1754944e-38, %v1206_v19  ;;  %v544_v58 = vmul.f32 0.03125, %v525_v29 }
 0x273   :  { %v1788_v61 = vpop.eup %1787  ;;  %v2479_v63 = vmul.f32 0.70710677, %v2465_v37  ;;  %v605_v56 = vmul.f32 %v2469_v60, %v2425_v2  ;;  %v929_v10 = vmul.f32 %v928_v59, %v2409_v50  ;;  %v938_v20 = vmul.f32 %v937_v38, %v2422_v35  ;;  %v511_v59 = vpop.xlane.xlu0 %510 }
 0x274   :  { %v1196_v3 = vmul.f32 %v1788_v61, %v2437_v18  ;;  %vm1201_vm7 = vweird.f32 %v1788_v61  ;;  %v949_v4 = vmul.f32 %v948_v40, %v2422_v35  ;;  %1789 = vrsqrt.f32 %v2467_v51 }
 0x275   :  { %v1212_v6 = vmul.f32 %v2479_v63, %v2479_v63  ;;  %v606_v9 = vmul.f32 %v2469_v60, %v605_v56  ;;  %v1655_v5 = vclamps-f32 %v929_v10, 1.0  ;;  %v939_v52 = vadd.f32 0.05243302, %v938_v20  ;;  %vm1202_vm9 = vmor %vm1200_vm6, %vm1201_vm7 }
 0x276   :  { %v1197_v24 = vsub.f32 1.0, %v1196_v3  ;;  %v950_v17 = vadd.f32 0.112945676, %v949_v4  ;;  %vm611_vm8 = vweird.f32 %v2469_v60  ;;  %v2495_v62 = vadd.f32 1e-05, %v544_v58 }
 0x277   :  { %v2491_v50 = vmin.f32 %v1212_v6, 16.0  ;;  %v607_v26 = vmul.f32 0.5, %v606_v9  ;;  %v1454_v53 = vadd.f32 1.0, %v1655_v5  ;;  %v940_v32 = vmul.f32 %v939_v52, %v2422_v35 }
 0x278   :  { %v1198_v16 = vmul.f32 %v1788_v61, %v1197_v24  ;;  %v951_v13 = vmul.f32 %v950_v17, %v2422_v35  ;;  %1791 = vrsqrt.f32 %v2495_v62  ;;  %vm1205_vm10 = vcmp.eq.f32.partialorder %v1204_v22, 8.507059e+37 }
 0x279   :  { %v1214_v27 = vmul.f32 2.1237322e-06, %v2491_v50  ;;  %v1225_v1 = vmul.f32 3.8918573e-05, %v2491_v50  ;;  %v608_v28 = vsub.f32 1.5, %v607_v26  ;;  %v1470_v54 = vmul.f32 %v1454_v53, %v2297_v25 }
 0x27a   :  { %v1199_v15 = vadd.f32 %v1788_v61, %v1198_v16  ;;  %v941_v45 = vadd.f32 0.18741608, %v940_v32  ;;  %v952_v11 = vadd.f32 0.4994258, %v951_v13  ;;  %v2509_v46 = vpop.eup %1789  ;;  %vm610_vm11 = vweird.f32 %v2425_v2 }
 0x27b   :  { %v1215_v19 = vadd.f32 0.00028619796, %v1214_v27  ;;  %v1226_v34 = vadd.f32 0.001143296, %v1225_v1  ;;  %v609_v44 = vmul.f32 %v2469_v60, %v608_v28  ;;  %v2511_v0 = vadd.f32 %v1486_v33, %v1470_v54  ;;  %vm612_vm12 = vmor %vm610_vm11, %vm611_vm8 }
 0x27c   :  { %v1203_v29 = vsel %vm1202_vm9, %v1788_v61, %v1199_v15  ;;  %v953_v41 = vmul.f32 %v952_v11, %v2422_v35  ;;  %v942_v22 = vmul.f32 %v941_v45, %v2422_v35  ;;  %v675_v61 = vmul.f32 %v2509_v46, %v2467_v51 }
 0x27d   :  { %v1208_v25 = vsel %vm1205_vm10, %v1207_v47, %v1203_v29  ;;  %v1216_v38 = vmul.f32 %v1215_v19, %v2491_v50  ;;  %v1227_v18 = vmul.f32 %v1226_v34, %v2491_v50  ;;  %1518 = vst [vmem:[%s3070_s7 + $0x10] sm:$0xff] %v2511_v0  ;;  %v613_v2 = vsel %vm612_vm12, %v2469_v60, %v609_v44 }
 0x27e   :  { %v1209_v40 = vmul.f32 %v1208_v25, %v1184_v55  ;;  %v2527_v47 = vadd.f32 1.0, %v953_v41  ;;  %v728_v3 = vmul.f32 %v613_v2, %v2132_v8  ;;  %v2530_v20 = vpop.eup %1791  ;;  %v676_v4 = vmul.f32 %v2509_v46, %v675_v61  ;;  %v1493_v8 = vld [vmem:[%s3065_s2 + $0x48] sm:$0xff] }
 0x27f   :  { %v1217_v56 = vadd.f32 0.0036580483, %v1216_v38  ;;  %v1228_v10 = vadd.f32 0.014752088, %v1227_v18  ;;  %v789_v55 = vmul.f32 0.5, %v2264_v12  ;;  %v537_v35 = vmul.f32 0.03125, %v511_v59 }
 0x280   :  { %v1662_v58 = vclamps-f32 %v1209_v40, 1.0  ;;  %1793 = vrcp.f32 %v2527_v47  ;;  %v748_v5 = vmul.f32 %v2186_v21, %v728_v3  ;;  %v2542_v24 = vmul.f32 0.5, %v2398_v42 }
 0x281   :  { %v1218_v6 = vmul.f32 %v1217_v56, %v2491_v50  ;;  %v1229_v9 = vmul.f32 %v1228_v10, %v2491_v50  ;;  %v943_v52 = vadd.f32 1.1283791, %v942_v22  ;;  %v677_v17 = vmul.f32 0.5, %v676_v4 }
 0x282   :  { %v1461_v60 = vadd.f32 1.0, %v1662_v58  ;;  %v685_v12 = vmul.f32 %v2530_v20, %v2495_v62  ;;  %v2547_v32 = vadd.f32 %v2191_v30, %v748_v5  ;;  %vm680_vm13 = vweird.f32 %v2467_v51 }
 0x283   :  { %v1219_v53 = vadd.f32 0.05243302, %v1218_v6  ;;  %v1230_v16 = vadd.f32 0.112945676, %v1229_v9  ;;  %v678_v33 = vsub.f32 1.5, %v677_v17  ;;  %vm681_vm14 = vweird.f32 %v2509_v46 }
 0x284   :  { %v1477_v26 = vmul.f32 %v1461_v60, %v789_v55  ;;  %v686_v13 = vmul.f32 %v2530_v20, %v685_v12  ;;  %vm690_vm15 = vweird.f32 %v2495_v62  ;;  %v2554_v1 = vadd.f32 1e-05, %v537_v35  ;;  %vm682_vm0 = vmor %vm680_vm13, %vm681_vm14 }
 0x285   :  { %v1231_v27 = vmul.f32 %v1230_v16, %v2491_v50  ;;  %v944_v54 = vmul.f32 %v943_v52, %v2412_v7  ;;  %v2558_v15 = vmul.f32 0.70710677, %v2547_v32  ;;  %v679_v45 = vmul.f32 %v2509_v46, %v678_v33 }
 0x286   :  { %v1509_v42 = vadd.f32 %v1493_v8, %v1477_v26  ;;  %v1794_v28 = vpop.eup %1793  ;;  %v687_v11 = vmul.f32 0.5, %v686_v13  ;;  %v1220_v44 = vmul.f32 %v1219_v53, %v2491_v50  ;;  %vm691_vm1 = vweird.f32 %v2530_v20 }
 0x287   :  { %v956_v34 = vmul.f32 %v1794_v28, %v2527_v47  ;;  %v1232_v7 = vadd.f32 0.4994258, %v1231_v27  ;;  %v972_v29 = vmul.f32 %v2558_v15, %v2558_v15  ;;  %v683_v25 = vsel %vm682_vm0, %v2509_v46, %v679_v45  ;;  %vm692_vm3 = vmor %vm690_vm15, %vm691_vm1 }
 0x288   :  { %1525 = vst [vmem:[%s3070_s7 + $0x48] sm:$0xff] %v1509_v42  ;;  %v1708_v19 = vpack.c.bf16 %v1509_v42, %v2455_v43  ;;  %v688_v41 = vsub.f32 1.5, %v687_v11  ;;  %v964_v38 = vand.u32 2147483647, %v2527_v47  ;;  %v735_v18 = vmul.f32 %v683_v25, %v2135_v23  ;;  %v513_v23 = vpop.xlane.xlu1 %512 }
 0x289   :  { %v957_v43 = vsub.f32 1.0, %v956_v34  ;;  %1795 = vrsqrt.f32 %v2554_v1  ;;  %v966_v51 = vand.u32 2147483648, %v2527_v47  ;;  %v1233_v40 = vmul.f32 %v1232_v7, %v2491_v50  ;;  %v529_v7 = vpop.xlane.xlu0 %528 }
 0x28a   :  { %1728 = vst [vmem:[#allocation3 + $0x20] sm:$0xff] %v1708_v19   ;;  %v2580_v22 = vmin.f32 %v972_v29, 16.0  ;;  %v689_v2 = vmul.f32 %v2530_v20, %v688_v41  ;;  %vm961_vm2 = vweird.f32 %v1794_v28  ;;  %v1221_v46 = vadd.f32 0.18741608, %v1220_v44 }
 0x28b   :  { %v958_v61 = vmul.f32 %v1794_v28, %v957_v43  ;;  %v755_v59 = vmul.f32 %v2186_v21, %v735_v18  ;;  %v2588_v56 = vadd.f32 1.0, %v1233_v40  ;;  %vm960_vm4 = vweird.f32 %v2527_v47 }
 0x28c   :  { %v974_v10 = vmul.f32 2.1237322e-06, %v2580_v22  ;;  %v985_v3 = vmul.f32 3.8918573e-05, %v2580_v22  ;;  %v693_v58 = vsel %vm692_vm3, %v2530_v20, %v689_v2  ;;  %vm962_vm5 = vmor %vm960_vm4, %vm961_vm2  ;;  %vm965_vm6 = vcmp.eq.f32.partialorder %v964_v38, 8.507059e+37 }
 0x28d   :  { %v959_v4 = vadd.f32 %v1794_v28, %v958_v61  ;;  %v2595_v55 = vadd.f32 %v2191_v30, %v755_v59  ;;  %v736_v35 = vmul.f32 %v693_v58, %v2143_v14  ;;  %v967_v62 = vor.u32 1.1754944e-38, %v966_v51 }
 0x28e   :  { %1797 = vrcp.f32 %v2588_v56  ;;  %v538_v60 = vmul.f32 0.03125, %v513_v23  ;;  %v1222_v5 = vmul.f32 %v1221_v46, %v2491_v50  ;;  %v975_v20 = vadd.f32 0.00028619796, %v974_v10 }
 0x28f   :  { %v2599_v6 = vpop.eup %1795  ;;  %v963_v9 = vsel %vm962_vm5, %v1794_v28, %v959_v4  ;;  %v986_v8 = vadd.f32 0.001143296, %v985_v3  ;;  %v1244_v47 = vand.u32 2147483647, %v2588_v56  ;;  %v1246_v17 = vand.u32 2147483648, %v2588_v56 }
 0x290   :  { %v968_v52 = vsel %vm965_vm6, %v967_v62, %v963_v9  ;;  %v2605_v14 = vmul.f32 0.70710677, %v2595_v55  ;;  %v976_v26 = vmul.f32 %v975_v20, %v2580_v22  ;;  %v756_v16 = vmul.f32 %v2186_v21, %v736_v35 }
 0x291   :  { %v969_v12 = vmul.f32 %v968_v52, %v944_v54  ;;  %v987_v53 = vmul.f32 %v986_v8, %v2580_v22  ;;  %v2611_v33 = vmul.f32 0.5, %v2465_v37  ;;  %v615_v13 = vmul.f32 %v2599_v6, %v2554_v1 }
 0x292   :  { %v1252_v50 = vmul.f32 %v2605_v14, %v2605_v14  ;;  %v2617_v42 = vadd.f32 1e-05, %v538_v60  ;;  %v977_v28 = vadd.f32 0.0036580483, %v976_v26  ;;  %v2620_v45 = vadd.f32 %v2191_v30, %v756_v16  ;;  %v1487_v30 = vld [vmem:[%s3065_s2 + $0x18] sm:$0xff] }
 0x293   :  { %v1656_v27 = vclamps-f32 %v969_v12, 1.0  ;;  %v988_v54 = vadd.f32 0.014752088, %v987_v53  ;;  %v1223_v19 = vadd.f32 1.1283791, %v1222_v5  ;;  %vm1240_vm7 = vweird.f32 %v2588_v56 }
 0x294   :  { %v1798_v11 = vpop.eup %1797  ;;  %v1247_v21 = vor.u32 1.1754944e-38, %v1246_v17  ;;  %v2623_v37 = vmin.f32 %v1252_v50, 16.0  ;;  %vm2626_vm8 = vcmp.eq.f32.partialorder %v1244_v47, 8.507059e+37  ;;  %v978_v29 = vmul.f32 %v977_v28, %v2580_v22 }
 0x295   :  { %v1455_v34 = vadd.f32 1.0, %v1656_v27  ;;  %v1236_v44 = vmul.f32 %v1798_v11, %v2588_v56  ;;  %v616_v25 = vmul.f32 %v2599_v6, %v615_v13  ;;  %v989_v41 = vmul.f32 %v988_v54, %v2580_v22 }
 0x296   :  { %v1254_v43 = vmul.f32 2.1237322e-06, %v2623_v37  ;;  %v1265_v38 = vmul.f32 3.8918573e-05, %v2623_v37  ;;  %1799 = vrsqrt.f32 %v2617_v42  ;;  %v979_v40 = vadd.f32 0.05243302, %v978_v29 }
 0x297   :  { %v1471_v18 = vmul.f32 %v1455_v34, %v2542_v24  ;;  %v1237_v51 = vsub.f32 1.0, %v1236_v44  ;;  %v2641_v2 = vmul.f32 0.70710677, %v2620_v45  ;;  %vm1241_vm9 = vweird.f32 %v1798_v11 }
 0x298   :  { %v990_v61 = vadd.f32 0.112945676, %v989_v41  ;;  %v1255_v46 = vadd.f32 0.00028619796, %v1254_v43  ;;  %v1266_v59 = vadd.f32 0.001143296, %v1265_v38  ;;  %v980_v3 = vmul.f32 %v979_v40, %v2580_v22  ;;  %vm1242_vm10 = vmor %vm1240_vm7, %vm1241_vm9 }
 0x299   :  { %v1503_v23 = vadd.f32 %v1487_v30, %v1471_v18  ;;  %v1238_v10 = vmul.f32 %v1798_v11, %v1237_v51  ;;  %v1292_v58 = vmul.f32 %v2641_v2, %v2641_v2  ;;  %v617_v62 = vmul.f32 0.5, %v616_v25  ;;  %v1494_v51 = vld [vmem:[%s3065_s2 + $0x50] sm:$0xff] }
 0x29a   :  { %v991_v4 = vmul.f32 %v990_v61, %v2580_v22  ;;  %v1256_v24 = vmul.f32 %v1255_v46, %v2623_v37  ;;  %v1267_v35 = vmul.f32 %v1266_v59, %v2623_v37  ;;  %v981_v5 = vadd.f32 0.18741608, %v980_v3 }
 0x29b   :  { %1519 = vst [vmem:[%s3070_s7 + $0x18] sm:$0xff] %v1503_v23  ;;  %v1693_v60 = vpack.c.bf16 %v1503_v23, %v2511_v0  ;;  %v1239_v9 = vadd.f32 %v1798_v11, %v1238_v10  ;;  %v2653_v20 = vmin.f32 %v1292_v58, 16.0  ;;  %v1224_v52 = vmul.f32 %v1223_v19, %v2479_v63 }
 0x29c   :  { %v2655_v8 = vpop.eup %1799  ;;  %v992_v47 = vadd.f32 0.4994258, %v991_v4  ;;  %v1257_v17 = vadd.f32 0.0036580483, %v1256_v24  ;;  %v1268_v12 = vadd.f32 0.014752088, %v1267_v35  ;;  %v982_v53 = vmul.f32 %v981_v5, %v2580_v22 }
 0x29d   :  { %1725 = vst [vmem:[#allocation3 + $0x8] sm:$0xff] %v1693_v60   ;;  %v1243_v26 = vsel %vm1242_vm10, %v1798_v11, %v1239_v9  ;;  %v1294_v0 = vmul.f32 2.1237322e-06, %v2653_v20  ;;  %v1305_v16 = vmul.f32 3.8918573e-05, %v2653_v20  ;;  %v2670_v28 = vmul.f32 0.5, %v2547_v32 }
 0x29e   :  { %v1248_v50 = vsel %vm2626_vm8, %v1247_v21, %v1243_v26  ;;  %v993_v63 = vmul.f32 %v992_v47, %v2580_v22  ;;  %v1258_v13 = vmul.f32 %v1257_v17, %v2623_v37  ;;  %v1269_v56 = vmul.f32 %v1268_v12, %v2623_v37  ;;  %v515_v17 = vpop.xlane.xlu2 %514 }
 0x29f   :  { %v1249_v27 = vmul.f32 %v1248_v50, %v1224_v52  ;;  %v1295_v54 = vadd.f32 0.00028619796, %v1294_v0  ;;  %v1306_v11 = vadd.f32 0.001143296, %v1305_v16  ;;  %v618_v29 = vsub.f32 1.5, %v617_v62 }
 0x2a0   :  { %v2672_v19 = vadd.f32 1.0, %v993_v63  ;;  %v1259_v34 = vadd.f32 0.05243302, %v1258_v13  ;;  %v1270_v44 = vadd.f32 0.112945676, %v1269_v56  ;;  %vm620_vm11 = vweird.f32 %v2554_v1 }
 0x2a1   :  { %v1663_v25 = vclamps-f32 %v1249_v27, 1.0  ;;  %v1296_v21 = vmul.f32 %v1295_v54, %v2653_v20  ;;  %v1307_v22 = vmul.f32 %v1306_v11, %v2653_v20  ;;  %v983_v30 = vadd.f32 1.1283791, %v982_v53  ;;  %v2730_v27 = vld [vmem:[%s3069_s6] ss:$0 sm:$0xff] }
 0x2a2   :  { %1801 = vrcp.f32 %v2672_v19  ;;  %vm621_vm12 = vweird.f32 %v2599_v6  ;;  %v625_v32 = vmul.f32 %v2655_v8, %v2617_v42  ;;  %v1260_v43 = vmul.f32 %v1259_v34, %v2623_v37 }
 0x2a3   :  { %v1462_v41 = vadd.f32 1.0, %v1663_v25  ;;  %v1271_v38 = vmul.f32 %v1270_v44, %v2623_v37  ;;  %v1297_v18 = vadd.f32 0.0036580483, %v1296_v21  ;;  %v2687_v40 = vmul.f32 0.5, %v2595_v55  ;;  %vm622_vm13 = vmor %vm620_vm11, %vm621_vm12 }
 0x2a4   :  { %v1308_v61 = vadd.f32 0.014752088, %v1307_v22  ;;  %v619_v46 = vmul.f32 %v2599_v6, %v618_v29  ;;  %v546_v59 = vmul.f32 0.03125, %v529_v7  ;;  %v1261_v10 = vadd.f32 0.18741608, %v1260_v43 }
 0x2a5   :  { %v1478_v23 = vmul.f32 %v1462_v41, %v2611_v33  ;;  %v1272_v3 = vadd.f32 0.4994258, %v1271_v38  ;;  %v1298_v58 = vmul.f32 %v1297_v18, %v2653_v20  ;;  %v626_v24 = vmul.f32 %v2655_v8, %v625_v32 }
 0x2a6   :  { %v1309_v4 = vmul.f32 %v1308_v61, %v2653_v20  ;;  %v623_v55 = vsel %vm622_vm13, %v2599_v6, %v619_v46  ;;  %vm630_vm14 = vweird.f32 %v2617_v42  ;;  %v984_v33 = vmul.f32 %v983_v30, %v2558_v15 }
 0x2a7   :  { %v2700_v35 = vadd.f32 %v1494_v51, %v1478_v23  ;;  %v1273_v62 = vmul.f32 %v1272_v3, %v2623_v37  ;;  %v1299_v60 = vadd.f32 0.05243302, %v1298_v58  ;;  %v1262_v5 = vmul.f32 %v1261_v10, %v2623_v37 }
 0x2a8   :  { %v1802_v9 = vpop.eup %1801  ;;  %v1310_v1 = vadd.f32 0.112945676, %v1309_v4  ;;  %v729_v52 = vmul.f32 %v623_v55, %v2149_v36  ;;  %v627_v47 = vmul.f32 0.5, %v626_v24  ;;  %v1004_v15 = vand.u32 2147483647, %v2672_v19 }
 0x2a9   :  { %1526 = vst [vmem:[%s3070_s7 + $0x50] sm:$0xff] %v2700_v35  ;;  %v996_v6 = vmul.f32 %v1802_v9, %v2672_v19  ;;  %v2712_v12 = vadd.f32 1.0, %v1273_v62  ;;  %v2714_v26 = vadd.f32 1e-05, %v546_v59  ;;  %v1300_v37 = vmul.f32 %v1299_v60, %v2653_v20  ;;  %v2721_v36 = vld [vmem:[%s3068_s5] ss:$0 sm:$0xff] }
 0x2aa   :  { %v1311_v53 = vmul.f32 %v1310_v1, %v2653_v20  ;;  %v749_v0 = vmul.f32 %v2721_v36, %v729_v52  ;;  %v628_v16 = vsub.f32 1.5, %v627_v47  ;;  %v1006_v63 = vand.u32 2147483648, %v2672_v19 }
 0x2ab   :  { %v997_v50 = vsub.f32 1.0, %v996_v6  ;;  %1803 = vrcp.f32 %v2712_v12  ;;  %vm631_vm15 = vweird.f32 %v2655_v8  ;;  %vm1001_vm0 = vweird.f32 %v1802_v9  ;;  %v1488_v6 = vld [vmem:[%s3065_s2 + $0x20] sm:$0xff] }
 0x2ac   :  { %v1263_v13 = vadd.f32 1.1283791, %v1262_v5  ;;  %v1301_v56 = vadd.f32 0.18741608, %v1300_v37  ;;  %v2733_v54 = vadd.f32 %v2730_v27, %v749_v0  ;;  %v1312_v34 = vadd.f32 0.4994258, %v1311_v53  ;;  %vm632_vm2 = vmor %vm630_vm14, %vm631_vm15 }
 0x2ad   :  { %v998_v11 = vmul.f32 %v1802_v9, %v997_v50  ;;  %v629_v44 = vmul.f32 %v2655_v8, %v628_v16  ;;  %1805 = vrsqrt.f32 %v2714_v26  ;;  %vm1000_vm1 = vweird.f32 %v2672_v19 }
 0x2ae   :  { %v1284_v29 = vand.u32 2147483647, %v2712_v12  ;;  %v1286_v25 = vand.u32 2147483648, %v2712_v12  ;;  %v1302_v21 = vmul.f32 %v1301_v56, %v2653_v20  ;;  %v1313_v7 = vmul.f32 %v1312_v34, %v2653_v20  ;;  %vm1002_vm3 = vmor %vm1000_vm1, %vm1001_vm0 }
 0x2af   :  { %v999_v22 = vadd.f32 %v1802_v9, %v998_v11  ;;  %v2745_v30 = vmul.f32 0.70710677, %v2733_v54  ;;  %v633_v32 = vsel %vm632_vm2, %v2655_v8, %v629_v44  ;;  %vm1005_vm4 = vcmp.eq.f32.partialorder %v1004_v15, 8.507059e+37 }
 0x2b0   :  { %v1007_v19 = vor.u32 1.1754944e-38, %v1006_v63  ;;  %v1264_v41 = vmul.f32 %v1263_v13, %v2605_v14  ;;  %v730_v43 = vmul.f32 %v633_v32, %v2155_v39  ;;  %vm1280_vm5 = vweird.f32 %v2712_v12  ;;  %v527_v14 = vpop.xlane.xlu2 %526 }
 0x2b1   :  { %v1804_v38 = vpop.eup %1803  ;;  %v1003_v18 = vsel %vm1002_vm3, %v1802_v9, %v999_v22  ;;  %v2752_v42 = vadd.f32 1.0, %v1313_v7  ;;  %v1012_v20 = vmul.f32 %v2745_v30, %v2745_v30  ;;  %vm2757_vm6 = vcmp.eq.f32.partialorder %v1284_v29, 8.507059e+37 }
 0x2b2   :  { %v1008_v51 = vsel %vm1005_vm4, %v1007_v19, %v1003_v18  ;;  %v1276_v8 = vmul.f32 %v1804_v38, %v2712_v12  ;;  %v1287_v46 = vor.u32 1.1754944e-38, %v1286_v25  ;;  %v2763_v23 = vadd.f32 1.1283791, %v1302_v21 }
 0x2b3   :  { %v2761_v59 = vpop.eup %1805  ;;  %v1009_v39 = vmul.f32 %v1008_v51, %v984_v33  ;;  %1807 = vrcp.f32 %v2752_v42  ;;  %v539_v10 = vmul.f32 0.03125, %v515_v17  ;;  %v1326_v58 = vand.u32 2147483648, %v2752_v42 }
 0x2b4   :  { %v1277_v3 = vsub.f32 1.0, %v1276_v8  ;;  %v2767_v4 = vmin.f32 %v1012_v20, 16.0  ;;  %v750_v55 = vmul.f32 %v2721_v36, %v730_v43  ;;  %vm1281_vm7 = vweird.f32 %v1804_v38 }
 0x2b5   :  { %v1657_v24 = vclamps-f32 %v1009_v39, 1.0  ;;  %v705_v62 = vmul.f32 %v2761_v59, %v2714_v26  ;;  %v545_v60 = vmul.f32 0.03125, %v527_v14  ;;  %v1324_v33 = vand.u32 2147483647, %v2752_v42  ;;  %vm1282_vm11 = vmor %vm1280_vm5, %vm1281_vm7  ;;  %v1495_v14 = vld [vmem:[%s3065_s2 + $0x58] sm:$0xff] }
 0x2b6   :  { %v1278_v9 = vmul.f32 %v1804_v38, %v1277_v3  ;;  %v1014_v5 = vmul.f32 2.1237322e-06, %v2767_v4  ;;  %v1025_v1 = vmul.f32 3.8918573e-05, %v2767_v4  ;;  %vm710_vm8 = vweird.f32 %v2714_v26 }
 0x2b7   :  { %v1456_v52 = vadd.f32 1.0, %v1657_v24  ;;  %v2777_v47 = vadd.f32 %v2730_v27, %v750_v55  ;;  %v706_v17 = vmul.f32 %v2761_v59, %v705_v62  ;;  %vm711_vm9 = vweird.f32 %v2761_v59 }
 0x2b8   :  { %v1279_v15 = vadd.f32 %v1804_v38, %v1278_v9  ;;  %vm1320_vm10 = vweird.f32 %v2752_v42  ;;  %v1327_v37 = vor.u32 1.1754944e-38, %v1326_v58  ;;  %v1015_v53 = vadd.f32 0.00028619796, %v1014_v5  ;;  %vm712_vm13 = vmor %vm710_vm8, %vm711_vm9 }
 0x2b9   :  { %v1026_v0 = vadd.f32 0.001143296, %v1025_v1  ;;  %v1808_v16 = vpop.eup %1807  ;;  %v1472_v50 = vmul.f32 %v1456_v52, %v2670_v28  ;;  %v2790_v63 = vmul.f32 0.70710677, %v2777_v47  ;;  %v707_v13 = vmul.f32 0.5, %v706_v17 }
 0x2ba   :  { %v2792_v56 = vadd.f32 1e-05, %v539_v10  ;;  %v1283_v11 = vsel %vm1282_vm11, %v1804_v38, %v1279_v15  ;;  %v1316_v34 = vmul.f32 %v1808_v16, %v2752_v42  ;;  %v1016_v44 = vmul.f32 %v1015_v53, %v2767_v4 }
 0x2bb   :  { %v2796_v29 = vadd.f32 1e-05, %v545_v60  ;;  %v2798_v25 = vadd.f32 %v1488_v6, %v1472_v50  ;;  %v1288_v28 = vsel %vm2757_vm6, %v1287_v46, %v1283_v11  ;;  %v1027_v12 = vmul.f32 %v1026_v0, %v2767_v4 }
 0x2bc   :  { %v1052_v21 = vmul.f32 %v2790_v63, %v2790_v63  ;;  %v1289_v22 = vmul.f32 %v1288_v28, %v1264_v41  ;;  %v1317_v7 = vsub.f32 1.0, %v1316_v34  ;;  %v1017_v32 = vadd.f32 0.0036580483, %v1016_v44  ;;  %v1496_v28 = vld [vmem:[%s3065_s2 + $0x60] sm:$0xff] }
 0x2bd   :  { %v708_v19 = vsub.f32 1.5, %v707_v13  ;;  %1520 = vst [vmem:[%s3070_s7 + $0x20] sm:$0xff] %v2798_v25  ;;  %vm1321_vm12 = vweird.f32 %v1808_v16  ;;  %v1028_v43 = vadd.f32 0.014752088, %v1027_v12  ;;  %1809 = vrsqrt.f32 %v2792_v56 }
 0x2be   :  { %v2809_v38 = vmin.f32 %v1052_v21, 16.0  ;;  %v1664_v18 = vclamps-f32 %v1289_v22, 1.0  ;;  %v1318_v20 = vmul.f32 %v1808_v16, %v1317_v7  ;;  %v1018_v51 = vmul.f32 %v1017_v32, %v2767_v4  ;;  %vm1322_vm14 = vmor %vm1320_vm10, %vm1321_vm12 }
 0x2bf   :  { %v709_v41 = vmul.f32 %v2761_v59, %v708_v19  ;;  %v1029_v8 = vmul.f32 %v1028_v43, %v2767_v4  ;;  %1811 = vrsqrt.f32 %v2796_v29  ;;  %v1304_v9 = vmul.f32 %v2763_v23, %v2641_v2 }
 0x2c0   :  { %v1054_v61 = vmul.f32 2.1237322e-06, %v2809_v38  ;;  %v1065_v46 = vmul.f32 3.8918573e-05, %v2809_v38  ;;  %v1463_v39 = vadd.f32 1.0, %v1664_v18  ;;  %v1319_v10 = vadd.f32 %v1808_v16, %v1318_v20 }
 0x2c1   :  { %v1019_v3 = vadd.f32 0.05243302, %v1018_v51  ;;  %v713_v58 = vsel %vm712_vm13, %v2761_v59, %v709_v41  ;;  %v1030_v55 = vadd.f32 0.112945676, %v1029_v8  ;;  %vm1325_vm15 = vcmp.eq.f32.partialorder %v1324_v33, 8.507059e+37 }
 0x2c2   :  { %v1055_v24 = vadd.f32 0.00028619796, %v1054_v61  ;;  %v1066_v62 = vadd.f32 0.001143296, %v1065_v46  ;;  %v738_v26 = vmul.f32 %v713_v58, %v2162_v48  ;;  %v1479_v60 = vmul.f32 %v1463_v39, %v2687_v40  ;;  %v531_v61 = vpop.xlane.xlu1 %530 }
 0x2c3   :  { %v1323_v5 = vsel %vm1322_vm14, %v1808_v16, %v1319_v10  ;;  %v2833_v1 = vpop.eup %1809  ;;  %v1031_v59 = vmul.f32 %v1030_v55, %v2767_v4  ;;  %v1020_v48 = vmul.f32 %v1019_v3, %v2767_v4  ;;  %v792_v12 = vmul.f32 0.5, %v2620_v45 }
 0x2c4   :  { %v1328_v52 = vsel %vm1325_vm15, %v1327_v37, %v1323_v5  ;;  %v1056_v42 = vmul.f32 %v1055_v24, %v2809_v38  ;;  %v1067_v17 = vmul.f32 %v1066_v62, %v2809_v38  ;;  %v1511_v6 = vadd.f32 %v1495_v14, %v1479_v60 }
 0x2c5   :  { %v1329_v15 = vmul.f32 %v1328_v52, %v1304_v9  ;;  %v758_v40 = vmul.f32 %v2721_v36, %v738_v26  ;;  %v2840_v53 = vpop.eup %1811  ;;  %v1032_v2 = vadd.f32 0.4994258, %v1031_v59  ;;  %v635_v37 = vmul.f32 %v2833_v1, %v2792_v56 }
 0x2c6   :  { %v1057_v23 = vadd.f32 0.0036580483, %v1056_v42  ;;  %v1068_v33 = vadd.f32 0.014752088, %v1067_v17  ;;  %1527 = vst [vmem:[%s3070_s7 + $0x58] sm:$0xff] %v1511_v6  ;;  %v1713_v0 = vpack.c.bf16 %v1511_v6, %v2700_v35  ;;  %v695_v20 = vmul.f32 %v2840_v53, %v2796_v29 }
 0x2c7   :  { %v1665_v16 = vclamps-f32 %v1329_v15, 1.0  ;;  %v2849_v50 = vadd.f32 %v2730_v27, %v758_v40  ;;  %v1033_v13 = vmul.f32 %v1032_v2, %v2767_v4  ;;  %v636_v44 = vmul.f32 %v2833_v1, %v635_v37 }
 0x2c8   :  { %v1058_v11 = vmul.f32 %v1057_v23, %v2809_v38  ;;  %v1069_v34 = vmul.f32 %v1068_v33, %v2809_v38  ;;  %1729 = vst [vmem:[#allocation3 + $0x28] sm:$0xff] %v1713_v0   ;;  %v1021_v21 = vadd.f32 0.18741608, %v1020_v48  ;;  %vm641_vm0 = vweird.f32 %v2833_v1 }
 0x2c9   :  { %v1464_v35 = vadd.f32 1.0, %v1665_v16  ;;  %v2859_v22 = vadd.f32 1.0, %v1033_v13  ;;  %v637_v19 = vmul.f32 0.5, %v636_v44  ;;  %v2862_v18 = vmul.f32 0.70710677, %v2849_v50 }
 0x2ca   :  { %v1059_v7 = vadd.f32 0.05243302, %v1058_v11  ;;  %v1070_v32 = vadd.f32 0.112945676, %v1069_v34  ;;  %v1022_v45 = vmul.f32 %v1021_v21, %v2767_v4  ;;  %v696_v39 = vmul.f32 %v2840_v53, %v695_v20 }
 0x2cb   :  { %v1480_v43 = vmul.f32 %v1464_v35, %v792_v12  ;;  %1813 = vrcp.f32 %v2859_v22  ;;  %v1372_v8 = vmul.f32 %v2862_v18, %v2862_v18  ;;  %v638_v14 = vsub.f32 1.5, %v637_v19 }
 0x2cc   :  { %v1071_v41 = vmul.f32 %v1070_v32, %v2809_v38  ;;  %v1060_v46 = vmul.f32 %v1059_v7, %v2809_v38  ;;  %vm640_vm1 = vweird.f32 %v2792_v56  ;;  %v697_v58 = vmul.f32 0.5, %v696_v39 }
 0x2cd   :  { %v2867_v51 = vadd.f32 %v1496_v28, %v1480_v43  ;;  %v2880_v4 = vmin.f32 %v1372_v8, 16.0  ;;  %v639_v3 = vmul.f32 %v2833_v1, %v638_v14  ;;  %v547_v55 = vmul.f32 0.03125, %v531_v61  ;;  %vm642_vm2 = vmor %vm640_vm1, %vm641_vm0 }
 0x2ce   :  { %v1072_v10 = vadd.f32 0.4994258, %v1071_v41  ;;  %vm700_vm3 = vweird.f32 %v2796_v29  ;;  %v1023_v9 = vadd.f32 1.1283791, %v1022_v45  ;;  %v1061_v5 = vadd.f32 0.18741608, %v1060_v46 }
 0x2cf   :  { %1528 = vst [vmem:[%s3070_s7 + $0x60] sm:$0xff] %v2867_v51  ;;  %v1374_v62 = vmul.f32 2.1237322e-06, %v2880_v4  ;;  %v1385_v26 = vmul.f32 3.8918573e-05, %v2880_v4  ;;  %v643_v52 = vsel %vm642_vm2, %v2833_v1, %v639_v3  ;;  %v698_v59 = vsub.f32 1.5, %v697_v58 }
 0x2d0   :  { %v1073_v24 = vmul.f32 %v1072_v10, %v2809_v38  ;;  %vm701_vm4 = vweird.f32 %v2840_v53  ;;  %v2893_v17 = vadd.f32 1e-05, %v547_v55  ;;  %v731_v48 = vmul.f32 %v643_v52, %v2165_v49  ;;  %v1489_v52 = vld [vmem:[%s3065_s2 + $0x28] sm:$0xff] }
 0x2d1   :  { %v1814_v60 = vpop.eup %1813  ;;  %v1375_v6 = vadd.f32 0.00028619796, %v1374_v62  ;;  %v1386_v15 = vadd.f32 0.001143296, %v1385_v26  ;;  %v699_v40 = vmul.f32 %v2840_v53, %v698_v59  ;;  %v1044_v23 = vand.u32 2147483647, %v2859_v22  ;;  %vm702_vm6 = vmor %vm700_vm3, %vm701_vm4 }
 0x2d2   :  { %v1036_v42 = vmul.f32 %v1814_v60, %v2859_v22  ;;  %v2890_v56 = vadd.f32 1.0, %v1073_v24  ;;  %v1046_v1 = vand.u32 2147483648, %v2859_v22  ;;  %vm1041_vm5 = vweird.f32 %v1814_v60 }
 0x2d3   :  { %v1062_v33 = vmul.f32 %v1061_v5, %v2809_v38  ;;  %v1376_v37 = vmul.f32 %v1375_v6, %v2880_v4  ;;  %v1387_v0 = vmul.f32 %v1386_v15, %v2880_v4  ;;  %v751_v16 = vmul.f32 %v2721_v36, %v731_v48 }
 0x2d4   :  { %v1037_v2 = vsub.f32 1.0, %v1036_v42  ;;  %1815 = vrcp.f32 %v2890_v56  ;;  %v703_v13 = vsel %vm702_vm6, %v2840_v53, %v699_v40  ;;  %v1024_v11 = vmul.f32 %v1023_v9, %v2745_v30 }
 0x2d5   :  { %1817 = vrsqrt.f32 %v2893_v17  ;;  %v1377_v34 = vadd.f32 0.0036580483, %v1376_v37  ;;  %v1388_v44 = vadd.f32 0.014752088, %v1387_v0  ;;  %vm1040_vm7 = vweird.f32 %v2859_v22 }
 0x2d6   :  { %v1038_v49 = vmul.f32 %v1814_v60, %v1037_v2  ;;  %v2911_v38 = vadd.f32 %v2730_v27, %v751_v16  ;;  %v737_v29 = vmul.f32 %v703_v13, %v2174_v31  ;;  %vm1042_vm8 = vmor %vm1040_vm7, %vm1041_vm5  ;;  %v1047_v12 = vor.u32 1.1754944e-38, %v1046_v1 }
 0x2d7   :  { %v1063_v35 = vadd.f32 1.1283791, %v1062_v33  ;;  %v1378_v53 = vmul.f32 %v1377_v34, %v2880_v4  ;;  %v1389_v21 = vmul.f32 %v1388_v44, %v2880_v4  ;;  %vm1045_vm9 = vcmp.eq.f32.partialorder %v1044_v23, 8.507059e+37 }
 0x2d8   :  { %v1039_v28 = vadd.f32 %v1814_v60, %v1038_v49  ;;  %v2918_v32 = vmul.f32 0.70710677, %v2911_v38  ;;  %v757_v22 = vmul.f32 %v2721_v36, %v737_v29  ;;  %v785_v19 = vmul.f32 0.5, %v2733_v54 }
 0x2d9   :  { %v1086_v20 = vand.u32 2147483648, %v2890_v56  ;;  %v1390_v8 = vadd.f32 0.112945676, %v1389_v21  ;;  %v1064_v14 = vmul.f32 %v1063_v35, %v2790_v63  ;;  %vm1080_vm10 = vweird.f32 %v2890_v56 }
 0x2da   :  { %v1816_v7 = vpop.eup %1815  ;;  %v1043_v30 = vsel %vm1042_vm8, %v1814_v60, %v1039_v28  ;;  %v1092_v61 = vmul.f32 %v2918_v32, %v2918_v32  ;;  %v2929_v46 = vadd.f32 %v2730_v27, %v757_v22  ;;  %v1379_v54 = vadd.f32 0.05243302, %v1378_v53 }
 0x2db   :  { %v1048_v43 = vsel %vm1045_vm9, %v1047_v12, %v1043_v30  ;;  %v1076_v31 = vmul.f32 %v1816_v7, %v2890_v56  ;;  %v2924_v45 = vpop.eup %1817  ;;  %v1391_v3 = vmul.f32 %v1390_v8, %v2880_v4  ;;  %vm1081_vm11 = vweird.f32 %v1816_v7 }
 0x2dc   :  { %v1049_v41 = vmul.f32 %v1048_v43, %v1024_v11  ;;  %v2934_v58 = vmin.f32 %v1092_v61, 16.0  ;;  %v715_v55 = vmul.f32 %v2924_v45, %v2893_v17  ;;  %v1084_v62 = vand.u32 2147483647, %v2890_v56  ;;  %vm1082_vm12 = vmor %vm1080_vm10, %vm1081_vm11 }
 0x2dd   :  { %v1077_v39 = vsub.f32 1.0, %v1076_v31  ;;  %v2940_v26 = vmul.f32 0.70710677, %v2929_v46  ;;  %v1087_v60 = vor.u32 1.1754944e-38, %v1086_v20  ;;  %v1392_v9 = vadd.f32 0.4994258, %v1391_v3 }
 0x2de   :  { %v1658_v10 = vclamps-f32 %v1049_v41, 1.0  ;;  %v1094_v5 = vmul.f32 2.1237322e-06, %v2934_v58  ;;  %v1380_v42 = vmul.f32 %v1379_v54, %v2880_v4  ;;  %v1105_v6 = vmul.f32 3.8918573e-05, %v2934_v58 }
 0x2df   :  { %v1078_v24 = vmul.f32 %v1816_v7, %v1077_v39  ;;  %v1332_v15 = vmul.f32 %v2940_v26, %v2940_v26  ;;  %v1393_v40 = vmul.f32 %v1392_v9, %v2880_v4  ;;  %v716_v23 = vmul.f32 %v2924_v45, %v715_v55 }
 0x2e0   :  { %v1457_v63 = vadd.f32 1.0, %v1658_v10  ;;  %v1095_v2 = vadd.f32 0.00028619796, %v1094_v5  ;;  %vm1085_vm13 = vcmp.eq.f32.partialorder %v1084_v62, 8.507059e+37  ;;  %v1106_v33 = vadd.f32 0.001143296, %v1105_v6 }
 0x2e1   :  { %v1079_v59 = vadd.f32 %v1816_v7, %v1078_v24  ;;  %v2954_v37 = vmin.f32 %v1332_v15, 16.0  ;;  %v2956_v16 = vadd.f32 1.0, %v1393_v40  ;;  %v1381_v28 = vadd.f32 0.18741608, %v1380_v42 }
 0x2e2   :  { %v1473_v48 = vmul.f32 %v1457_v63, %v785_v19  ;;  %v1096_v13 = vmul.f32 %v1095_v2, %v2934_v58  ;;  %v1107_v56 = vmul.f32 %v1106_v33, %v2934_v58  ;;  %v717_v29 = vmul.f32 0.5, %v716_v23 }
 0x2e3   :  { %v1083_v1 = vsel %vm1082_vm12, %v1816_v7, %v1079_v59  ;;  %v1334_v34 = vmul.f32 2.1237322e-06, %v2954_v37  ;;  %1819 = vrcp.f32 %v2956_v16  ;;  %v1345_v7 = vmul.f32 3.8918573e-05, %v2954_v37 }
 0x2e4   :  { %v1505_v0 = vadd.f32 %v1489_v52, %v1473_v48  ;;  %v1088_v49 = vsel %vm1085_vm13, %v1087_v60, %v1083_v1  ;;  %v1097_v35 = vadd.f32 0.0036580483, %v1096_v13  ;;  %v1108_v53 = vadd.f32 0.014752088, %v1107_v56 }
 0x2e5   :  { %v1089_v11 = vmul.f32 %v1088_v49, %v1064_v14  ;;  %v1335_v21 = vadd.f32 0.00028619796, %v1334_v34  ;;  %v786_v30 = vmul.f32 0.5, %v2777_v47  ;;  %v1346_v43 = vadd.f32 0.001143296, %v1345_v7 }
 0x2e6   :  { %1521 = vst [vmem:[%s3070_s7 + $0x28] sm:$0xff] %v1505_v0  ;;  %v1698_v44 = vpack.c.bf16 %v1505_v0, %v2798_v25  ;;  %v1109_v19 = vmul.f32 %v1108_v53, %v2934_v58  ;;  %v1490_v25 = vld [vmem:[%s3065_s2 + $0x30] sm:$0xff]  ;;  %v718_v31 = vsub.f32 1.5, %v717_v29  ;;  %vm721_vm14 = vweird.f32 %v2924_v45 }
 0x2e7   :  { %v1659_v12 = vclamps-f32 %v1089_v11, 1.0  ;;  %v1382_v41 = vmul.f32 %v1381_v28, %v2880_v4  ;;  %v1336_v61 = vmul.f32 %v1335_v21, %v2954_v37  ;;  %v1098_v47 = vmul.f32 %v1097_v35, %v2934_v58 }
 0x2e8   :  { %1726 = vst [vmem:[#allocation3 + $0x10] sm:$0xff] %v1698_v44   ;;  %v1110_v8 = vadd.f32 0.112945676, %v1109_v19  ;;  %v1347_v39 = vmul.f32 %v1346_v43, %v2954_v37  ;;  %v719_v54 = vmul.f32 %v2924_v45, %v718_v31  ;;  %vm720_vm15 = vweird.f32 %v2893_v17 }
 0x2e9   :  { %v1458_v22 = vadd.f32 1.0, %v1659_v12  ;;  %v1820_v14 = vpop.eup %1819  ;;  %vm722_vm0 = vmor %vm720_vm15, %vm721_vm14  ;;  %v1383_v62 = vadd.f32 1.1283791, %v1382_v41  ;;  %v1337_v60 = vadd.f32 0.0036580483, %v1336_v61  ;;  %v1406_v9 = vand.u32 2147483648, %v2956_v16 }
 0x2ea   :  { %v1396_v3 = vmul.f32 %v1820_v14, %v2956_v16  ;;  %v1111_v55 = vmul.f32 %v1110_v8, %v2934_v58  ;;  %v1348_v4 = vadd.f32 0.014752088, %v1347_v39  ;;  %v723_v24 = vsel %vm722_vm0, %v2924_v45, %v719_v54 }
 0x2eb   :  { %v1474_v20 = vmul.f32 %v1458_v22, %v786_v30  ;;  %v739_v17 = vmul.f32 %v723_v24, %v2177_v57  ;;  %v1099_v5 = vadd.f32 0.05243302, %v1098_v47  ;;  %vm1401_vm1 = vweird.f32 %v1820_v14  ;;  %v1498_v30 = vld [vmem:[%s3065_s2 + $0x70] sm:$0xff] }
 0x2ec   :  { %v1397_v63 = vsub.f32 1.0, %v1396_v3  ;;  %v1112_v52 = vadd.f32 0.4994258, %v1111_v55  ;;  %v1349_v59 = vmul.f32 %v1348_v4, %v2954_v37  ;;  %v1404_v45 = vand.u32 2147483647, %v2956_v16 }
 0x2ed   :  { %v2979_v10 = vadd.f32 %v1490_v25, %v1474_v20  ;;  %v759_v6 = vmul.f32 %v2721_v36, %v739_v17  ;;  %vm1400_vm2 = vweird.f32 %v2956_v16  ;;  %v1338_v57 = vmul.f32 %v1337_v60, %v2954_v37 }
 0x2ee   :  { %v1398_v42 = vmul.f32 %v1820_v14, %v1397_v63  ;;  %v1113_v15 = vmul.f32 %v1112_v52, %v2934_v58  ;;  %v1350_v48 = vadd.f32 0.112945676, %v1349_v59  ;;  %vm1402_vm3 = vmor %vm1400_vm2, %vm1401_vm1  ;;  %v1407_v23 = vor.u32 1.1754944e-38, %v1406_v9 }
 0x2ef   :  { %1522 = vst [vmem:[%s3070_s7 + $0x30] sm:$0xff] %v2979_v10  ;;  %v2997_v2 = vadd.f32 %v2730_v27, %v759_v6  ;;  %v1100_v1 = vmul.f32 %v1099_v5, %v2934_v58  ;;  %v1384_v36 = vmul.f32 %v1383_v62, %v2862_v18  ;;  %vm1405_vm4 = vcmp.eq.f32.partialorder %v1404_v45, 8.507059e+37 }
 0x2f0   :  { %v1399_v40 = vadd.f32 %v1820_v14, %v1398_v42  ;;  %v1114_v33 = vadd.f32 1.0, %v1113_v15  ;;  %v1351_v0 = vmul.f32 %v1350_v48, %v2954_v37  ;;  %v1339_v56 = vadd.f32 0.05243302, %v1338_v57 }
 0x2f1   :  { %v3003_v13 = vmul.f32 0.70710677, %v2997_v2  ;;  %v1101_v34 = vadd.f32 0.18741608, %v1100_v1  ;;  %v794_v18 = vmul.f32 0.5, %v2849_v50 }
 0x2f2   :  { %v1403_v49 = vsel %vm1402_vm3, %v1820_v14, %v1399_v40  ;;  %1821 = vrcp.f32 %v1114_v33  ;;  %v1352_v27 = vadd.f32 0.4994258, %v1351_v0  ;;  %v1340_v53 = vmul.f32 %v1339_v56, %v2954_v37 }
 0x2f3   :  { %v1408_v16 = vsel %vm1405_vm4, %v1407_v23, %v1403_v49  ;;  %v1412_v44 = vmul.f32 %v3003_v13, %v3003_v13  ;;  %v1102_v22 = vmul.f32 %v1101_v34, %v2934_v58  ;;  %v1126_v47 = vand.u32 2147483648, %v1114_v33 }
 0x2f4   :  { %v1409_v11 = vmul.f32 %v1408_v16, %v1384_v36  ;;  %v1353_v29 = vmul.f32 %v1352_v27, %v2954_v37  ;;  %v1341_v8 = vadd.f32 0.18741608, %v1340_v53  ;;  %v1124_v54 = vand.u32 2147483647, %v1114_v33  ;;  %v1491_v16 = vld [vmem:[%s3065_s2 + $0x38] sm:$0xff] }
 0x2f5   :  { %v3008_v12 = vmin.f32 %v1412_v44, 16.0  ;;  %v1103_v14 = vadd.f32 1.1283791, %v1102_v22  ;;  %vm1120_vm6 = vweird.f32 %v1114_v33  ;;  %v1127_v63 = vor.u32 1.1754944e-38, %v1126_v47 }
 0x2f6   :  { %v1667_v28 = vclamps-f32 %v1409_v11, 1.0  ;;  %v1354_v21 = vadd.f32 1.0, %v1353_v29  ;;  %v1342_v24 = vmul.f32 %v1341_v8, %v2954_v37  ;;  %vm1125_vm8 = vcmp.eq.f32.partialorder %v1124_v54, 8.507059e+37 }
 0x2f7   :  { %v1414_v19 = vmul.f32 2.1237322e-06, %v3008_v12  ;;  %v1425_v25 = vmul.f32 3.8918573e-05, %v3008_v12  ;;  %v1104_v9 = vmul.f32 %v1103_v14, %v2918_v32  ;;  %v787_v32 = vmul.f32 0.5, %v2911_v38 }
 0x2f8   :  { %v1466_v35 = vadd.f32 1.0, %v1667_v28  ;;  %v1822_v7 = vpop.eup %1821  ;;  %1823 = vrcp.f32 %v1354_v21  ;;  %v1343_v6 = vadd.f32 1.1283791, %v1342_v24  ;;  %v1366_v15 = vand.u32 2147483648, %v1354_v21  ;;  %v1499_v24 = vld [vmem:[%s3065_s2 + $0x78] sm:$0xff] }
 0x2f9   :  { %v1116_v31 = vmul.f32 %v1822_v7, %v1114_v33  ;;  %v1415_v20 = vadd.f32 0.00028619796, %v1414_v19  ;;  %v1426_v61 = vadd.f32 0.001143296, %v1425_v25  ;;  %vm1121_vm5 = vweird.f32 %v1822_v7 }
 0x2fa   :  { %v1482_v43 = vmul.f32 %v1466_v35, %v794_v18  ;;  %vm1122_vm7 = vmor %vm1120_vm6, %vm1121_vm5  ;;  %v1364_v37 = vand.u32 2147483647, %v1354_v21  ;;  %vm1360_vm10 = vweird.f32 %v1354_v21  ;;  %v1367_v36 = vor.u32 1.1754944e-38, %v1366_v15 }
 0x2fb   :  { %v1117_v41 = vsub.f32 1.0, %v1116_v31  ;;  %v1416_v39 = vmul.f32 %v1415_v20, %v3008_v12  ;;  %v1427_v3 = vmul.f32 %v1426_v61, %v3008_v12  ;;  %v1344_v11 = vmul.f32 %v1343_v6, %v2940_v26 }
 0x2fc   :  { %v3018_v50 = vadd.f32 %v1498_v30, %v1482_v43  ;;  %vm1365_vm12 = vcmp.eq.f32.partialorder %v1364_v37, 8.507059e+37  ;;  %v793_v26 = vmul.f32 0.5, %v2929_v46  ;;  %v1497_v30 = vld [vmem:[%s3065_s2 + $0x68] sm:$0xff] }
 0x2fd   :  { %v1118_v58 = vmul.f32 %v1822_v7, %v1117_v41  ;;  %v1428_v62 = vadd.f32 0.014752088, %v1427_v3  ;;  %v1417_v17 = vadd.f32 0.0036580483, %v1416_v39 }
 0x2fe   :  { %1530 = vst [vmem:[%s3070_s7 + $0x70] sm:$0xff] %v3018_v50  ;;  %v1824_v55 = vpop.eup %1823 }
 0x2ff   :  { %v1119_v4 = vadd.f32 %v1822_v7, %v1118_v58  ;;  %v1356_v60 = vmul.f32 %v1824_v55, %v1354_v21  ;;  %v1429_v52 = vmul.f32 %v1428_v62, %v3008_v12  ;;  %vm1361_vm9 = vweird.f32 %v1824_v55 }
 0x300   :  { %v1418_v57 = vmul.f32 %v1417_v17, %v3008_v12  ;;  %vm1362_vm11 = vmor %vm1360_vm10, %vm1361_vm9 }
 0x301   :  { %v1123_v5 = vsel %vm1122_vm7, %v1822_v7, %v1119_v4  ;;  %v1357_v42 = vsub.f32 1.0, %v1356_v60  ;;  %v1430_v48 = vadd.f32 0.112945676, %v1429_v52 }
 0x302   :  { %v1128_v59 = vsel %vm1125_vm8, %v1127_v63, %v1123_v5  ;;  %v1419_v27 = vadd.f32 0.05243302, %v1418_v57 }
 0x303   :  { %v1129_v45 = vmul.f32 %v1128_v59, %v1104_v9  ;;  %v1358_v40 = vmul.f32 %v1824_v55, %v1357_v42  ;;  %v1431_v1 = vmul.f32 %v1430_v48, %v3008_v12 }
 0x304   :  { %v1420_v53 = vmul.f32 %v1419_v27, %v3008_v12 }
 0x305   :  { %v1660_v23 = vclamps-f32 %v1129_v45, 1.0  ;;  %v1359_v33 = vadd.f32 %v1824_v55, %v1358_v40  ;;  %v1432_v49 = vadd.f32 0.4994258, %v1431_v1 }
 0x306   :  { %v1421_v19 = vadd.f32 0.18741608, %v1420_v53 }
 0x307   :  { %v1459_v0 = vadd.f32 1.0, %v1660_v23  ;;  %v1363_v56 = vsel %vm1362_vm11, %v1824_v55, %v1359_v33  ;;  %v1433_v28 = vmul.f32 %v1432_v49, %v3008_v12 }
 0x308   :  { %v1368_v44 = vsel %vm1365_vm12, %v1367_v36, %v1363_v56 }
 0x309   :  { %v1475_v34 = vmul.f32 %v1459_v0, %v787_v32  ;;  %v1369_v29 = vmul.f32 %v1368_v44, %v1344_v11  ;;  %v1434_v38 = vadd.f32 1.0, %v1433_v28 }
 0x30b   :  { %v1507_v18 = vadd.f32 %v1491_v16, %v1475_v34  ;;  %v1666_v35 = vclamps-f32 %v1369_v29, 1.0  ;;  %1825 = vrcp.f32 %v1434_v38  ;;  %v1446_v41 = vand.u32 2147483648, %v1434_v38 }
 0x30c   :  { %v1444_v14 = vand.u32 2147483647, %v1434_v38  ;;  %vm1440_vm14 = vweird.f32 %v1434_v38 }
 0x30d   :  { %1523 = vst [vmem:[%s3070_s7 + $0x38] sm:$0xff] %v1507_v18  ;;  %v1703_v21 = vpack.c.bf16 %v1507_v18, %v2979_v10  ;;  %v1465_v7 = vadd.f32 1.0, %v1666_v35  ;;  %v1422_v10 = vmul.f32 %v1421_v19, %v3008_v12  ;;  %v1447_v39 = vor.u32 1.1754944e-38, %v1446_v41 }
 0x30e   :  { %vm1445_vm0 = vcmp.eq.f32.partialorder %v1444_v14, 8.507059e+37  ;;  %v795_v12 = vmul.f32 0.5, %v2997_v2 }
 0x30f   :  { %1727 = vst [vmem:[#allocation3 + $0x18] sm:$0xff] %v1703_v21   ;;  %v1481_v22 = vmul.f32 %v1465_v7, %v793_v26  ;;  %v1423_v8 = vadd.f32 1.1283791, %v1422_v10 }
 0x311   :  { %v1513_v25 = vadd.f32 %v1497_v30, %v1481_v22  ;;  %v1826_v43 = vpop.eup %1825  ;;  %v1424_v58 = vmul.f32 %v1423_v8, %v3003_v13 }
 0x312   :  { %v1436_v20 = vmul.f32 %v1826_v43, %v1434_v38  ;;  %vm1441_vm13 = vweird.f32 %v1826_v43 }
 0x313   :  { %1529 = vst [vmem:[%s3070_s7 + $0x68] sm:$0xff] %v1513_v25  ;;  %v1718_v31 = vpack.c.bf16 %v1513_v25, %v2867_v51  ;;  %vm1442_vm15 = vmor %vm1440_vm14, %vm1441_vm13 }
 0x314   :  { %v1437_v46 = vsub.f32 1.0, %v1436_v20 }
 0x315   :  { %1730 = vst [vmem:[#allocation3 + $0x30] sm:$0xff] %v1718_v31  }
 0x316   :  { %v1438_v61 = vmul.f32 %v1826_v43, %v1437_v46 }
 0x318   :  { %v1439_v47 = vadd.f32 %v1826_v43, %v1438_v61 }
 0x31a   :  { %v1443_v54 = vsel %vm1442_vm15, %v1826_v43, %v1439_v47 }
 0x31b   :  { %v1448_v3 = vsel %vm1445_vm0, %v1447_v39, %v1443_v54 }
 0x31c   :  { %v1449_v51 = vmul.f32 %v1448_v3, %v1424_v58 }
 0x31e   :  { %v1668_v55 = vclamps-f32 %v1449_v51, 1.0 }
 0x320   :  { %v1467_v4 = vadd.f32 1.0, %v1668_v55 }
 0x322   :  { %v1483_v62 = vmul.f32 %v1467_v4, %v795_v12 }
 0x324   :  { %v1515_v13 = vadd.f32 %v1499_v24, %v1483_v62 }
 0x326   :  { %1531 = vst [vmem:[%s3070_s7 + $0x78] sm:$0xff] %v1515_v13  ;;  %v1723_v2 = vpack.c.bf16 %v1515_v13, %v3018_v50 }
 0x328   :  { %1731 = vst [vmem:[#allocation3 + $0x38] sm:$0xff] %v1723_v2  }
 0x329   :  { %1578 = dma.vmem_to_hbm [thread:$0]  %s1571_s14, 1024, %s1573_s17, [#allocation4], %s1857_s20, %s1857_s20, %s1858_s21  }
 0x32a   :  { %1853 = dma.done.wait [#allocation4], 1024  }
 0x32b   :  { %1854 = vsyncadd [#allocation4], 4294966272 }
 0x32c   :  { %1585 = vsyncpa [#allocation4], 1 }

// kernel: graph_embedding_forward.7
= control target key start
LH: loop header
LB: loop body
LE: loop exit
PB: predicated region body
PF: predicated region fallthrough
CT: control target
= control target key end

     0   :  { %s130_s1 = inlined_call_operand.vmem [shape: f32[128,128], index: 1, kind: input, shape index: {}]   ;;  %s131_s0 = inlined_call_operand.vmem [shape: f32[8,128], index: 0, kind: input, shape index: {}]   ;;  %s132_s2 = inlined_call_operand.vmem [shape: f32[8,128], index: 2, kind: output, shape index: {}]  }
   0x1   :  { %v33_v0 = vld [vmem:[%s130_s1 + $0x78] sm:$0xff]  ;;  %v32_v1 = vld [vmem:[%s130_s1 + $0x70] sm:$0xff]  ;;  %v31_v2 = vld [vmem:[%s130_s1 + $0x68] sm:$0xff] }
   0x2   :  { %34 = vmatpush.msra.mxu0 %v33_v0  ;;  %v30_v3 = vld [vmem:[%s130_s1 + $0x60] sm:$0xff]  ;;  %v29_v4 = vld [vmem:[%s130_s1 + $0x58] sm:$0xff]  ;;  %v28_v5 = vld [vmem:[%s130_s1 + $0x50] sm:$0xff] }
   0x3   :  { %v27_v6 = vld [vmem:[%s130_s1 + $0x48] sm:$0xff]  ;;  %v26_v7 = vld [vmem:[%s130_s1 + $0x40] sm:$0xff]  ;;  %v25_v8 = vld [vmem:[%s130_s1 + $0x38] sm:$0xff] }
   0x4   :  { %35 = vmatpush.msra.mxu0 %v32_v1  ;;  %v24_v9 = vld [vmem:[%s130_s1 + $0x30] sm:$0xff]  ;;  %v23_v10 = vld [vmem:[%s130_s1 + $0x28] sm:$0xff]  ;;  %v22_v11 = vld [vmem:[%s130_s1 + $0x20] sm:$0xff] }
   0x5   :  { %v21_v12 = vld [vmem:[%s130_s1 + $0x18] sm:$0xff]  ;;  %v20_v13 = vld [vmem:[%s130_s1 + $0x10] sm:$0xff]  ;;  %v19_v14 = vld [vmem:[%s130_s1 + $0x8] sm:$0xff] }
   0x6   :  { %36 = vmatpush.msra.mxu0 %v31_v2  ;;  %v18_v15 = vld [vmem:[%s130_s1] sm:$0xff] }
   0x7   :  { %v17_v16 = vld [vmem:[%s131_s0] sm:$0xff] }
   0x8   :  { %37 = vmatpush.msra.mxu0 %v30_v3 }
   0xa   :  { %38 = vmatpush.msra.mxu0 %v29_v4 }
   0xc   :  { %39 = vmatpush.msra.mxu0 %v28_v5 }
   0xe   :  { %40 = vmatpush.msra.mxu0 %v27_v6 }
  0x10   :  { %41 = vmatpush.msra.mxu0 %v26_v7 }
  0x12   :  { %42 = vmatpush.msra.mxu0 %v25_v8 }
  0x14   :  { %43 = vmatpush.msra.mxu0 %v24_v9 }
  0x16   :  { %44 = vmatpush.msra.mxu0 %v23_v10 }
  0x18   :  { %45 = vmatpush.msra.mxu0 %v22_v11 }
  0x1a   :  { %46 = vmatpush.msra.mxu0 %v21_v12 }
  0x1c   :  { %47 = vmatpush.msra.mxu0 %v20_v13 }
  0x1e   :  { %48 = vmatpush.msra.mxu0 %v19_v14 }
  0x20   :  { %49 = vmatpush.msra.mxu0 %v18_v15 }
  0x21   :  { %50 = vmatmul.f32.vlgmr.msra.gmra.mxu0 %v17_v16 }
  0x9e   :  { %v51_v17 = vpop.f32.mrf.mxu0 }
  0x9f   :  { %55 = vst [vmem:[%s132_s2] sm:$0xff] %v51_v17 }

</bundles_post_ra>
